<compile_context>
chip_gen: v7x
topology: tpu7x:2x2x1
jax: 0.10.0
libtpu: 0.0.40
codegen_flags: <defaults>
</compile_context>

<pallas_src>
import jax
import jax.numpy as jnp
from jax.experimental import pallas as pl
from jax.experimental.pallas import tpu as pltpu

LATENT_DIM = 16
STYLE_DIM = 64
HIDDEN = 512
NUM_DOMAINS = 2


def _mapping_kernel(z_ref, y_ref,
                    w0_ref, ws_ref, bs_ref,      # shared trunk (bf16 W, f32 b)
                    whead_ref, bhead_ref,        # unshared hidden layers, this domain
                    wout_ref, bout_ref,          # unshared output layer, this domain
                    out_ref,
                    h_scratch):
    d = pl.program_id(0)

    # ---- shared trunk: computed once (d == 0), cached in VMEM scratch ----
    @pl.when(d == 0)
    def _():
        h = z_ref[...].astype(jnp.bfloat16)                               # (B, latent)
        h = jnp.maximum(
            jnp.dot(h, w0_ref[...], preferred_element_type=jnp.float32) + bs_ref[0],
            0.0)
        for l in range(3):
            h = jnp.maximum(
                jnp.dot(h.astype(jnp.bfloat16), ws_ref[l],
                        preferred_element_type=jnp.float32) + bs_ref[l + 1],
                0.0)
        h_scratch[...] = h.astype(jnp.bfloat16)
        out_ref[...] = jnp.zeros(out_ref.shape, out_ref.dtype)

    # ---- head for domain d (this domain's weights selected by the BlockSpec) ----
    t = h_scratch[...]                                                     # (B, H) bf16
    for l in range(3):
        t = jnp.maximum(
            jnp.dot(t, whead_ref[0, l], preferred_element_type=jnp.float32)
            + bhead_ref[0, l],
            0.0).astype(jnp.bfloat16)
    o = jnp.dot(t, wout_ref[0], preferred_element_type=jnp.float32) + bout_ref[0]

    # ---- per-sample domain select: out[b] = head_{y[b]}(h)[b] ----
    mask = y_ref[...] == d                                                 # (B, 1)
    out_ref[...] = jnp.where(mask, o, out_ref[...])


def mapping_network(z, y, params, num_domains=NUM_DOMAINS):
    """z: (B, latent_dim) f32, y: (B,) int domain ids -> (B, style_dim) f32."""
    B = z.shape[0]
    y2 = y.astype(jnp.int32).reshape(B, 1)

    w0, ws, bs = params["w0"], params["ws"], params["bs"]
    whead, bhead = params["whead"], params["bhead"]
    wout, bout = params["wout"], params["bout"]

    grid_spec = pltpu.PrefetchScalarGridSpec(
        num_scalar_prefetch=0,
        grid=(num_domains,),
        in_specs=[
            pl.BlockSpec(z.shape, lambda d: (0, 0)),
            pl.BlockSpec(y2.shape, lambda d: (0, 0)),
            pl.BlockSpec(w0.shape, lambda d: (0, 0)),
            pl.BlockSpec(ws.shape, lambda d: (0, 0, 0)),
            pl.BlockSpec(bs.shape, lambda d: (0, 0, 0)),
            pl.BlockSpec((1,) + whead.shape[1:], lambda d: (d, 0, 0, 0)),
            pl.BlockSpec((1,) + bhead.shape[1:], lambda d: (d, 0, 0, 0)),
            pl.BlockSpec((1,) + wout.shape[1:], lambda d: (d, 0, 0)),
            pl.BlockSpec((1,) + bout.shape[1:], lambda d: (d, 0, 0)),
        ],
        out_specs=pl.BlockSpec((B, STYLE_DIM), lambda d: (0, 0)),
        scratch_shapes=[pltpu.VMEM((B, HIDDEN), jnp.bfloat16)],
    )
    return pl.pallas_call(
        _mapping_kernel,
        out_shape=jax.ShapeDtypeStruct((B, STYLE_DIM), jnp.float32),
        grid_spec=grid_spec,
        compiler_params=pltpu.CompilerParams(
            dimension_semantics=("arbitrary",),
            vmem_limit_bytes=32 * 1024 * 1024,
        ),
    )(z, y2, w0, ws, bs, whead, bhead, wout, bout)


def init_params(key, latent_dim=LATENT_DIM, style_dim=STYLE_DIM,
                hidden=HIDDEN, num_domains=NUM_DOMAINS):
    """Synthetic init in the packed layout: weights bf16 (in, out), biases f32."""
    keys = jax.random.split(key, 8)
    k = iter(keys)

    def u(kw, shape, scale):
        return jax.random.uniform(kw, shape, jnp.float32, -scale, scale)

    s_lat = 1.0 / float(latent_dim) ** 0.5
    s_hid = 1.0 / float(hidden) ** 0.5
    return {
        "w0": u(next(k), (latent_dim, hidden), s_lat).astype(jnp.bfloat16),
        "ws": u(next(k), (3, hidden, hidden), s_hid).astype(jnp.bfloat16),
        "bs": u(next(k), (4, 1, hidden), 0.1),
        "whead": u(next(k), (num_domains, 3, hidden, hidden), s_hid).astype(jnp.bfloat16),
        "bhead": u(next(k), (num_domains, 3, 1, hidden), 0.1),
        "wout": u(next(k), (num_domains, hidden, style_dim), s_hid).astype(jnp.bfloat16),
        "bout": u(next(k), (num_domains, 1, style_dim), 0.1),
    }


def mapping_network_ref(z, y, params, num_domains=NUM_DOMAINS):
    """Pure-JAX reference with identical numerics (bf16 weights, f32 accumulate)."""
    relu = jax.nn.relu

    def dot(a, w):
        return jnp.dot(a.astype(jnp.bfloat16), w, preferred_element_type=jnp.float32)

    h = relu(dot(z, params["w0"]) + params["bs"][0])
    for l in range(3):
        h = relu(dot(h, params["ws"][l]) + params["bs"][l + 1])
    outs = []
    for d in range(num_domains):
        t = h
        for l in range(3):
            t = relu(dot(t, params["whead"][d, l]) + params["bhead"][d, l])
        outs.append(dot(t, params["wout"][d]) + params["bout"][d])
    out = jnp.stack(outs, axis=1)                    # (B, num_domains, style)
    return out[jnp.arange(z.shape[0]), y]            # (B, style)


if __name__ == "__main__":
    key = jax.random.PRNGKey(0)
    kz, ky, kp = jax.random.split(key, 3)

    B = 8
    z = jax.random.normal(kz, (B, LATENT_DIM), jnp.float32)
    y = jax.random.randint(ky, (B,), 0, NUM_DOMAINS, jnp.int32)
    params = init_params(kp)

    s = jax.block_until_ready(mapping_network(z, y, params))
    s_ref = mapping_network_ref(z, y, params)

    assert s.shape == (B, STYLE_DIM)
    # tolerance loosened relative to the all-f32 version because weights are bf16
    assert jnp.allclose(s, s_ref, atol=2e-2, rtol=2e-2), "mismatch vs reference"
    print("KERNEL_OK")
</pallas_src>

<mosaic_0001>
module attributes {stable_mosaic.version = 11 : i64} {
  func.func @_mapping_kernel(%arg0: i32, %arg1: memref<8x16xf32, #tpu.memory_space<vmem>>, %arg2: memref<8x1xi32, #tpu.memory_space<vmem>>, %arg3: memref<16x512xbf16, #tpu.memory_space<vmem>>, %arg4: memref<3x512x512xbf16, #tpu.memory_space<vmem>>, %arg5: memref<4x1x512xf32, #tpu.memory_space<vmem>>, %arg6: memref<1x3x512x512xbf16, #tpu.memory_space<vmem>>, %arg7: memref<1x3x1x512xf32, #tpu.memory_space<vmem>>, %arg8: memref<1x512x64xbf16, #tpu.memory_space<vmem>>, %arg9: memref<1x1x64xf32, #tpu.memory_space<vmem>>, %arg10: memref<8x64xf32, #tpu.memory_space<vmem>>, %arg11: memref<8x512xbf16, #tpu.memory_space<vmem>>) attributes {dimension_semantics = [#tpu.dimension_semantics<arbitrary>], iteration_bounds = array<i64: 2>, scalar_prefetch = 0 : i64, scratch_operands = 1 : i64, tpu.core_type = #tpu.core_type<tc>, window_params = [{pipeline_mode = #tpu.pipeline_mode<synchronous>, transform_indices = @transform_0, window_bounds = array<i64: 8, 16>}, {pipeline_mode = #tpu.pipeline_mode<synchronous>, transform_indices = @transform_1, window_bounds = array<i64: 8, 1>}, {pipeline_mode = #tpu.pipeline_mode<synchronous>, transform_indices = @transform_2, window_bounds = array<i64: 16, 512>}, {pipeline_mode = #tpu.pipeline_mode<synchronous>, transform_indices = @transform_3, window_bounds = array<i64: 3, 512, 512>}, {pipeline_mode = #tpu.pipeline_mode<synchronous>, transform_indices = @transform_4, window_bounds = array<i64: 4, 1, 512>}, {transform_indices = @transform_5, window_bounds = array<i64: 1, 3, 512, 512>}, {transform_indices = @transform_6, window_bounds = array<i64: 1, 3, 1, 512>}, {transform_indices = @transform_7, window_bounds = array<i64: 1, 512, 64>}, {transform_indices = @transform_8, window_bounds = array<i64: 1, 1, 64>}, {pipeline_mode = #tpu.pipeline_mode<synchronous>, transform_indices = @transform_9, window_bounds = array<i64: 8, 64>}]} {
    %c0_i32 = arith.constant 0 : i32
    %0 = arith.cmpi eq, %arg0, %c0_i32 : i32
    %1 = arith.extui %0 : i1 to i32
    %c0_i32_0 = arith.constant 0 : i32
    %2 = arith.cmpi ne, %1, %c0_i32_0 : i32
    scf.if %2 {
      %c0_42 = arith.constant 0 : index
      %c0_43 = arith.constant 0 : index
      %49 = vector.load %arg1[%c0_42, %c0_43] : memref<8x16xf32, #tpu.memory_space<vmem>>, vector<8x16xf32>
      %50 = arith.truncf %49 : vector<8x16xf32> to vector<8x16xbf16>
      %c0_44 = arith.constant 0 : index
      %c0_45 = arith.constant 0 : index
      %51 = vector.load %arg3[%c0_44, %c0_45] : memref<16x512xbf16, #tpu.memory_space<vmem>>, vector<16x512xbf16>
      %cst_46 = arith.constant dense<0.000000e+00> : vector<8x512xf32>
      %52 = tpu.matmul %50, %51, %cst_46 {dimension_numbers = #tpu.dot_dimension_numbers<[1], [0], [0], [1], [0, 0, 1, 1], [], []>} : vector<8x16xbf16>, vector<16x512xbf16>, vector<8x512xf32> -> vector<8x512xf32>
      %c0_47 = arith.constant 0 : index
      %c0_48 = arith.constant 0 : index
      %c0_49 = arith.constant 0 : index
      %53 = vector.load %arg5[%c0_47, %c0_48, %c0_49] : memref<4x1x512xf32, #tpu.memory_space<vmem>>, vector<1x1x512xf32>
      %54 = vector.shape_cast %53 : vector<1x1x512xf32> to vector<1x512xf32>
      %55 = vector.broadcast %54 : vector<1x512xf32> to vector<8x512xf32>
      %56 = arith.addf %52, %55 : vector<8x512xf32>
      %cst_50 = arith.constant 0.000000e+00 : f32
      %57 = vector.broadcast %cst_50 : f32 to vector<8x512xf32>
      %58 = arith.maximumf %56, %57 : vector<8x512xf32>
      %59 = arith.truncf %58 : vector<8x512xf32> to vector<8x512xbf16>
      %c0_51 = arith.constant 0 : index
      %c0_52 = arith.constant 0 : index
      %c0_53 = arith.constant 0 : index
      %60 = vector.load %arg4[%c0_51, %c0_52, %c0_53] : memref<3x512x512xbf16, #tpu.memory_space<vmem>>, vector<1x512x512xbf16>
      %61 = vector.shape_cast %60 : vector<1x512x512xbf16> to vector<512x512xbf16>
      %cst_54 = arith.constant dense<0.000000e+00> : vector<8x512xf32>
      %62 = tpu.matmul %59, %61, %cst_54 {dimension_numbers = #tpu.dot_dimension_numbers<[1], [0], [0], [1], [0, 0, 1, 1], [], []>} : vector<8x512xbf16>, vector<512x512xbf16>, vector<8x512xf32> -> vector<8x512xf32>
      %c1_55 = arith.constant 1 : index
      %c0_56 = arith.constant 0 : index
      %c0_57 = arith.constant 0 : index
      %63 = vector.load %arg5[%c1_55, %c0_56, %c0_57] : memref<4x1x512xf32, #tpu.memory_space<vmem>>, vector<1x1x512xf32>
      %64 = vector.shape_cast %63 : vector<1x1x512xf32> to vector<1x512xf32>
      %65 = vector.broadcast %64 : vector<1x512xf32> to vector<8x512xf32>
      %66 = arith.addf %62, %65 : vector<8x512xf32>
      %cst_58 = arith.constant 0.000000e+00 : f32
      %67 = vector.broadcast %cst_58 : f32 to vector<8x512xf32>
      %68 = arith.maximumf %66, %67 : vector<8x512xf32>
      %69 = arith.truncf %68 : vector<8x512xf32> to vector<8x512xbf16>
      %c1_59 = arith.constant 1 : index
      %c0_60 = arith.constant 0 : index
      %c0_61 = arith.constant 0 : index
      %70 = vector.load %arg4[%c1_59, %c0_60, %c0_61] : memref<3x512x512xbf16, #tpu.memory_space<vmem>>, vector<1x512x512xbf16>
      %71 = vector.shape_cast %70 : vector<1x512x512xbf16> to vector<512x512xbf16>
      %cst_62 = arith.constant dense<0.000000e+00> : vector<8x512xf32>
      %72 = tpu.matmul %69, %71, %cst_62 {dimension_numbers = #tpu.dot_dimension_numbers<[1], [0], [0], [1], [0, 0, 1, 1], [], []>} : vector<8x512xbf16>, vector<512x512xbf16>, vector<8x512xf32> -> vector<8x512xf32>
      %c2_63 = arith.constant 2 : index
      %c0_64 = arith.constant 0 : index
      %c0_65 = arith.constant 0 : index
      %73 = vector.load %arg5[%c2_63, %c0_64, %c0_65] : memref<4x1x512xf32, #tpu.memory_space<vmem>>, vector<1x1x512xf32>
      %74 = vector.shape_cast %73 : vector<1x1x512xf32> to vector<1x512xf32>
      %75 = vector.broadcast %74 : vector<1x512xf32> to vector<8x512xf32>
      %76 = arith.addf %72, %75 : vector<8x512xf32>
      %cst_66 = arith.constant 0.000000e+00 : f32
      %77 = vector.broadcast %cst_66 : f32 to vector<8x512xf32>
      %78 = arith.maximumf %76, %77 : vector<8x512xf32>
      %79 = arith.truncf %78 : vector<8x512xf32> to vector<8x512xbf16>
      %c2_67 = arith.constant 2 : index
      %c0_68 = arith.constant 0 : index
      %c0_69 = arith.constant 0 : index
      %80 = vector.load %arg4[%c2_67, %c0_68, %c0_69] : memref<3x512x512xbf16, #tpu.memory_space<vmem>>, vector<1x512x512xbf16>
      %81 = vector.shape_cast %80 : vector<1x512x512xbf16> to vector<512x512xbf16>
      %cst_70 = arith.constant dense<0.000000e+00> : vector<8x512xf32>
      %82 = tpu.matmul %79, %81, %cst_70 {dimension_numbers = #tpu.dot_dimension_numbers<[1], [0], [0], [1], [0, 0, 1, 1], [], []>} : vector<8x512xbf16>, vector<512x512xbf16>, vector<8x512xf32> -> vector<8x512xf32>
      %c3 = arith.constant 3 : index
      %c0_71 = arith.constant 0 : index
      %c0_72 = arith.constant 0 : index
      %83 = vector.load %arg5[%c3, %c0_71, %c0_72] : memref<4x1x512xf32, #tpu.memory_space<vmem>>, vector<1x1x512xf32>
      %84 = vector.shape_cast %83 : vector<1x1x512xf32> to vector<1x512xf32>
      %85 = vector.broadcast %84 : vector<1x512xf32> to vector<8x512xf32>
      %86 = arith.addf %82, %85 : vector<8x512xf32>
      %cst_73 = arith.constant 0.000000e+00 : f32
      %87 = vector.broadcast %cst_73 : f32 to vector<8x512xf32>
      %88 = arith.maximumf %86, %87 : vector<8x512xf32>
      %89 = arith.truncf %88 : vector<8x512xf32> to vector<8x512xbf16>
      %c0_74 = arith.constant 0 : index
      %c0_75 = arith.constant 0 : index
      %90 = vector.load %arg11[%c0_74, %c0_75] : memref<8x512xbf16, #tpu.memory_space<vmem>>, vector<8x512xbf16>
      tpu.vector_store %arg11[%c0_74, %c0_75], %89 {strides = array<i32>} : memref<8x512xbf16, #tpu.memory_space<vmem>>, vector<8x512xbf16>,
      %cst_76 = arith.constant 0.000000e+00 : f32
      %91 = vector.broadcast %cst_76 : f32 to vector<8x64xf32>
      %c0_77 = arith.constant 0 : index
      %c0_78 = arith.constant 0 : index
      %92 = vector.load %arg10[%c0_77, %c0_78] : memref<8x64xf32, #tpu.memory_space<vmem>>, vector<8x64xf32>
      tpu.vector_store %arg10[%c0_77, %c0_78], %91 {strides = array<i32>} : memref<8x64xf32, #tpu.memory_space<vmem>>, vector<8x64xf32>,
    } else {
    }
    %c0 = arith.constant 0 : index
    %c0_1 = arith.constant 0 : index
    %3 = vector.load %arg11[%c0, %c0_1] : memref<8x512xbf16, #tpu.memory_space<vmem>>, vector<8x512xbf16>
    %c0_2 = arith.constant 0 : index
    %c0_3 = arith.constant 0 : index
    %c0_4 = arith.constant 0 : index
    %c0_5 = arith.constant 0 : index
    %4 = vector.load %arg6[%c0_2, %c0_3, %c0_4, %c0_5] : memref<1x3x512x512xbf16, #tpu.memory_space<vmem>>, vector<1x1x512x512xbf16>
    %5 = vector.shape_cast %4 : vector<1x1x512x512xbf16> to vector<512x512xbf16>
    %cst = arith.constant dense<0.000000e+00> : vector<8x512xf32>
    %6 = tpu.matmul %3, %5, %cst {dimension_numbers = #tpu.dot_dimension_numbers<[1], [0], [0], [1], [0, 0, 1, 1], [], []>} : vector<8x512xbf16>, vector<512x512xbf16>, vector<8x512xf32> -> vector<8x512xf32>
    %c0_6 = arith.constant 0 : index
    %c0_7 = arith.constant 0 : index
    %c0_8 = arith.constant 0 : index
    %c0_9 = arith.constant 0 : index
    %7 = vector.load %arg7[%c0_6, %c0_7, %c0_8, %c0_9] : memref<1x3x1x512xf32, #tpu.memory_space<vmem>>, vector<1x1x1x512xf32>
    %8 = vector.shape_cast %7 : vector<1x1x1x512xf32> to vector<1x512xf32>
    %9 = vector.broadcast %8 : vector<1x512xf32> to vector<8x512xf32>
    %10 = arith.addf %6, %9 : vector<8x512xf32>
    %cst_10 = arith.constant 0.000000e+00 : f32
    %11 = vector.broadcast %cst_10 : f32 to vector<8x512xf32>
    %12 = arith.maximumf %10, %11 : vector<8x512xf32>
    %13 = arith.truncf %12 : vector<8x512xf32> to vector<8x512xbf16>
    %c0_11 = arith.constant 0 : index
    %c1 = arith.constant 1 : index
    %c0_12 = arith.constant 0 : index
    %c0_13 = arith.constant 0 : index
    %14 = vector.load %arg6[%c0_11, %c1, %c0_12, %c0_13] : memref<1x3x512x512xbf16, #tpu.memory_space<vmem>>, vector<1x1x512x512xbf16>
    %15 = vector.shape_cast %14 : vector<1x1x512x512xbf16> to vector<512x512xbf16>
    %cst_14 = arith.constant dense<0.000000e+00> : vector<8x512xf32>
    %16 = tpu.matmul %13, %15, %cst_14 {dimension_numbers = #tpu.dot_dimension_numbers<[1], [0], [0], [1], [0, 0, 1, 1], [], []>} : vector<8x512xbf16>, vector<512x512xbf16>, vector<8x512xf32> -> vector<8x512xf32>
    %c0_15 = arith.constant 0 : index
    %c1_16 = arith.constant 1 : index
    %c0_17 = arith.constant 0 : index
    %c0_18 = arith.constant 0 : index
    %17 = vector.load %arg7[%c0_15, %c1_16, %c0_17, %c0_18] : memref<1x3x1x512xf32, #tpu.memory_space<vmem>>, vector<1x1x1x512xf32>
    %18 = vector.shape_cast %17 : vector<1x1x1x512xf32> to vector<1x512xf32>
    %19 = vector.broadcast %18 : vector<1x512xf32> to vector<8x512xf32>
    %20 = arith.addf %16, %19 : vector<8x512xf32>
    %cst_19 = arith.constant 0.000000e+00 : f32
    %21 = vector.broadcast %cst_19 : f32 to vector<8x512xf32>
    %22 = arith.maximumf %20, %21 : vector<8x512xf32>
    %23 = arith.truncf %22 : vector<8x512xf32> to vector<8x512xbf16>
    %c0_20 = arith.constant 0 : index
    %c2 = arith.constant 2 : index
    %c0_21 = arith.constant 0 : index
    %c0_22 = arith.constant 0 : index
    %24 = vector.load %arg6[%c0_20, %c2, %c0_21, %c0_22] : memref<1x3x512x512xbf16, #tpu.memory_space<vmem>>, vector<1x1x512x512xbf16>
    %25 = vector.shape_cast %24 : vector<1x1x512x512xbf16> to vector<512x512xbf16>
    %cst_23 = arith.constant dense<0.000000e+00> : vector<8x512xf32>
    %26 = tpu.matmul %23, %25, %cst_23 {dimension_numbers = #tpu.dot_dimension_numbers<[1], [0], [0], [1], [0, 0, 1, 1], [], []>} : vector<8x512xbf16>, vector<512x512xbf16>, vector<8x512xf32> -> vector<8x512xf32>
    %c0_24 = arith.constant 0 : index
    %c2_25 = arith.constant 2 : index
    %c0_26 = arith.constant 0 : index
    %c0_27 = arith.constant 0 : index
    %27 = vector.load %arg7[%c0_24, %c2_25, %c0_26, %c0_27] : memref<1x3x1x512xf32, #tpu.memory_space<vmem>>, vector<1x1x1x512xf32>
    %28 = vector.shape_cast %27 : vector<1x1x1x512xf32> to vector<1x512xf32>
    %29 = vector.broadcast %28 : vector<1x512xf32> to vector<8x512xf32>
    %30 = arith.addf %26, %29 : vector<8x512xf32>
    %cst_28 = arith.constant 0.000000e+00 : f32
    %31 = vector.broadcast %cst_28 : f32 to vector<8x512xf32>
    %32 = arith.maximumf %30, %31 : vector<8x512xf32>
    %33 = arith.truncf %32 : vector<8x512xf32> to vector<8x512xbf16>
    %c0_29 = arith.constant 0 : index
    %c0_30 = arith.constant 0 : index
    %c0_31 = arith.constant 0 : index
    %34 = vector.load %arg8[%c0_29, %c0_30, %c0_31] : memref<1x512x64xbf16, #tpu.memory_space<vmem>>, vector<1x512x64xbf16>
    %35 = vector.shape_cast %34 : vector<1x512x64xbf16> to vector<512x64xbf16>
    %cst_32 = arith.constant dense<0.000000e+00> : vector<8x64xf32>
    %36 = tpu.matmul %33, %35, %cst_32 {dimension_numbers = #tpu.dot_dimension_numbers<[1], [0], [0], [1], [0, 0, 1, 1], [], []>} : vector<8x512xbf16>, vector<512x64xbf16>, vector<8x64xf32> -> vector<8x64xf32>
    %c0_33 = arith.constant 0 : index
    %c0_34 = arith.constant 0 : index
    %c0_35 = arith.constant 0 : index
    %37 = vector.load %arg9[%c0_33, %c0_34, %c0_35] : memref<1x1x64xf32, #tpu.memory_space<vmem>>, vector<1x1x64xf32>
    %38 = vector.shape_cast %37 : vector<1x1x64xf32> to vector<1x64xf32>
    %39 = vector.broadcast %38 : vector<1x64xf32> to vector<8x64xf32>
    %40 = arith.addf %36, %39 : vector<8x64xf32>
    %c0_36 = arith.constant 0 : index
    %c0_37 = arith.constant 0 : index
    %41 = vector.load %arg2[%c0_36, %c0_37] : memref<8x1xi32, #tpu.memory_space<vmem>>, vector<8x1xi32>
    %42 = vector.broadcast %arg0 : i32 to vector<8x1xi32>
    %43 = arith.cmpi eq, %41, %42 : vector<8x1xi32>
    %c0_38 = arith.constant 0 : index
    %c0_39 = arith.constant 0 : index
    %44 = vector.load %arg10[%c0_38, %c0_39] : memref<8x64xf32, #tpu.memory_space<vmem>>, vector<8x64xf32>
    %45 = vector.shape_cast %43 : vector<8x1xi1> to vector<8x1xi1>
    %46 = vector.broadcast %45 : vector<8x1xi1> to vector<8x64xi1>
    %47 = arith.select %46, %40, %44 : vector<8x64xi1>, vector<8x64xf32>
    %c0_40 = arith.constant 0 : index
    %c0_41 = arith.constant 0 : index
    %48 = vector.load %arg10[%c0_40, %c0_41] : memref<8x64xf32, #tpu.memory_space<vmem>>, vector<8x64xf32>
    tpu.vector_store %arg10[%c0_40, %c0_41], %47 {strides = array<i32>} : memref<8x64xf32, #tpu.memory_space<vmem>>, vector<8x64xf32>,
    return
  }
  func.func @transform_0(%arg0: i32) -> (i32, i32) {
    %c0_i32 = arith.constant 0 : i32
    %c0_i32_0 = arith.constant 0 : i32
    %c0_i32_1 = arith.constant 0 : i32
    return %c0_i32, %c0_i32_0 : i32, i32
  }
  func.func @transform_1(%arg0: i32) -> (i32, i32) {
    %c0_i32 = arith.constant 0 : i32
    %c0_i32_0 = arith.constant 0 : i32
    %c0_i32_1 = arith.constant 0 : i32
    return %c0_i32, %c0_i32_0 : i32, i32
  }
  func.func @transform_2(%arg0: i32) -> (i32, i32) {
    %c0_i32 = arith.constant 0 : i32
    %c0_i32_0 = arith.constant 0 : i32
    %c0_i32_1 = arith.constant 0 : i32
    return %c0_i32, %c0_i32_0 : i32, i32
  }
  func.func @transform_3(%arg0: i32) -> (i32, i32, i32) {
    %c0_i32 = arith.constant 0 : i32
    %c0_i32_0 = arith.constant 0 : i32
    %c0_i32_1 = arith.constant 0 : i32
    %c0_i32_2 = arith.constant 0 : i32
    return %c0_i32, %c0_i32_0, %c0_i32_1 : i32, i32, i32
  }
  func.func @transform_4(%arg0: i32) -> (i32, i32, i32) {
    %c0_i32 = arith.constant 0 : i32
    %c0_i32_0 = arith.constant 0 : i32
    %c0_i32_1 = arith.constant 0 : i32
    %c0_i32_2 = arith.constant 0 : i32
    return %c0_i32, %c0_i32_0, %c0_i32_1 : i32, i32, i32
  }
  func.func @transform_5(%arg0: i32) -> (i32, i32, i32, i32) {
    %c0_i32 = arith.constant 0 : i32
    %c0_i32_0 = arith.constant 0 : i32
    %c0_i32_1 = arith.constant 0 : i32
    %c0_i32_2 = arith.constant 0 : i32
    return %arg0, %c0_i32, %c0_i32_0, %c0_i32_1 : i32, i32, i32, i32
  }
  func.func @transform_6(%arg0: i32) -> (i32, i32, i32, i32) {
    %c0_i32 = arith.constant 0 : i32
    %c0_i32_0 = arith.constant 0 : i32
    %c0_i32_1 = arith.constant 0 : i32
    %c0_i32_2 = arith.constant 0 : i32
    return %arg0, %c0_i32, %c0_i32_0, %c0_i32_1 : i32, i32, i32, i32
  }
  func.func @transform_7(%arg0: i32) -> (i32, i32, i32) {
    %c0_i32 = arith.constant 0 : i32
    %c0_i32_0 = arith.constant 0 : i32
    %c0_i32_1 = arith.constant 0 : i32
    return %arg0, %c0_i32, %c0_i32_0 : i32, i32, i32
  }
  func.func @transform_8(%arg0: i32) -> (i32, i32, i32) {
    %c0_i32 = arith.constant 0 : i32
    %c0_i32_0 = arith.constant 0 : i32
    %c0_i32_1 = arith.constant 0 : i32
    return %arg0, %c0_i32, %c0_i32_0 : i32, i32, i32
  }
  func.func @transform_9(%arg0: i32) -> (i32, i32) {
    %c0_i32 = arith.constant 0 : i32
    %c0_i32_0 = arith.constant 0 : i32
    %c0_i32_1 = arith.constant 0 : i32
    return %c0_i32, %c0_i32_0 : i32, i32
  }
}

</mosaic_0001>

<bundles_post_ra>
// kernel: tpu_custom_call.1
= control target key start
LH: loop header
LB: loop body
LE: loop exit
PB: predicated region body
PF: predicated region fallthrough
CT: control target
= control target key end

     0   :  { %s10680_s0 = inlined_call_operand.hbm [shape: f32[8,16], index: 0, kind: input, shape index: {}]   ;;  %s10681_s1 = inlined_call_operand.vmem [shape: s32[8,1], index: 1, kind: input, shape index: {}]   ;;  %s10682_s2 = inlined_call_operand.hbm [shape: bf16[16,512], index: 2, kind: input, shape index: {}]   ;;  %s10683_s3 = inlined_call_operand.hbm [shape: bf16[3,512,512], index: 3, kind: input, shape index: {}]   ;;  %s10684_s4 = inlined_call_operand.hbm [shape: f32[4,1,512], index: 4, kind: input, shape index: {}]   ;;  %s10685_s5 = inlined_call_operand.hbm [shape: bf16[2,3,512,512], index: 5, kind: input, shape index: {}]   ;;  %s10686_s6 = inlined_call_operand.hbm [shape: f32[2,3,1,512], index: 6, kind: input, shape index: {}]   ;;  %s10687_s7 = inlined_call_operand.vmem [shape: bf16[2,512,64], index: 7, kind: input, shape index: {}]   ;;  %s10688_s8 = inlined_call_operand.hbm [shape: f32[2,1,64], index: 8, kind: input, shape index: {}]   ;;  %s10689_s9 = inlined_call_operand.hbm [shape: f32[8,64], index: 9, kind: output, shape index: {}]  }
   0x1   :  { %10707 = sst [smem:[#allocation23_spill]] %s10680_s0 }
   0x2   :  { %10708 = sst [smem:[#allocation24_spill]] %s10681_s1 }
   0x3   :  { %10709 = sst [smem:[#allocation25_spill]] %s10682_s2 }
   0x4   :  { %10710 = sst [smem:[#allocation26_spill]] %s10685_s5 }
   0x5   :  { %10711 = sst [smem:[#allocation27_spill]] %s10686_s6 }
   0x6   :  { %10712 = sst [smem:[#allocation28_spill]] %s10689_s9 }
   0x7   :  { %14 = vsyncpa [#allocation4], 0 }
   0x8   :  { %15 = vsyncpa [#allocation7], 0 }
   0x9   :  { %16 = vsyncpa [#allocation10], 0 }
   0xa   :  { %17 = vsyncpa [#allocation5], 0  ;;  %s9802_s30 = smov 0   ;;  %s9804_s10 = smov 0  }
   0xb   :  { %s9806_s11 = smov 0   ;;  %s9808_s12 = smov 0  }
   0xc LB: > { %10713 = sst [smem:[#allocation20_spill]] %s9731_s11  ;;  %s9821_s13 = sadd.s32 4294967295, %s9735_s12   ;;  %s9735_s12 = sphi %s9808_s12, %s10748_s12   ;;  %s9731_s11 = sphi %s9806_s11, %s10750_s11   ;;  %s9727_s10 = sphi %s9804_s10, %s10752_s10   ;;  %s9723_s30 = sphi %s9802_s30, %s10751_s30  }
   0xd   : > { %p148_p0 = scmp.ne.s32.totalorder %s9727_s10, %s9723_s30  ;;  %p10690_p1 = scmp.eq.s32.totalorder %s9821_s13, 0 }
   0xe   : > { %p6941_p2 = scmp.ge.s32.totalorder %s9735_s12, 1  ;;  %p258_p3 = scmp.lt.s32.totalorder %s9735_s12, 3 }
   0xf   : > { %p9830_p5 = por %p10690_p1, %p148_p0  ;;  %s9737_s16 = smov [#allocation3]  }
  0x10   : > { %p9834_p6 = pnand %p6941_p2, %p258_p3  ;;  %s271_s17 = sshll.u32 %s9737_s16, 4  ;;  %s272_s17 = int_to_ptr.vmem [resolvable:$true] %s271_s17 }
  0x11   : > { %s10714_s14 = scalar_select %p9830_p5, 1, 0 }
  0x12   : > { %s10715_s15 = scalar_select %p9834_p6, 1, 0 }
  0x13   : > { %p8184_p7 = pneg %p9834_p6  ;;  %s9841_s18 = sadd.s32 1, %s9735_s12  }
  0x14   : > { %10716 = sst [smem:[#allocation21_spill]] %s9841_s18  ;;  %s132_s20 = ssub.s32 %s9735_s12, %s9841_s18 }
  0x15   : > { %p9845_p8 = pnand %p8184_p7, %p10690_p1  ;;  %p9851_p9 = scmp.eq.s32.totalorder %s132_s20, 0 }
  0x16   : > { %s135_s22 = sadd.s32 1, %s9731_s11  ;;  %s10719_s0 = sld [smem:[#allocation23_spill]] }
  0x17   : > { %s10717_s19 = scalar_select %p9845_p8, 1, 0 }
  0x18   : > { %s10718_s21 = scalar_select %p9851_p9, 1, 0 }
  0x19   : > { %p9866_p12 = pneg %p9845_p8 }
  0x1b   : > { %s10720_s28 = scalar_select %p9866_p12, 1, 0 }
  0x1c   : > { %s9457_s25 = scalar_lea.hbm %s10719_s0, 128 }
  0x1d   : > { %p9458_p11 = scmp.ne.s32.totalorder %s10719_s0, %s9457_s25  ;;  %p9464_p2 = scmp.lt.u32.totalorder %s9457_s25, %s10719_s0 }
  0x1f   : > { %p9460_p13 = pnand %p9866_p12, %p9458_p11 }
  0x21   : > { %p9461_p0 = pneg %p9460_p13 }
  0x23   : > { %p9466_p3 = pnand %p9464_p2, %p9461_p0 }
  0x25   : > { %9469 = shalt.err (!%p9466_p3)
}
  0x26   : > { %s9470_s16 = scalar_lea.vmem %s272_s17, 128  ;;  %p9478_p10 = scmp.lt.s32.totalorder %s272_s17, %s272_s17 }
  0x27   : > { %p9471_p7 = scmp.ne.s32.totalorder %s272_s17, %s9470_s16  ;;  %p9479_p5 = scmp.lt.s32.totalorder %s9470_s16, %s9470_s16 }
  0x29   : > { %p9473_p4 = pnand %p9471_p7, %p9866_p12  ;;  %p9480_p6 = por %p9479_p5, %p9478_p10 }
  0x2b   : > { %p9474_p1 = pneg %p9473_p4 }
  0x2d   : > { %p9481_p9 = pnand %p9480_p6, %p9474_p1 }
  0x2f   : > { %9484 = shalt.err (!%p9481_p9)
}
  0x30   : > { %8187 = dma.hbm_to_vmem [thread:$0]  (!%p9845_p8), %s10719_s0, 128, %s272_s17, [#allocation4]  }
  0x31   : > { %p10721_p4 = scmp.ne.s32.totalorder %s10718_s21, 0  ;;  %p143_p1 = scmp.eq.s32.totalorder %s9735_s12, 0 }
  0x32   : > { %p8211_p5 = scmp.lt.s32.totalorder %s9735_s12, 2  ;;  %p10723_p6 = scmp.ne.s32.totalorder %s9731_s11, %s9727_s10 }
  0x33   : > { %s9885_s24 = scalar_select %p10721_p4, %s9731_s11, %s135_s22  }
  0x34   : > { %p144_p9 = por %p143_p1, %p10723_p6  ;;  %s324_s25 = sand.u32 1, %s9735_s12  }
  0x35   : > { %10722 = sst [smem:[#allocation22_spill]] %s9885_s24  ;;  %s9894_s26 = sand.u32 1, %s9731_s11  }
  0x36   : > { %s8152_s27 = smul.u32 3072, %s9894_s26  ;;  %p9897_p10 = pnand %p8211_p5, %p144_p9 }
  0x37   : > { %s8153_s30 = smul.u32 49152, %s9735_s12  ;;  %s10725_s5 = sld [smem:[#allocation26_spill]] }
  0x38   : > { %s10724_s29 = scalar_select %p9897_p10, 1, 0 }
  0x39   : > { %s328_s22 = scalar_lea.vmem [#allocation11], %s8152_s27  ;;  %s9738_s23 = smov [#allocation6]  }
  0x3a   : > { %s335_s20 = sshll.u32 %s328_s22, 4  ;;  %s9909_s0 = sshll.u32 %s9738_s23, 4  ;;  %s9907_s20 = int_to_ptr.vmem [resolvable:$true] %s335_s20  ;;  %s285_s0 = int_to_ptr.vmem [resolvable:$true] %s9909_s0 }
  0x3b   : > { %s9911_s24 = scalar_lea.sflag [#allocation4], %s324_s25  ;;  %p9917_p13 = pneg %p9897_p10 }
  0x3d   : > { %s9905_s21 = scalar_lea.hbm %s10725_s5, %s8153_s30  ;;  %s9490_s17 = scalar_lea.hbm %s10725_s5, 98304 }
  0x3e   : > { %s9485_s11 = scalar_lea.hbm %s9905_s21, 49152  ;;  %p9491_p3 = scmp.lt.u32.totalorder %s9905_s21, %s10725_s5 }
  0x3f   : > { %p9486_p11 = scmp.ne.s32.totalorder %s9905_s21, %s9485_s11  ;;  %p9492_p7 = scmp.lt.u32.totalorder %s9490_s17, %s9485_s11 }
  0x40   : > { %s10726_s16 = scalar_select %p9917_p13, 1, 0 }
  0x41   : > { %p9488_p0 = pnand %p9917_p13, %p9486_p11  ;;  %p9493_p4 = por %p9492_p7, %p9491_p3 }
  0x42   : > { %p9494_p1 = scmp.lt.u32.totalorder %s9485_s11, %s9905_s21 }
  0x43   : > { %p9489_p2 = pneg %p9488_p0 }
  0x44   : > { %p9495_p5 = por %p9494_p1, %p9493_p4 }
  0x46   : > { %p9496_p6 = pnand %p9495_p5, %p9489_p2 }
  0x48   : > { %9499 = shalt.err (!%p9496_p6)
}
  0x49   : > { %s9500_s25 = scalar_lea.vmem %s9907_s20, 49152  ;;  %s9739_s27 = smov [#allocation11]  }
  0x4a   : > { %p9501_p9 = scmp.ne.s32.totalorder %s9907_s20, %s9500_s25  ;;  %s9505_s30 = sshll.u32 %s9739_s27, 4  ;;  %s9506_s30 = int_to_ptr.vmem [resolvable:$false] %s9505_s30 }
  0x4b   : > { %s9507_s22 = scalar_lea.vmem %s9506_s30, 98304  ;;  %p9508_p8 = scmp.lt.s32.totalorder %s9907_s20, %s9506_s30 }
  0x4c   : > { %p9503_p11 = pnand %p9501_p9, %p9917_p13  ;;  %p9509_p12 = scmp.lt.s32.totalorder %s9507_s22, %s9500_s25 }
  0x4e   : > { %p9504_p0 = pneg %p9503_p11  ;;  %p9510_p3 = por %p9509_p12, %p9508_p8 }
  0x50   : > { %p9511_p7 = pnand %p9510_p3, %p9504_p0 }
  0x52   : > { %9514 = shalt.err (!%p9511_p7)
}
  0x53   : > { %s9740_s11 = smov 256   ;;  %s9741_s17 = smov 16  }
  0x54   : > { %8200 = dma.hbm_to_vmem [thread:$0]  (!%p9897_p10), %s9905_s21, 49152, %s9907_s20, %s9911_s24, %s9740_s11, %s9740_s11, %s9741_s17  }
  0x55   : > { %s10727_s2 = sld [smem:[#allocation25_spill]]  ;;  %p10728_p12 = scmp.ne.s32.totalorder %s10720_s28, 0 }
  0x5b   : > { %s9515_s25 = scalar_lea.hbm %s10727_s2, 512 }
  0x5c   : > { %p9516_p8 = scmp.ne.s32.totalorder %s10727_s2, %s9515_s25  ;;  %p9522_p1 = scmp.lt.u32.totalorder %s9515_s25, %s10727_s2 }
  0x5e   : > { %p9518_p2 = pnand %p9516_p8, %p10728_p12 }
  0x60   : > { %p9519_p4 = pneg %p9518_p2 }
  0x62   : > { %p9524_p5 = pnand %p9522_p1, %p9519_p4 }
  0x64   : > { %9527 = shalt.err (!%p9524_p5)
}
  0x65   : > { %s9528_s9 = scalar_lea.vmem %s285_s0, 512  ;;  %p9536_p0 = scmp.lt.s32.totalorder %s285_s0, %s285_s0 }
  0x66   : > { %p9529_p6 = scmp.ne.s32.totalorder %s285_s0, %s9528_s9  ;;  %p9537_p3 = scmp.lt.s32.totalorder %s9528_s9, %s9528_s9 }
  0x68   : > { %p9531_p9 = pnand %p9529_p6, %p10728_p12  ;;  %p9538_p7 = por %p9537_p3, %p9536_p0 }
  0x6a   : > { %p9532_p11 = pneg %p9531_p9 }
  0x6c   : > { %p9539_p10 = pnand %p9538_p7, %p9532_p11 }
  0x6e   : > { %9542 = shalt.err (!%p9539_p10)
}
  0x6f   : > { %p10729_p8 = scmp.ne.s32.totalorder %s10717_s19, 0  ;;  %s8154_s21 = smul.u32 12, %s9894_s26 }
  0x70   : > { %s8155_s20 = smul.u32 192, %s9735_s12  ;;  %s9742_s23 = smov [#allocation8]  }
  0x71   : > { %8190 = dma.hbm_to_vmem [thread:$0]  (!%p10729_p8), %s10727_s2, 512, %s285_s0, [#allocation7], %s9740_s11, %s9740_s11, %s9741_s17  }
  0x72   : > { %s297_s27 = sshll.u32 %s9742_s23, 4  ;;  %s10730_s6 = sld [smem:[#allocation27_spill]]  ;;  %s9975_s27 = int_to_ptr.vmem [resolvable:$true] %s297_s27 }
  0x73   : > { %s349_s22 = scalar_lea.vmem [#allocation12], %s8154_s21 }
  0x74   : > { %s356_s1 = sshll.u32 %s349_s22, 4  ;;  %s9973_s1 = int_to_ptr.vmem [resolvable:$true] %s356_s1 }
  0x78   : > { %s9971_s30 = scalar_lea.hbm %s10730_s6, %s8155_s20  ;;  %s9548_s20 = scalar_lea.hbm %s10730_s6, 384 }
  0x79   : > { %s9543_s0 = scalar_lea.hbm %s9971_s30, 192  ;;  %p9549_p1 = scmp.lt.u32.totalorder %s9971_s30, %s10730_s6 }
  0x7a   : > { %p9544_p10 = scmp.ne.s32.totalorder %s9971_s30, %s9543_s0  ;;  %p9550_p5 = scmp.lt.u32.totalorder %s9548_s20, %s9543_s0 }
  0x7b   : > { %p9552_p9 = scmp.lt.u32.totalorder %s9543_s0, %s9971_s30 }
  0x7c   : > { %p9546_p2 = pnand %p9544_p10, %p9917_p13  ;;  %p9551_p6 = por %p9550_p5, %p9549_p1 }
  0x7e   : > { %p9547_p4 = pneg %p9546_p2  ;;  %p9553_p11 = por %p9552_p9, %p9551_p6 }
  0x80   : > { %p9554_p0 = pnand %p9553_p11, %p9547_p4 }
  0x82   : > { %9557 = shalt.err (!%p9554_p0)
}
  0x83   : > { %s9558_s21 = scalar_lea.vmem %s9973_s1, 192  ;;  %s9743_s25 = smov [#allocation12]  }
  0x84   : > { %p9559_p3 = scmp.ne.s32.totalorder %s9973_s1, %s9558_s21  ;;  %s9563_s22 = sshll.u32 %s9743_s25, 4  ;;  %s9564_s22 = int_to_ptr.vmem [resolvable:$false] %s9563_s22 }
  0x85   : > { %s9565_s5 = scalar_lea.vmem %s9564_s22, 384  ;;  %p9566_p2 = scmp.lt.s32.totalorder %s9973_s1, %s9564_s22 }
  0x86   : > { %p9561_p7 = pnand %p9559_p3, %p9917_p13  ;;  %p9567_p8 = scmp.lt.s32.totalorder %s9565_s5, %s9558_s21 }
  0x88   : > { %p9562_p10 = pneg %p9561_p7  ;;  %p9568_p1 = por %p9567_p8, %p9566_p2 }
  0x8a   : > { %p9569_p5 = pnand %p9568_p1, %p9562_p10 }
  0x8c   : > { %9572 = shalt.err (!%p9569_p5)
}
  0x8d   : > { %s10703_s0 = smov 64   ;;  %s10704_s18 = smov 4  }
  0x8e   : > { %p10731_p4 = scmp.ne.s32.totalorder %s10724_s29, 0  ;;  %s9573_s9 = scalar_lea.hbm %s10683_s3, 49152 }
  0x8f   : > { %p9574_p8 = scmp.ne.s32.totalorder %s10683_s3, %s9573_s9  ;;  %p9580_p11 = scmp.lt.u32.totalorder %s9573_s9, %s10683_s3 }
  0x90   : > { %8203 = dma.hbm_to_vmem [thread:$0]  (!%p10731_p4), %s9971_s30, 192, %s9973_s1, %s9911_s24, %s10703_s0, %s10703_s0, %s10704_s18  }
  0x91   : > { %p9576_p6 = pnand %p9574_p8, %p10728_p12 }
  0x93   : > { %p9577_p9 = pneg %p9576_p6 }
  0x95   : > { %p9582_p0 = pnand %p9580_p11, %p9577_p9 }
  0x97   : > { %9585 = shalt.err (!%p9582_p0)
}
  0x98   : > { %s9586_s1 = scalar_lea.vmem %s9975_s27, 49152  ;;  %p9594_p2 = scmp.lt.s32.totalorder %s9975_s27, %s9975_s27 }
  0x99   : > { %p9587_p3 = scmp.ne.s32.totalorder %s9975_s27, %s9586_s1  ;;  %p9595_p1 = scmp.lt.s32.totalorder %s9586_s1, %s9586_s1 }
  0x9b   : > { %p9589_p7 = pnand %p9587_p3, %p10728_p12  ;;  %p9596_p5 = por %p9595_p1, %p9594_p2 }
  0x9d   : > { %p9590_p10 = pneg %p9589_p7 }
  0x9f   : > { %p9597_p8 = pnand %p9596_p5, %p9590_p10 }
  0xa1   : > { %9600 = shalt.err (!%p9597_p8)
}
  0xa2   : > { %p10732_p6 = scmp.ne.s32.totalorder %s10717_s19, 0  ;;  %s9746_s23 = smov [#allocation9]  }
  0xa3   : > { %s310_s9 = sshll.u32 %s9746_s23, 4  ;;  %s6949_s21 = sshll.u32 %s9735_s12, 4  ;;  %s311_s9 = int_to_ptr.vmem [resolvable:$true] %s310_s9 }
  0xa4   : > { %8193 = dma.hbm_to_vmem [thread:$0]  (!%p10732_p6), %s10683_s3, 49152, %s9975_s27, [#allocation7], %s9740_s11, %s9740_s11, %s9741_s17  }
  0xa5   : > { %s10032_s5 = scalar_lea.hbm %s10688_s8, %s6949_s21  ;;  %s9601_s18 = scalar_lea.hbm %s10684_s4, 256 }
  0xa6   : > { %p9602_p9 = scmp.ne.s32.totalorder %s10684_s4, %s9601_s18  ;;  %p9608_p3 = scmp.lt.u32.totalorder %s9601_s18, %s10684_s4 }
  0xa8   : > { %p9604_p11 = pnand %p9602_p9, %p10728_p12 }
  0xaa   : > { %p9605_p0 = pneg %p9604_p11 }
  0xac   : > { %p9610_p7 = pnand %p9608_p3, %p9605_p0 }
  0xae   : > { %9613 = shalt.err (!%p9610_p7)
}
  0xaf   : > { %s9614_s12 = scalar_lea.vmem %s311_s9, 256  ;;  %p9622_p5 = scmp.lt.s32.totalorder %s311_s9, %s311_s9 }
  0xb0   : > { %p9615_p10 = scmp.ne.s32.totalorder %s311_s9, %s9614_s12  ;;  %p9623_p8 = scmp.lt.s32.totalorder %s9614_s12, %s9614_s12 }
  0xb2   : > { %p9617_p2 = pnand %p9615_p10, %p10728_p12  ;;  %p9624_p4 = por %p9623_p8, %p9622_p5 }
  0xb4   : > { %p9618_p1 = pneg %p9617_p2 }
  0xb6   : > { %p9625_p13 = pnand %p9624_p4, %p9618_p1 }
  0xb8   : > { %9628 = shalt.err (!%p9625_p13)
}
  0xb9   : > { %s10733_s2 = smov 4   ;;  %s10734_s6 = smov 64  }
  0xba   : > { %8196 = dma.hbm_to_vmem [thread:$0]  (!%p10732_p6), %s10684_s4, 256, %s311_s9, [#allocation10], %s10734_s6, %s10734_s6, %s10733_s2  }
  0xbb   : > { %s377_s28 = scalar_lea.vmem [#allocation13], %s9894_s26  ;;  %s9629_s30 = scalar_lea.hbm %s10032_s5, 16 }
  0xbc   : > { %s384_s18 = sshll.u32 %s377_s28, 4  ;;  %p9630_p13 = scmp.ne.s32.totalorder %s10032_s5, %s9629_s30  ;;  %s385_s18 = int_to_ptr.vmem [resolvable:$true] %s384_s18 }
  0xbd   : > { %p10735_p12 = scmp.ne.s32.totalorder %s10726_s16, 0  ;;  %s9634_s23 = scalar_lea.hbm %s10688_s8, 32 }
  0xbe   : > { %p9635_p11 = scmp.lt.u32.totalorder %s10032_s5, %s10688_s8  ;;  %p9636_p0 = scmp.lt.u32.totalorder %s9634_s23, %s9629_s30 }
  0xbf   : > { %p9632_p4 = pnand %p9630_p13, %p10735_p12  ;;  %p9638_p7 = scmp.lt.u32.totalorder %s9629_s30, %s10032_s5 }
  0xc0   : > { %p9637_p3 = por %p9636_p0, %p9635_p11 }
  0xc1   : > { %p9633_p9 = pneg %p9632_p4 }
  0xc2   : > { %p9639_p6 = por %p9638_p7, %p9637_p3 }
  0xc4   : > { %p9640_p10 = pnand %p9639_p6, %p9633_p9 }
  0xc6   : > { %9643 = shalt.err (!%p9640_p10)
}
  0xc7   : > { %s9644_s26 = scalar_lea.vmem %s385_s18, 16  ;;  %s9747_s9 = smov [#allocation13]  }
  0xc8   : > { %p9645_p2 = scmp.ne.s32.totalorder %s385_s18, %s9644_s26  ;;  %s9649_s22 = sshll.u32 %s9747_s9, 4  ;;  %s9650_s22 = int_to_ptr.vmem [resolvable:$false] %s9649_s22 }
  0xc9   : > { %s9651_s1 = scalar_lea.vmem %s9650_s22, 32  ;;  %p9652_p8 = scmp.lt.s32.totalorder %s385_s18, %s9650_s22 }
  0xca   : > { %p9647_p1 = pnand %p9645_p2, %p10735_p12  ;;  %p9653_p13 = scmp.lt.s32.totalorder %s9651_s1, %s9644_s26 }
  0xcc   : > { %p9648_p5 = pneg %p9647_p1  ;;  %p9654_p4 = por %p9653_p13, %p9652_p8 }
  0xce   : > { %p9655_p0 = pnand %p9654_p4, %p9648_p5 }
  0xd0   : > { %9658 = shalt.err (!%p9655_p0)
}
  0xd1   : > { %p10736_p11 = scmp.ne.s32.totalorder %s10724_s29, 0  ;;  %p10737_p9 = scmp.ne.s32.totalorder %s10715_s15, 0 }
  0xd2   : > { %p10738_p12 = scmp.eq.s32.totalorder (!%p10737_p9), %s9821_s13, 0 }
  0xd3   : > { %8206 = dma.hbm_to_vmem [thread:$0]  (!%p10736_p11), %s10032_s5, 16, %s385_s18, %s9911_s24  }
  0xd4   : > { %393 = sbr.rel (%p10737_p9) target bundleno = 2471 (0x9a7), region = 56 }
  0xdb   : > { %9702 = dma.done.wait (%p10738_p12), [#allocation4], 128   ;;  %p10739_p3 = pmov %p10738_p12 }
  0xdd   : > { %9704 = vsyncadd (%p10739_p3), [#allocation4], 4294967168  ;;  %p10740_p7 = pmov %p10739_p3 }
  0xde   : > { %p10741_p6 = pmov %p10739_p3 }
  0xdf   : > { %9706 = dma.done.wait (%p10740_p7), [#allocation7], 49664  }
  0xe0   : > { %9708 = vsyncadd (%p10741_p6), [#allocation7], 4294917632  ;;  %p10742_p10 = pmov %p10739_p3 }
  0xe1   : > { %p10743_p2 = pmov %p10739_p3 }
  0xe2   : > { %9710 = dma.done.wait (%p10742_p10), [#allocation10], 256  }
  0xe3   : > { %9712 = vsyncadd (%p10743_p2), [#allocation10], 4294967040  ;;  %s411_s15 = sand.u32 1, %s9821_s13   ;;  %s10090_s24 = sand.u32 1, %s9727_s10  }
  0xe4   : > { %s8156_s29 = smul.u32 3072, %s10090_s24  ;;  %s412_s16 = scalar_lea.sflag [#allocation4], %s411_s15 }
  0xe5   : > { %p10744_p1 = scmp.ne.s32.totalorder %s10714_s14, 0 }
  0xe6   : > { %s10093_s5 = scalar_lea.vmem [#allocation11], %s8156_s29 }
  0xe7   : > { %9714 = dma.done.wait (%p10744_p1), %s412_s16, 49360  }
  0xe8   : > { %9716 = vsyncadd (%p10744_p1), %s412_s16, 4294917936  ;;  %s8157_s11 = smul.u32 12, %s10090_s24  ;;  %p476_p5 = scmp.lt.s32.totalorder %s9821_s13, 1 }
  0xe9   : > { %s432_s28 = scalar_lea.vmem [#allocation13], %s10090_s24  ;;  %p10745_p8 = scmp.ne.s32.totalorder %s9821_s13, 0 }
  0xea   : > { %s477_s17 = scalar_select %p476_p5, %s9821_s13, 1 }
  0xeb   : > { %s10107_s0 = scalar_lea.vmem [#allocation12], %s8157_s11  ;;  %485 = sbr.rel (%p10745_p8) target bundleno = 1313 (0x521), region = 88  ;;  %v8262_v0 = vld [vmem:[#allocation6 + $0x4] ss:$16 sps:$4 sm:$0xff] (!%p10745_p8)   ;;  %v8264_v1 = vld [vmem:[#allocation6] ss:$16 sps:$4 sm:$0xff] (!%p10745_p8)  }
  0xec   : > { %s8033_s12 = sshll.u32 %s477_s17, 8  ;;  %v9748_v2 = vmov (!%p10745_p8), 0   ;;  %v486_v3 = vld [vmem:[#allocation3] sm:$0xff] (!%p10745_p8)  ;;  %538 = vmatprep.subr.bf16.mxu0 (!%p10745_p8), %v8262_v0  ;;  %vm534_vm0 = vcmask (!%p10745_p8), 130048   ;;  %v8268_v7 = vld [vmem:[#allocation8] ss:$16 sps:$4 sm:$0xff] (!%p10745_p8)  }
  0xed   : > { %s10105_s27 = scalar_lea.vmem %s10687_s7, %s8033_s12  ;;  %570 = vmatprep.mubr.bf16.mxu0 (!%p10745_p8), %v9748_v2  ;;  %611 = vmatprep.mubr.bf16.mxu1 (!%p10745_p8), %v9748_v2  ;;  %v487_v4 = vpack.c.bf16 (!%p10745_p8), %v486_v3, %v486_v3  ;;  %v8265_v5 = vld [vmem:[#allocation6 + $0xc] ss:$16 sps:$4 sm:$0xff] (!%p10745_p8)   ;;  %v8267_v6 = vld [vmem:[#allocation6 + $0x8] ss:$16 sps:$4 sm:$0xff] (!%p10745_p8)   ;;  %v8270_v8 = vld [vmem:[#allocation8 + $0x4] ss:$16 sps:$4 sm:$0xff] (!%p10745_p8)  }
  0xee   : > { %539 = vmatpush1.bf16.msra.mxu0 (!%p10745_p8), %v8264_v1  ;;  %579 = vmatprep.subr.bf16.mxu1 (!%p10745_p8), %v8265_v5  ;;  %v8271_v9 = vld [vmem:[#allocation8 + $0x8] ss:$16 sps:$4 sm:$0xff] (!%p10745_p8)   ;;  %v8273_v10 = vld [vmem:[#allocation8 + $0xc] ss:$16 sps:$4 sm:$0xff] (!%p10745_p8)   ;;  %v8276_v11 = vld [vmem:[#allocation8 + $0x24] ss:$16 sps:$4 sm:$0xff] (!%p10745_p8)  }
  0xef   : > { %580 = vmatpush1.bf16.msra.mxu1 (!%p10745_p8), %v8267_v6  ;;  %1419 = vmatprep.subr.bf16.mxu0 (!%p10745_p8), %v8270_v8  ;;  %v8274_v12 = vld [vmem:[#allocation8 + $0x20] ss:$16 sps:$4 sm:$0xff] (!%p10745_p8)   ;;  %v8279_v13 = vld [vmem:[#allocation8 + $0x2c] ss:$16 sps:$4 sm:$0xff] (!%p10745_p8)   ;;  %v8277_v14 = vld [vmem:[#allocation8 + $0x28] ss:$16 sps:$4 sm:$0xff] (!%p10745_p8)  }
  0xf0   : > { %1501 = vmatprep.subr.bf16.mxu1 (!%p10745_p8), %v8273_v10  ;;  %v8282_v15 = vld [vmem:[#allocation8 + $0x44] ss:$16 sps:$4 sm:$0xff] (!%p10745_p8)   ;;  %v8285_v16 = vld [vmem:[#allocation8 + $0x4c] ss:$16 sps:$4 sm:$0xff] (!%p10745_p8)   ;;  %v8280_v17 = vld [vmem:[#allocation8 + $0x40] ss:$16 sps:$4 sm:$0xff] (!%p10745_p8)  }
  0xf1   : > { %6962 = vmatmul.mubr.msk.bf16.vlgmr.msra.gmra.mrb[0].mxu0 (!%p10745_p8), %vm534_vm0, %v487_v4  ;;  %v8288_v18 = vld [vmem:[#allocation8 + $0x64] ss:$16 sps:$4 sm:$0xff] (!%p10745_p8)   ;;  %v8283_v19 = vld [vmem:[#allocation8 + $0x48] ss:$16 sps:$4 sm:$0xff] (!%p10745_p8)   ;;  %v8291_v20 = vld [vmem:[#allocation8 + $0x6c] ss:$16 sps:$4 sm:$0xff] (!%p10745_p8)  }
  0xf2   : > { %1420 = vmatpush1.bf16.msra.mxu0 %v8268_v7  ;;  %6963 = vmatmul.mubr.msk.bf16.vlgmr.msra.gmra.mrb[0].mxu1 %vm534_vm0, %v487_v4  ;;  %v8286_v21 = vld [vmem:[#allocation8 + $0x60] ss:$16 sps:$4 sm:$0xff]   ;;  %v8294_v22 = vld [vmem:[#allocation8 + $0x84] ss:$16 sps:$4 sm:$0xff]   ;;  %v8289_v23 = vld [vmem:[#allocation8 + $0x68] ss:$16 sps:$4 sm:$0xff]  }
  0xf3   : > { %1421 = vmatprep.subr.bf16.mxu0 %v8276_v11  ;;  %1502 = vmatpush1.bf16.msra.mxu1 %v8271_v9  ;;  %v8297_v24 = vld [vmem:[#allocation8 + $0x8c] ss:$16 sps:$4 sm:$0xff]   ;;  %v8292_v25 = vld [vmem:[#allocation8 + $0x80] ss:$16 sps:$4 sm:$0xff]   ;;  %v8300_v26 = vld [vmem:[#allocation8 + $0xa4] ss:$16 sps:$4 sm:$0xff]   ;;  %v494_v9 = vlaneseq }
  0xf4   : > { %1503 = vmatprep.subr.bf16.mxu1 %v8279_v13  ;;  %v8295_v27 = vld [vmem:[#allocation8 + $0x88] ss:$16 sps:$4 sm:$0xff]   ;;  %v8303_v28 = vld [vmem:[#allocation8 + $0xac] ss:$16 sps:$4 sm:$0xff]   ;;  %v8298_v29 = vld [vmem:[#allocation8 + $0xa0] ss:$16 sps:$4 sm:$0xff]  }
  0xf5   : > { %v8306_v30 = vld [vmem:[#allocation8 + $0xc4] ss:$16 sps:$4 sm:$0xff]   ;;  %v8301_v31 = vld [vmem:[#allocation8 + $0xa8] ss:$16 sps:$4 sm:$0xff]   ;;  %v8309_v32 = vld [vmem:[#allocation8 + $0xcc] ss:$16 sps:$4 sm:$0xff]  }
  0xf6   : > { %1422 = vmatpush1.bf16.msra.mxu0 %v8274_v12  ;;  %v8304_v33 = vld [vmem:[#allocation8 + $0xc0] ss:$16 sps:$4 sm:$0xff]   ;;  %v8312_v34 = vld [vmem:[#allocation8 + $0xe4] ss:$16 sps:$4 sm:$0xff]   ;;  %v8307_v35 = vld [vmem:[#allocation8 + $0xc8] ss:$16 sps:$4 sm:$0xff]  }
  0xf7   : > { %1423 = vmatprep.subr.bf16.mxu0 %v8282_v15  ;;  %1504 = vmatpush1.bf16.msra.mxu1 %v8277_v14  ;;  %v8315_v36 = vld [vmem:[#allocation8 + $0xec] ss:$16 sps:$4 sm:$0xff]   ;;  %v8310_v37 = vld [vmem:[#allocation8 + $0xe0] ss:$16 sps:$4 sm:$0xff]   ;;  %v8318_v38 = vld [vmem:[#allocation8 + $0x104] ss:$16 sps:$4 sm:$0xff]  }
  0xf8   : > { %1505 = vmatprep.subr.bf16.mxu1 %v8285_v16  ;;  %v8313_v39 = vld [vmem:[#allocation8 + $0xe8] ss:$16 sps:$4 sm:$0xff]   ;;  %v8321_v40 = vld [vmem:[#allocation8 + $0x10c] ss:$16 sps:$4 sm:$0xff]   ;;  %v8316_v41 = vld [vmem:[#allocation8 + $0x100] ss:$16 sps:$4 sm:$0xff]  }
  0xf9   : > { %v8324_v42 = vld [vmem:[#allocation8 + $0x124] ss:$16 sps:$4 sm:$0xff]   ;;  %v8319_v43 = vld [vmem:[#allocation8 + $0x108] ss:$16 sps:$4 sm:$0xff]   ;;  %v8322_v44 = vld [vmem:[#allocation8 + $0x120] ss:$16 sps:$4 sm:$0xff]  }
  0xfa   : > { %1424 = vmatpush1.bf16.msra.mxu0 %v8280_v17  ;;  %v8327_v45 = vld [vmem:[#allocation8 + $0x12c] ss:$16 sps:$4 sm:$0xff]   ;;  %v8325_v46 = vld [vmem:[#allocation8 + $0x128] ss:$16 sps:$4 sm:$0xff]   ;;  %v8330_v47 = vld [vmem:[#allocation8 + $0x144] ss:$16 sps:$4 sm:$0xff]  }
  0xfb   : > { %1425 = vmatprep.subr.bf16.mxu0 %v8288_v18  ;;  %1506 = vmatpush1.bf16.msra.mxu1 %v8283_v19  ;;  %v8333_v48 = vld [vmem:[#allocation8 + $0x14c] ss:$16 sps:$4 sm:$0xff]   ;;  %v8328_v49 = vld [vmem:[#allocation8 + $0x140] ss:$16 sps:$4 sm:$0xff]   ;;  %v8336_v50 = vld [vmem:[#allocation8 + $0x164] ss:$16 sps:$4 sm:$0xff]  }
  0xfc   : > { %1507 = vmatprep.subr.bf16.mxu1 %v8291_v20  ;;  %v8331_v51 = vld [vmem:[#allocation8 + $0x148] ss:$16 sps:$4 sm:$0xff]   ;;  %v8339_v52 = vld [vmem:[#allocation8 + $0x16c] ss:$16 sps:$4 sm:$0xff]   ;;  %v8334_v53 = vld [vmem:[#allocation8 + $0x160] ss:$16 sps:$4 sm:$0xff]  }
  0xfd   : > { %v8342_v54 = vld [vmem:[#allocation8 + $0x184] ss:$16 sps:$4 sm:$0xff]   ;;  %v8337_v55 = vld [vmem:[#allocation8 + $0x168] ss:$16 sps:$4 sm:$0xff]   ;;  %v8345_v56 = vld [vmem:[#allocation8 + $0x18c] ss:$16 sps:$4 sm:$0xff]  }
  0xfe   : > { %1426 = vmatpush1.bf16.msra.mxu0 %v8286_v21  ;;  %v8340_v57 = vld [vmem:[#allocation8 + $0x180] ss:$16 sps:$4 sm:$0xff]   ;;  %v8348_v58 = vld [vmem:[#allocation8 + $0x1a4] ss:$16 sps:$4 sm:$0xff]   ;;  %v8343_v59 = vld [vmem:[#allocation8 + $0x188] ss:$16 sps:$4 sm:$0xff]  }
  0xff   : > { %1427 = vmatprep.subr.bf16.mxu0 %v8294_v22  ;;  %1508 = vmatpush1.bf16.msra.mxu1 %v8289_v23  ;;  %v8351_v60 = vld [vmem:[#allocation8 + $0x1ac] ss:$16 sps:$4 sm:$0xff]   ;;  %v8346_v61 = vld [vmem:[#allocation8 + $0x1a0] ss:$16 sps:$4 sm:$0xff]   ;;  %v8349_v62 = vld [vmem:[#allocation8 + $0x1a8] ss:$16 sps:$4 sm:$0xff]  }
 0x100   : > { %1509 = vmatprep.subr.bf16.mxu1 %v8297_v24  ;;  %v8354_v63 = vld [vmem:[#allocation8 + $0x1c4] ss:$16 sps:$4 sm:$0xff]   ;;  %v8357_v0 = vld [vmem:[#allocation8 + $0x1cc] ss:$16 sps:$4 sm:$0xff]   ;;  %v8352_v1 = vld [vmem:[#allocation8 + $0x1c0] ss:$16 sps:$4 sm:$0xff]  }
 0x101   : > { %v8355_v2 = vld [vmem:[#allocation8 + $0x1c8] ss:$16 sps:$4 sm:$0xff]   ;;  %v8360_v3 = vld [vmem:[#allocation8 + $0x1e4] ss:$16 sps:$4 sm:$0xff]   ;;  %v8363_v4 = vld [vmem:[#allocation8 + $0x1ec] ss:$16 sps:$4 sm:$0xff]  }
 0x102   : > { %1428 = vmatpush1.bf16.msra.mxu0 %v8292_v25  ;;  %v8358_v5 = vld [vmem:[#allocation8 + $0x1e0] ss:$16 sps:$4 sm:$0xff]   ;;  %v8361_v6 = vld [vmem:[#allocation8 + $0x1e8] ss:$16 sps:$4 sm:$0xff]   ;;  %v8366_v7 = vld [vmem:[#allocation8 + $0x204] ss:$16 sps:$4 sm:$0xff]  }
 0x103   : > { %1429 = vmatprep.subr.bf16.mxu0 %v8300_v26  ;;  %1510 = vmatpush1.bf16.msra.mxu1 %v8295_v27  ;;  %v8369_v8 = vld [vmem:[#allocation8 + $0x20c] ss:$16 sps:$4 sm:$0xff]   ;;  %v10112_v10 = vshrl.u32 %v494_v9, 7  ;;  %v10117_v12 = vld [vmem:[#allocation9] sm:$0xf]  ;;  %vm3533_vm1 = vcmask 523264  }
 0x104   : > { %1511 = vmatprep.subr.bf16.mxu1 %v8303_v28  ;;  %v8426_v9 = vld [vmem:[#allocation8 + $0x344] ss:$16 sps:$4 sm:$0xff]  }
 0x105   : > { %v10115_v11 = vsub.s32 0, %v10112_v10  ;;  %v10120_v13 = vsub.s32 1, %v10112_v10  ;;  %v10123_v14 = vsub.s32 3, %v10112_v10 }
 0x106   : > { %1430 = vmatpush1.bf16.msra.mxu0 %v8298_v29 }
 0x107   : > { %1431 = vmatprep.subr.bf16.mxu0 %v8306_v30  ;;  %1512 = vmatpush1.bf16.msra.mxu1 %v8301_v31  ;;  %v497_v15 = vrot.slane %v10117_v12, %v10115_v11  ;;  %v501_v16 = vrot.slane %v10117_v12, %v10120_v13  ;;  %v509_v18 = vrot.slane %v10117_v12, %v10123_v14 }
 0x108   : > { %1513 = vmatprep.subr.bf16.mxu1 %v8309_v32  ;;  %v8364_v32 = vld [vmem:[#allocation8 + $0x200] ss:$16 sps:$4 sm:$0xff]  }
 0x10a   : > { %1432 = vmatpush1.bf16.msra.mxu0 %v8304_v33  ;;  %v8367_v33 = vld [vmem:[#allocation8 + $0x208] ss:$16 sps:$4 sm:$0xff]  }
 0x10b   : > { %1433 = vmatprep.subr.bf16.mxu0 %v8312_v34  ;;  %1514 = vmatpush1.bf16.msra.mxu1 %v8307_v35 }
 0x10c   : > { %1515 = vmatprep.subr.bf16.mxu1 %v8315_v36  ;;  %v8372_v36 = vld [vmem:[#allocation8 + $0x224] ss:$16 sps:$4 sm:$0xff]  }
 0x10e   : > { %1434 = vmatpush1.bf16.msra.mxu0 %v8310_v37  ;;  %v8375_v37 = vld [vmem:[#allocation8 + $0x22c] ss:$16 sps:$4 sm:$0xff]  }
 0x10f   : > { %1435 = vmatprep.subr.bf16.mxu0 %v8318_v38  ;;  %1516 = vmatpush1.bf16.msra.mxu1 %v8313_v39  ;;  %v8370_v39 = vld [vmem:[#allocation8 + $0x220] ss:$16 sps:$4 sm:$0xff]  }
 0x110   : > { %1517 = vmatprep.subr.bf16.mxu1 %v8321_v40  ;;  %v8373_v40 = vld [vmem:[#allocation8 + $0x228] ss:$16 sps:$4 sm:$0xff]  }
 0x112   : > { %1436 = vmatpush1.bf16.msra.mxu0 %v8316_v41  ;;  %v8378_v41 = vld [vmem:[#allocation8 + $0x244] ss:$16 sps:$4 sm:$0xff]  }
 0x113   : > { %1437 = vmatprep.subr.bf16.mxu0 %v8324_v42  ;;  %1518 = vmatpush1.bf16.msra.mxu1 %v8319_v43  ;;  %v8381_v42 = vld [vmem:[#allocation8 + $0x24c] ss:$16 sps:$4 sm:$0xff]   ;;  %v8376_v43 = vld [vmem:[#allocation8 + $0x240] ss:$16 sps:$4 sm:$0xff]  }
 0x114   : > { %1519 = vmatprep.subr.bf16.mxu1 %v8327_v45  ;;  %v8384_v45 = vld [vmem:[#allocation8 + $0x264] ss:$16 sps:$4 sm:$0xff]  }
 0x116   : > { %1438 = vmatpush1.bf16.msra.mxu0 %v8322_v44  ;;  %v8379_v44 = vld [vmem:[#allocation8 + $0x248] ss:$16 sps:$4 sm:$0xff]  }
 0x117   : > { %1439 = vmatprep.subr.bf16.mxu0 %v8330_v47  ;;  %1520 = vmatpush1.bf16.msra.mxu1 %v8325_v46  ;;  %v8387_v46 = vld [vmem:[#allocation8 + $0x26c] ss:$16 sps:$4 sm:$0xff]   ;;  %v8382_v47 = vld [vmem:[#allocation8 + $0x260] ss:$16 sps:$4 sm:$0xff]  }
 0x118   : > { %1521 = vmatprep.subr.bf16.mxu1 %v8333_v48  ;;  %v8385_v48 = vld [vmem:[#allocation8 + $0x268] ss:$16 sps:$4 sm:$0xff]  }
 0x11a   : > { %1440 = vmatpush1.bf16.msra.mxu0 %v8328_v49  ;;  %v8390_v49 = vld [vmem:[#allocation8 + $0x284] ss:$16 sps:$4 sm:$0xff]  }
 0x11b   : > { %1441 = vmatprep.subr.bf16.mxu0 %v8336_v50  ;;  %1522 = vmatpush1.bf16.msra.mxu1 %v8331_v51  ;;  %v8393_v50 = vld [vmem:[#allocation8 + $0x28c] ss:$16 sps:$4 sm:$0xff]   ;;  %v8388_v51 = vld [vmem:[#allocation8 + $0x280] ss:$16 sps:$4 sm:$0xff]  }
 0x11c   : > { %1523 = vmatprep.subr.bf16.mxu1 %v8339_v52  ;;  %v8391_v52 = vld [vmem:[#allocation8 + $0x288] ss:$16 sps:$4 sm:$0xff]  }
 0x11e   : > { %1442 = vmatpush1.bf16.msra.mxu0 %v8334_v53  ;;  %v8396_v53 = vld [vmem:[#allocation8 + $0x2a4] ss:$16 sps:$4 sm:$0xff]  }
 0x11f   : > { %1443 = vmatprep.subr.bf16.mxu0 %v8342_v54  ;;  %1524 = vmatpush1.bf16.msra.mxu1 %v8337_v55  ;;  %v8399_v54 = vld [vmem:[#allocation8 + $0x2ac] ss:$16 sps:$4 sm:$0xff]   ;;  %v8394_v55 = vld [vmem:[#allocation8 + $0x2a0] ss:$16 sps:$4 sm:$0xff]  }
 0x120   : > { %1525 = vmatprep.subr.bf16.mxu1 %v8345_v56  ;;  %v8397_v56 = vld [vmem:[#allocation8 + $0x2a8] ss:$16 sps:$4 sm:$0xff]  }
 0x122   : > { %1444 = vmatpush1.bf16.msra.mxu0 %v8340_v57  ;;  %v8402_v57 = vld [vmem:[#allocation8 + $0x2c4] ss:$16 sps:$4 sm:$0xff]  }
 0x123   : > { %1445 = vmatprep.subr.bf16.mxu0 %v8348_v58  ;;  %1526 = vmatpush1.bf16.msra.mxu1 %v8343_v59  ;;  %v8405_v58 = vld [vmem:[#allocation8 + $0x2cc] ss:$16 sps:$4 sm:$0xff]   ;;  %v8400_v59 = vld [vmem:[#allocation8 + $0x2c0] ss:$16 sps:$4 sm:$0xff]  }
 0x124   : > { %1527 = vmatprep.subr.bf16.mxu1 %v8351_v60  ;;  %v8403_v60 = vld [vmem:[#allocation8 + $0x2c8] ss:$16 sps:$4 sm:$0xff]  }
 0x126   : > { %1446 = vmatpush1.bf16.msra.mxu0 %v8346_v61  ;;  %v8408_v61 = vld [vmem:[#allocation8 + $0x2e4] ss:$16 sps:$4 sm:$0xff]  }
 0x127   : > { %1528 = vmatpush1.bf16.msra.mxu1 %v8349_v62  ;;  %1447 = vmatprep.subr.bf16.mxu0 %v8354_v63  ;;  %v8411_v62 = vld [vmem:[#allocation8 + $0x2ec] ss:$16 sps:$4 sm:$0xff]   ;;  %v8406_v63 = vld [vmem:[#allocation8 + $0x2e0] ss:$16 sps:$4 sm:$0xff]  }
 0x128   : > { %1529 = vmatprep.subr.bf16.mxu1 %v8357_v0  ;;  %v8409_v0 = vld [vmem:[#allocation8 + $0x2e8] ss:$16 sps:$4 sm:$0xff]  }
 0x12a   : > { %1448 = vmatpush1.bf16.msra.mxu0 %v8352_v1  ;;  %v8414_v1 = vld [vmem:[#allocation8 + $0x304] ss:$16 sps:$4 sm:$0xff]  }
 0x12b   : > { %1530 = vmatpush1.bf16.msra.mxu1 %v8355_v2  ;;  %1449 = vmatprep.subr.bf16.mxu0 %v8360_v3  ;;  %v8417_v2 = vld [vmem:[#allocation8 + $0x30c] ss:$16 sps:$4 sm:$0xff]   ;;  %v8412_v3 = vld [vmem:[#allocation8 + $0x300] ss:$16 sps:$4 sm:$0xff]  }
 0x12c   : > { %1531 = vmatprep.subr.bf16.mxu1 %v8363_v4  ;;  %v8415_v4 = vld [vmem:[#allocation8 + $0x308] ss:$16 sps:$4 sm:$0xff]  }
 0x12e   : > { %1450 = vmatpush1.bf16.msra.mxu0 %v8358_v5  ;;  %v8420_v5 = vld [vmem:[#allocation8 + $0x324] ss:$16 sps:$4 sm:$0xff]  }
 0x12f   : > { %1532 = vmatpush1.bf16.msra.mxu1 %v8361_v6  ;;  %1460 = vmatprep.subr.bf16.mxu0 %v8366_v7  ;;  %v8423_v6 = vld [vmem:[#allocation8 + $0x32c] ss:$16 sps:$4 sm:$0xff]   ;;  %v8418_v7 = vld [vmem:[#allocation8 + $0x320] ss:$16 sps:$4 sm:$0xff]  }
 0x130   : > { %1542 = vmatprep.subr.bf16.mxu1 %v8369_v8  ;;  %v8421_v8 = vld [vmem:[#allocation8 + $0x328] ss:$16 sps:$4 sm:$0xff]  }
 0x1c4   : > { %v572_v17 = vpop.f32.mrb[0].mxu0 }
 0x1c5   : > { %v573_v19 = vadd.f32 %v572_v17, %v497_v15  ;;  %v574_v20 = vpop.f32.mrb[1].mxu0  ;;  %v10131_v23 = vpop.f32.mrb[0].mxu1  ;;  %v8429_v15 = vld [vmem:[#allocation8 + $0x34c] ss:$16 sps:$4 sm:$0xff]   ;;  %v8427_v17 = vld [vmem:[#allocation8 + $0x348] ss:$16 sps:$4 sm:$0xff]  }
 0x1c6   : > { %v575_v21 = vadd.f32 %v574_v20, %v501_v16  ;;  %v576_v22 = vpop.f32.mrb[2].mxu0  ;;  %v615_v26 = vpop.f32.mrb[1].mxu1  ;;  %v8424_v16 = vld [vmem:[#allocation8 + $0x340] ss:$16 sps:$4 sm:$0xff]  }
 0x1c7   : > { %v620_v24 = vmax.f32 %v573_v19, 0.0  ;;  %v577_v25 = vpop.f32.mrb[3].mxu0  ;;  %v616_v28 = vadd.f32 %v615_v26, %v509_v18  ;;  %v617_v29 = vpop.f32.mrb[2].mxu1  ;;  %v8432_v18 = vld [vmem:[#allocation8 + $0x364] ss:$16 sps:$4 sm:$0xff]  }
 0x1c8   : > { %v621_v27 = vmax.f32 %v575_v21, 0.0  ;;  %v618_v30 = vpop.f32.mrb[3].mxu1  ;;  %v8435_v19 = vld [vmem:[#allocation8 + $0x36c] ss:$16 sps:$4 sm:$0xff]   ;;  %v8430_v20 = vld [vmem:[#allocation8 + $0x360] ss:$16 sps:$4 sm:$0xff]  }
 0x1c9   : > { %v623_v34 = vmax.f32 %v616_v28, 0.0  ;;  %v624_v35 = vpack.c.bf16 %v620_v24, %v620_v24  ;;  %v8433_v21 = vld [vmem:[#allocation8 + $0x368] ss:$16 sps:$4 sm:$0xff]   ;;  %v8438_v22 = vld [vmem:[#allocation8 + $0x384] ss:$16 sps:$4 sm:$0xff]  }
 0x1ca   : > { %v625_v31 = vpack.c.bf16 %v621_v27, %v621_v27  ;;  %v8441_v24 = vld [vmem:[#allocation8 + $0x38c] ss:$16 sps:$4 sm:$0xff]   ;;  %v8436_v25 = vld [vmem:[#allocation8 + $0x380] ss:$16 sps:$4 sm:$0xff]   ;;  %v8439_v26 = vld [vmem:[#allocation8 + $0x388] ss:$16 sps:$4 sm:$0xff]  }
 0x1cb   : > { %v627_v38 = vpack.c.bf16 %v623_v34, %v623_v34  ;;  %v10134_v27 = vsub.s32 2, %v10112_v10  ;;  %v8444_v28 = vld [vmem:[#allocation8 + $0x3a4] ss:$16 sps:$4 sm:$0xff]   ;;  %v8447_v29 = vld [vmem:[#allocation8 + $0x3ac] ss:$16 sps:$4 sm:$0xff]  }
 0x1cc   : > { %1451 = vmatprep.mubr.bf16.mxu0 %v625_v31  ;;  %1533 = vmatprep.mubr.bf16.mxu1 %v625_v31  ;;  %v8442_v30 = vld [vmem:[#allocation8 + $0x3a0] ss:$16 sps:$4 sm:$0xff]   ;;  %v8445_v31 = vld [vmem:[#allocation8 + $0x3a8] ss:$16 sps:$4 sm:$0xff]   ;;  %v8453_v34 = vld [vmem:[#allocation8 + $0x3cc] ss:$16 sps:$4 sm:$0xff]  }
 0x1cd   : > { %1452 = vmatmul.mubr.bf16.vlgmr.msra.gmra.mrb[4].mxu0 %v624_v35  ;;  %1534 = vmatmul.mubr.bf16.vlgmr.msra.gmra.mrb[4].mxu1 %v624_v35  ;;  %v8448_v35 = vld [vmem:[#allocation8 + $0x3c0] ss:$16 sps:$4 sm:$0xff]  }
 0x1ce   : > { %1461 = vmatpush1.bf16.msra.mxu0 %v8364_v32  ;;  %1543 = vmatpush1.bf16.msra.mxu1 %v8367_v33  ;;  %v505_v32 = vrot.slane %v10117_v12, %v10134_v27  ;;  %v8450_v33 = vld [vmem:[#allocation8 + $0x3c4] ss:$16 sps:$4 sm:$0xff]  }
 0x1cf   : > { %1462 = vmatprep.subr.bf16.mxu0 %v8372_v36  ;;  %1544 = vmatprep.subr.bf16.mxu1 %v8375_v37  ;;  %v8451_v36 = vld [vmem:[#allocation8 + $0x3c8] ss:$16 sps:$4 sm:$0xff]   ;;  %v8456_v37 = vld [vmem:[#allocation8 + $0x3e4] ss:$16 sps:$4 sm:$0xff]  }
 0x1d0   : > { %1492 = vmatprep.mubr.bf16.mxu0 %v627_v38  ;;  %1574 = vmatprep.mubr.bf16.mxu1 %v627_v38  ;;  %v614_v10 = vadd.f32 %v10131_v23, %v505_v32  ;;  %v8459_v38 = vld [vmem:[#allocation8 + $0x3ec] ss:$16 sps:$4 sm:$0xff]   ;;  %v8462_v12 = vld [vmem:[#allocation8 + $0x404] ss:$16 sps:$4 sm:$0xff]  }
 0x1d1   : > { %v8468_v23 = vld [vmem:[#allocation8 + $0x424] ss:$16 sps:$4 sm:$0xff]  }
 0x1d2   : > { %1463 = vmatpush1.bf16.msra.mxu0 %v8370_v39  ;;  %1545 = vmatpush1.bf16.msra.mxu1 %v8373_v40  ;;  %v8454_v39 = vld [vmem:[#allocation8 + $0x3e0] ss:$16 sps:$4 sm:$0xff]   ;;  %v8457_v40 = vld [vmem:[#allocation8 + $0x3e8] ss:$16 sps:$4 sm:$0xff]   ;;  %v8534_v32 = vld [vmem:[#allocation8 + $0x584] ss:$16 sps:$4 sm:$0xff]  }
 0x1d3   : > { %1464 = vmatprep.subr.bf16.mxu0 %v8378_v41  ;;  %1546 = vmatprep.subr.bf16.mxu1 %v8381_v42  ;;  %v622_v41 = vmax.f32 %v614_v10, 0.0  ;;  %v8465_v42 = vld [vmem:[#allocation8 + $0x40c] ss:$16 sps:$4 sm:$0xff]  }
 0x1d4   : > { %v8543_v10 = vld [vmem:[#allocation8 + $0x5ac] ss:$16 sps:$4 sm:$0xff]  }
 0x1d6   : > { %1465 = vmatpush1.bf16.msra.mxu0 %v8376_v43  ;;  %1547 = vmatpush1.bf16.msra.mxu1 %v8379_v44  ;;  %v8460_v43 = vld [vmem:[#allocation8 + $0x400] ss:$16 sps:$4 sm:$0xff]   ;;  %v8463_v44 = vld [vmem:[#allocation8 + $0x408] ss:$16 sps:$4 sm:$0xff]  }
 0x1d7   : > { %1466 = vmatprep.subr.bf16.mxu0 %v8384_v45  ;;  %1548 = vmatprep.subr.bf16.mxu1 %v8387_v46  ;;  %v626_v45 = vpack.c.bf16 %v622_v41, %v622_v41  ;;  %v8471_v46 = vld [vmem:[#allocation8 + $0x42c] ss:$16 sps:$4 sm:$0xff]   ;;  %v8544_v41 = vld [vmem:[#allocation8 + $0x5c0] ss:$16 sps:$4 sm:$0xff]  }
 0x1da   : > { %1467 = vmatpush1.bf16.msra.mxu0 %v8382_v47  ;;  %1549 = vmatpush1.bf16.msra.mxu1 %v8385_v48  ;;  %v8466_v47 = vld [vmem:[#allocation8 + $0x420] ss:$16 sps:$4 sm:$0xff]   ;;  %v8469_v48 = vld [vmem:[#allocation8 + $0x428] ss:$16 sps:$4 sm:$0xff]  }
 0x1db   : > { %1468 = vmatprep.subr.bf16.mxu0 %v8390_v49  ;;  %1550 = vmatprep.subr.bf16.mxu1 %v8393_v50  ;;  %v8474_v49 = vld [vmem:[#allocation8 + $0x444] ss:$16 sps:$4 sm:$0xff]   ;;  %v8477_v50 = vld [vmem:[#allocation8 + $0x44c] ss:$16 sps:$4 sm:$0xff]  }
 0x1de   : > { %1469 = vmatpush1.bf16.msra.mxu0 %v8388_v51  ;;  %1551 = vmatpush1.bf16.msra.mxu1 %v8391_v52  ;;  %v8472_v51 = vld [vmem:[#allocation8 + $0x440] ss:$16 sps:$4 sm:$0xff]   ;;  %v8475_v52 = vld [vmem:[#allocation8 + $0x448] ss:$16 sps:$4 sm:$0xff]  }
 0x1df   : > { %1470 = vmatprep.subr.bf16.mxu0 %v8396_v53  ;;  %1552 = vmatprep.subr.bf16.mxu1 %v8399_v54  ;;  %v8480_v53 = vld [vmem:[#allocation8 + $0x464] ss:$16 sps:$4 sm:$0xff]   ;;  %v8483_v54 = vld [vmem:[#allocation8 + $0x46c] ss:$16 sps:$4 sm:$0xff]  }
 0x1e2   : > { %1471 = vmatpush1.bf16.msra.mxu0 %v8394_v55  ;;  %1553 = vmatpush1.bf16.msra.mxu1 %v8397_v56  ;;  %v8478_v55 = vld [vmem:[#allocation8 + $0x460] ss:$16 sps:$4 sm:$0xff]   ;;  %v8481_v56 = vld [vmem:[#allocation8 + $0x468] ss:$16 sps:$4 sm:$0xff]  }
 0x1e3   : > { %1472 = vmatprep.subr.bf16.mxu0 %v8402_v57  ;;  %1554 = vmatprep.subr.bf16.mxu1 %v8405_v58  ;;  %v8486_v57 = vld [vmem:[#allocation8 + $0x484] ss:$16 sps:$4 sm:$0xff]   ;;  %v8489_v58 = vld [vmem:[#allocation8 + $0x48c] ss:$16 sps:$4 sm:$0xff]  }
 0x1e6   : > { %1473 = vmatpush1.bf16.msra.mxu0 %v8400_v59  ;;  %1555 = vmatpush1.bf16.msra.mxu1 %v8403_v60  ;;  %v8484_v59 = vld [vmem:[#allocation8 + $0x480] ss:$16 sps:$4 sm:$0xff]   ;;  %v8487_v60 = vld [vmem:[#allocation8 + $0x488] ss:$16 sps:$4 sm:$0xff]  }
 0x1e7   : > { %1474 = vmatprep.subr.bf16.mxu0 %v8408_v61  ;;  %1556 = vmatprep.subr.bf16.mxu1 %v8411_v62  ;;  %v8492_v61 = vld [vmem:[#allocation8 + $0x4a4] ss:$16 sps:$4 sm:$0xff]   ;;  %v8495_v62 = vld [vmem:[#allocation8 + $0x4ac] ss:$16 sps:$4 sm:$0xff]  }
 0x1ea   : > { %1475 = vmatpush1.bf16.msra.mxu0 %v8406_v63  ;;  %1557 = vmatpush1.bf16.msra.mxu1 %v8409_v0  ;;  %v8490_v63 = vld [vmem:[#allocation8 + $0x4a0] ss:$16 sps:$4 sm:$0xff]   ;;  %v8493_v0 = vld [vmem:[#allocation8 + $0x4a8] ss:$16 sps:$4 sm:$0xff]  }
 0x1eb   : > { %1476 = vmatprep.subr.bf16.mxu0 %v8414_v1  ;;  %1558 = vmatprep.subr.bf16.mxu1 %v8417_v2  ;;  %v8498_v1 = vld [vmem:[#allocation8 + $0x4c4] ss:$16 sps:$4 sm:$0xff]   ;;  %v8501_v2 = vld [vmem:[#allocation8 + $0x4cc] ss:$16 sps:$4 sm:$0xff]  }
 0x1ee   : > { %1477 = vmatpush1.bf16.msra.mxu0 %v8412_v3  ;;  %1559 = vmatpush1.bf16.msra.mxu1 %v8415_v4  ;;  %v8496_v3 = vld [vmem:[#allocation8 + $0x4c0] ss:$16 sps:$4 sm:$0xff]   ;;  %v8499_v4 = vld [vmem:[#allocation8 + $0x4c8] ss:$16 sps:$4 sm:$0xff]  }
 0x1ef   : > { %1478 = vmatprep.subr.bf16.mxu0 %v8420_v5  ;;  %1560 = vmatprep.subr.bf16.mxu1 %v8423_v6  ;;  %v8504_v5 = vld [vmem:[#allocation8 + $0x4e4] ss:$16 sps:$4 sm:$0xff]   ;;  %v8507_v6 = vld [vmem:[#allocation8 + $0x4ec] ss:$16 sps:$4 sm:$0xff]  }
 0x1f2   : > { %1479 = vmatpush1.bf16.msra.mxu0 %v8418_v7  ;;  %1561 = vmatpush1.bf16.msra.mxu1 %v8421_v8  ;;  %v8502_v7 = vld [vmem:[#allocation8 + $0x4e0] ss:$16 sps:$4 sm:$0xff]   ;;  %v8505_v8 = vld [vmem:[#allocation8 + $0x4e8] ss:$16 sps:$4 sm:$0xff]  }
 0x1f3   : > { %1480 = vmatprep.subr.bf16.mxu0 %v8426_v9  ;;  %1562 = vmatprep.subr.bf16.mxu1 %v8429_v15  ;;  %v8510_v9 = vld [vmem:[#allocation8 + $0x504] ss:$16 sps:$4 sm:$0xff]   ;;  %v8513_v15 = vld [vmem:[#allocation8 + $0x50c] ss:$16 sps:$4 sm:$0xff]  }
 0x1f6   : > { %1481 = vmatpush1.bf16.msra.mxu0 %v8424_v16  ;;  %1563 = vmatpush1.bf16.msra.mxu1 %v8427_v17  ;;  %v8508_v16 = vld [vmem:[#allocation8 + $0x500] ss:$16 sps:$4 sm:$0xff]   ;;  %v8511_v17 = vld [vmem:[#allocation8 + $0x508] ss:$16 sps:$4 sm:$0xff]  }
 0x1f7   : > { %1482 = vmatprep.subr.bf16.mxu0 %v8432_v18  ;;  %1564 = vmatprep.subr.bf16.mxu1 %v8435_v19  ;;  %v8516_v18 = vld [vmem:[#allocation8 + $0x524] ss:$16 sps:$4 sm:$0xff]   ;;  %v8519_v19 = vld [vmem:[#allocation8 + $0x52c] ss:$16 sps:$4 sm:$0xff]  }
 0x1fa   : > { %1483 = vmatpush1.bf16.msra.mxu0 %v8430_v20  ;;  %1565 = vmatpush1.bf16.msra.mxu1 %v8433_v21  ;;  %v8514_v20 = vld [vmem:[#allocation8 + $0x520] ss:$16 sps:$4 sm:$0xff]   ;;  %v8517_v21 = vld [vmem:[#allocation8 + $0x528] ss:$16 sps:$4 sm:$0xff]  }
 0x1fb   : > { %1484 = vmatprep.subr.bf16.mxu0 %v8438_v22  ;;  %1566 = vmatprep.subr.bf16.mxu1 %v8441_v24  ;;  %v8522_v22 = vld [vmem:[#allocation8 + $0x544] ss:$16 sps:$4 sm:$0xff]   ;;  %v8525_v24 = vld [vmem:[#allocation8 + $0x54c] ss:$16 sps:$4 sm:$0xff]  }
 0x1fe   : > { %1485 = vmatpush1.bf16.msra.mxu0 %v8436_v25  ;;  %1567 = vmatpush1.bf16.msra.mxu1 %v8439_v26  ;;  %v8520_v25 = vld [vmem:[#allocation8 + $0x540] ss:$16 sps:$4 sm:$0xff]   ;;  %v8523_v26 = vld [vmem:[#allocation8 + $0x548] ss:$16 sps:$4 sm:$0xff]  }
 0x1ff   : > { %1486 = vmatprep.subr.bf16.mxu0 %v8444_v28  ;;  %1568 = vmatprep.subr.bf16.mxu1 %v8447_v29  ;;  %v8528_v28 = vld [vmem:[#allocation8 + $0x564] ss:$16 sps:$4 sm:$0xff]   ;;  %v8531_v29 = vld [vmem:[#allocation8 + $0x56c] ss:$16 sps:$4 sm:$0xff]  }
 0x202   : > { %1487 = vmatpush1.bf16.msra.mxu0 %v8442_v30  ;;  %1569 = vmatpush1.bf16.msra.mxu1 %v8445_v31  ;;  %v8526_v30 = vld [vmem:[#allocation8 + $0x560] ss:$16 sps:$4 sm:$0xff]   ;;  %v8529_v31 = vld [vmem:[#allocation8 + $0x568] ss:$16 sps:$4 sm:$0xff]  }
 0x203   : > { %1488 = vmatprep.subr.bf16.mxu0 %v8450_v33  ;;  %1570 = vmatprep.subr.bf16.mxu1 %v8453_v34  ;;  %v8537_v33 = vld [vmem:[#allocation8 + $0x58c] ss:$16 sps:$4 sm:$0xff]   ;;  %v8532_v34 = vld [vmem:[#allocation8 + $0x580] ss:$16 sps:$4 sm:$0xff]  }
 0x206   : > { %1489 = vmatpush1.bf16.msra.mxu0 %v8448_v35  ;;  %1571 = vmatpush1.bf16.msra.mxu1 %v8451_v36  ;;  %v8535_v35 = vld [vmem:[#allocation8 + $0x588] ss:$16 sps:$4 sm:$0xff]   ;;  %v8540_v36 = vld [vmem:[#allocation8 + $0x5a4] ss:$16 sps:$4 sm:$0xff]  }
 0x207   : > { %1490 = vmatprep.subr.bf16.mxu0 %v8456_v37  ;;  %1572 = vmatprep.subr.bf16.mxu1 %v8459_v38  ;;  %v8538_v37 = vld [vmem:[#allocation8 + $0x5a0] ss:$16 sps:$4 sm:$0xff]   ;;  %v8541_v38 = vld [vmem:[#allocation8 + $0x5a8] ss:$16 sps:$4 sm:$0xff]  }
 0x20a   : > { %1491 = vmatpush1.bf16.msra.mxu0 %v8454_v39  ;;  %1573 = vmatpush1.bf16.msra.mxu1 %v8457_v40  ;;  %v8546_v39 = vld [vmem:[#allocation8 + $0x5c4] ss:$16 sps:$4 sm:$0xff]   ;;  %v8549_v40 = vld [vmem:[#allocation8 + $0x5cc] ss:$16 sps:$4 sm:$0xff]  }
 0x20b   : > { %2383 = vmatprep.subr.bf16.mxu0 %v8462_v12  ;;  %2465 = vmatprep.subr.bf16.mxu1 %v8465_v42  ;;  %v8547_v12 = vld [vmem:[#allocation8 + $0x5c8] ss:$16 sps:$4 sm:$0xff]   ;;  %v8552_v42 = vld [vmem:[#allocation8 + $0x5e4] ss:$16 sps:$4 sm:$0xff]  }
 0x20d   : > { %1493 = vmatmul.mubr.bf16.vlgmr.msra.gmra.mrb[4].mxu0 %v626_v45  ;;  %1575 = vmatmul.mubr.bf16.vlgmr.msra.gmra.mrb[4].mxu1 %v626_v45  ;;  %v8553_v45 = vld [vmem:[#allocation8 + $0x5e8] ss:$16 sps:$4 sm:$0xff]  }
 0x20e   : > { %2384 = vmatpush1.bf16.msra.mxu0 %v8460_v43  ;;  %2466 = vmatpush1.bf16.msra.mxu1 %v8463_v44  ;;  %v8555_v43 = vld [vmem:[#allocation8 + $0x5ec] ss:$16 sps:$4 sm:$0xff]   ;;  %v8550_v44 = vld [vmem:[#allocation8 + $0x5e0] ss:$16 sps:$4 sm:$0xff]  }
 0x20f   : > { %2385 = vmatprep.subr.bf16.mxu0 %v8468_v23  ;;  %2467 = vmatprep.subr.bf16.mxu1 %v8471_v46  ;;  %v8558_v23 = vld [vmem:[#allocation8 + $0x604] ss:$16 sps:$4 sm:$0xff]   ;;  %v8561_v46 = vld [vmem:[#allocation8 + $0x60c] ss:$16 sps:$4 sm:$0xff]  }
 0x212   : > { %2386 = vmatpush1.bf16.msra.mxu0 %v8466_v47  ;;  %2468 = vmatpush1.bf16.msra.mxu1 %v8469_v48  ;;  %v10139_v47 = vld [vmem:[#allocation9 + $0x4] sm:$0xf] }
 0x213   : > { %2387 = vmatprep.subr.bf16.mxu0 %v8474_v49  ;;  %2469 = vmatprep.subr.bf16.mxu1 %v8477_v50  ;;  %v762_v48 = vrot.slane %v10139_v47, %v10115_v11  ;;  %v766_v49 = vrot.slane %v10139_v47, %v10120_v13  ;;  %v774_v50 = vrot.slane %v10139_v47, %v10123_v14 }
 0x216   : > { %2388 = vmatpush1.bf16.msra.mxu0 %v8472_v51  ;;  %2470 = vmatpush1.bf16.msra.mxu1 %v8475_v52 }
 0x217   : > { %2389 = vmatprep.subr.bf16.mxu0 %v8480_v53  ;;  %2471 = vmatprep.subr.bf16.mxu1 %v8483_v54 }
 0x21a   : > { %2390 = vmatpush1.bf16.msra.mxu0 %v8478_v55  ;;  %2472 = vmatpush1.bf16.msra.mxu1 %v8481_v56 }
 0x21b   : > { %2391 = vmatprep.subr.bf16.mxu0 %v8486_v57  ;;  %2473 = vmatprep.subr.bf16.mxu1 %v8489_v58 }
 0x21e   : > { %2392 = vmatpush1.bf16.msra.mxu0 %v8484_v59  ;;  %2474 = vmatpush1.bf16.msra.mxu1 %v8487_v60 }
 0x21f   : > { %2393 = vmatprep.subr.bf16.mxu0 %v8492_v61  ;;  %2475 = vmatprep.subr.bf16.mxu1 %v8495_v62 }
 0x222   : > { %2394 = vmatpush1.bf16.msra.mxu0 %v8490_v63  ;;  %2476 = vmatpush1.bf16.msra.mxu1 %v8493_v0 }
 0x223   : > { %2395 = vmatprep.subr.bf16.mxu0 %v8498_v1  ;;  %2477 = vmatprep.subr.bf16.mxu1 %v8501_v2  ;;  %v8556_v2 = vld [vmem:[#allocation8 + $0x600] ss:$16 sps:$4 sm:$0xff]  }
 0x226   : > { %2396 = vmatpush1.bf16.msra.mxu0 %v8496_v3  ;;  %2478 = vmatpush1.bf16.msra.mxu1 %v8499_v4  ;;  %v8559_v3 = vld [vmem:[#allocation8 + $0x608] ss:$16 sps:$4 sm:$0xff]  }
 0x227   : > { %2397 = vmatprep.subr.bf16.mxu0 %v8504_v5  ;;  %2479 = vmatprep.subr.bf16.mxu1 %v8507_v6  ;;  %v8564_v5 = vld [vmem:[#allocation8 + $0x624] ss:$16 sps:$4 sm:$0xff]   ;;  %v8567_v6 = vld [vmem:[#allocation8 + $0x62c] ss:$16 sps:$4 sm:$0xff]  }
 0x22a   : > { %2398 = vmatpush1.bf16.msra.mxu0 %v8502_v7  ;;  %2480 = vmatpush1.bf16.msra.mxu1 %v8505_v8  ;;  %v8562_v8 = vld [vmem:[#allocation8 + $0x620] ss:$16 sps:$4 sm:$0xff]  }
 0x22b   : > { %2399 = vmatprep.subr.bf16.mxu0 %v8510_v9  ;;  %2481 = vmatprep.subr.bf16.mxu1 %v8513_v15  ;;  %v8565_v9 = vld [vmem:[#allocation8 + $0x628] ss:$16 sps:$4 sm:$0xff]   ;;  %v8570_v15 = vld [vmem:[#allocation8 + $0x644] ss:$16 sps:$4 sm:$0xff]  }
 0x22e   : > { %2400 = vmatpush1.bf16.msra.mxu0 %v8508_v16  ;;  %2482 = vmatpush1.bf16.msra.mxu1 %v8511_v17  ;;  %v8573_v16 = vld [vmem:[#allocation8 + $0x64c] ss:$16 sps:$4 sm:$0xff]   ;;  %v8568_v17 = vld [vmem:[#allocation8 + $0x640] ss:$16 sps:$4 sm:$0xff]  }
 0x22f   : > { %2401 = vmatprep.subr.bf16.mxu0 %v8516_v18  ;;  %2483 = vmatprep.subr.bf16.mxu1 %v8519_v19  ;;  %v8571_v18 = vld [vmem:[#allocation8 + $0x648] ss:$16 sps:$4 sm:$0xff]   ;;  %v8576_v19 = vld [vmem:[#allocation8 + $0x664] ss:$16 sps:$4 sm:$0xff]  }
 0x232   : > { %2402 = vmatpush1.bf16.msra.mxu0 %v8514_v20  ;;  %2484 = vmatpush1.bf16.msra.mxu1 %v8517_v21  ;;  %v8579_v20 = vld [vmem:[#allocation8 + $0x66c] ss:$16 sps:$4 sm:$0xff]   ;;  %v8574_v21 = vld [vmem:[#allocation8 + $0x660] ss:$16 sps:$4 sm:$0xff]  }
 0x233   : > { %2403 = vmatprep.subr.bf16.mxu0 %v8522_v22  ;;  %2485 = vmatprep.subr.bf16.mxu1 %v8525_v24  ;;  %v8577_v22 = vld [vmem:[#allocation8 + $0x668] ss:$16 sps:$4 sm:$0xff]   ;;  %v8582_v24 = vld [vmem:[#allocation8 + $0x684] ss:$16 sps:$4 sm:$0xff]  }
 0x236   : > { %2404 = vmatpush1.bf16.msra.mxu0 %v8520_v25  ;;  %2486 = vmatpush1.bf16.msra.mxu1 %v8523_v26  ;;  %v8585_v25 = vld [vmem:[#allocation8 + $0x68c] ss:$16 sps:$4 sm:$0xff]   ;;  %v8580_v26 = vld [vmem:[#allocation8 + $0x680] ss:$16 sps:$4 sm:$0xff]  }
 0x237   : > { %2405 = vmatprep.subr.bf16.mxu0 %v8528_v28  ;;  %2487 = vmatprep.subr.bf16.mxu1 %v8531_v29  ;;  %v8583_v28 = vld [vmem:[#allocation8 + $0x688] ss:$16 sps:$4 sm:$0xff]   ;;  %v8588_v29 = vld [vmem:[#allocation8 + $0x6a4] ss:$16 sps:$4 sm:$0xff]  }
 0x23a   : > { %2406 = vmatpush1.bf16.msra.mxu0 %v8526_v30  ;;  %2488 = vmatpush1.bf16.msra.mxu1 %v8529_v31  ;;  %v8591_v30 = vld [vmem:[#allocation8 + $0x6ac] ss:$16 sps:$4 sm:$0xff]   ;;  %v8586_v31 = vld [vmem:[#allocation8 + $0x6a0] ss:$16 sps:$4 sm:$0xff]  }
 0x23b   : > { %2407 = vmatprep.subr.bf16.mxu0 %v8534_v32  ;;  %2489 = vmatprep.subr.bf16.mxu1 %v8537_v33  ;;  %v8589_v32 = vld [vmem:[#allocation8 + $0x6a8] ss:$16 sps:$4 sm:$0xff]   ;;  %v8594_v33 = vld [vmem:[#allocation8 + $0x6c4] ss:$16 sps:$4 sm:$0xff]  }
 0x23e   : > { %2408 = vmatpush1.bf16.msra.mxu0 %v8532_v34  ;;  %2490 = vmatpush1.bf16.msra.mxu1 %v8535_v35  ;;  %v8597_v34 = vld [vmem:[#allocation8 + $0x6cc] ss:$16 sps:$4 sm:$0xff]   ;;  %v8592_v35 = vld [vmem:[#allocation8 + $0x6c0] ss:$16 sps:$4 sm:$0xff]  }
 0x23f   : > { %2409 = vmatprep.subr.bf16.mxu0 %v8540_v36  ;;  %2491 = vmatprep.subr.bf16.mxu1 %v8543_v10  ;;  %v8595_v36 = vld [vmem:[#allocation8 + $0x6c8] ss:$16 sps:$4 sm:$0xff]   ;;  %v8600_v10 = vld [vmem:[#allocation8 + $0x6e4] ss:$16 sps:$4 sm:$0xff]  }
 0x242   : > { %2410 = vmatpush1.bf16.msra.mxu0 %v8538_v37  ;;  %2492 = vmatpush1.bf16.msra.mxu1 %v8541_v38  ;;  %v8603_v37 = vld [vmem:[#allocation8 + $0x6ec] ss:$16 sps:$4 sm:$0xff]   ;;  %v8598_v38 = vld [vmem:[#allocation8 + $0x6e0] ss:$16 sps:$4 sm:$0xff]  }
 0x243   : > { %2411 = vmatprep.subr.bf16.mxu0 %v8546_v39  ;;  %2493 = vmatprep.subr.bf16.mxu1 %v8549_v40  ;;  %v8601_v39 = vld [vmem:[#allocation8 + $0x6e8] ss:$16 sps:$4 sm:$0xff]   ;;  %v8606_v40 = vld [vmem:[#allocation8 + $0x704] ss:$16 sps:$4 sm:$0xff]  }
 0x246   : > { %2412 = vmatpush1.bf16.msra.mxu0 %v8544_v41  ;;  %2494 = vmatpush1.bf16.msra.mxu1 %v8547_v12  ;;  %v8609_v41 = vld [vmem:[#allocation8 + $0x70c] ss:$16 sps:$4 sm:$0xff]   ;;  %v8604_v12 = vld [vmem:[#allocation8 + $0x700] ss:$16 sps:$4 sm:$0xff]  }
 0x247   : > { %2413 = vmatprep.subr.bf16.mxu0 %v8552_v42  ;;  %2495 = vmatprep.subr.bf16.mxu1 %v8555_v43  ;;  %v8607_v42 = vld [vmem:[#allocation8 + $0x708] ss:$16 sps:$4 sm:$0xff]   ;;  %v8612_v43 = vld [vmem:[#allocation8 + $0x724] ss:$16 sps:$4 sm:$0xff]  }
 0x24a   : > { %2414 = vmatpush1.bf16.msra.mxu0 %v8550_v44  ;;  %2496 = vmatpush1.bf16.msra.mxu1 %v8553_v45  ;;  %v8615_v44 = vld [vmem:[#allocation8 + $0x72c] ss:$16 sps:$4 sm:$0xff]   ;;  %v8610_v45 = vld [vmem:[#allocation8 + $0x720] ss:$16 sps:$4 sm:$0xff]  }
 0x24b   : > { %2424 = vmatprep.subr.bf16.mxu0 %v8558_v23  ;;  %2506 = vmatprep.subr.bf16.mxu1 %v8561_v46  ;;  %v8613_v23 = vld [vmem:[#allocation8 + $0x728] ss:$16 sps:$4 sm:$0xff]   ;;  %v8618_v46 = vld [vmem:[#allocation8 + $0x744] ss:$16 sps:$4 sm:$0xff]  }
 0x2e0   : > { %v1494_v51 = vpop.f32.mrb[4].mxu0  ;;  %v10147_v52 = vpop.f32.mrb[4].mxu1 }
 0x2e1   : > { %v8080_v53 = vadd.f32 %v1494_v51, %v762_v48  ;;  %v1496_v54 = vpop.f32.mrb[5].mxu0  ;;  %v1578_v55 = vpop.f32.mrb[5].mxu1  ;;  %v8621_v48 = vld [vmem:[#allocation8 + $0x74c] ss:$16 sps:$4 sm:$0xff]   ;;  %v8624_v51 = vld [vmem:[#allocation8 + $0x764] ss:$16 sps:$4 sm:$0xff]  }
 0x2e2   : > { %v8081_v56 = vadd.f32 %v1496_v54, %v766_v49  ;;  %v8083_v57 = vadd.f32 %v1578_v55, %v774_v50  ;;  %v1498_v58 = vpop.f32.mrb[6].mxu0  ;;  %v1580_v59 = vpop.f32.mrb[6].mxu1  ;;  %v8616_v49 = vld [vmem:[#allocation8 + $0x740] ss:$16 sps:$4 sm:$0xff]   ;;  %v8619_v50 = vld [vmem:[#allocation8 + $0x748] ss:$16 sps:$4 sm:$0xff]  }
 0x2e3   : > { %v1583_v60 = vmax.f32 %v8080_v53, 0.0  ;;  %v1499_v61 = vpop.f32.mrb[7].mxu0  ;;  %v1581_v62 = vpop.f32.mrb[7].mxu1  ;;  %v8627_v53 = vld [vmem:[#allocation8 + $0x76c] ss:$16 sps:$4 sm:$0xff]  }
 0x2e4   : > { %v1584_v63 = vmax.f32 %v8081_v56, 0.0  ;;  %v1586_v0 = vmax.f32 %v8083_v57, 0.0  ;;  %v8622_v54 = vld [vmem:[#allocation8 + $0x760] ss:$16 sps:$4 sm:$0xff]   ;;  %v8625_v55 = vld [vmem:[#allocation8 + $0x768] ss:$16 sps:$4 sm:$0xff]  }
 0x2e5   : > { %v1587_v4 = vpack.c.bf16 %v1583_v60, %v1583_v60  ;;  %v8630_v56 = vld [vmem:[#allocation8 + $0x784] ss:$16 sps:$4 sm:$0xff]   ;;  %v8633_v57 = vld [vmem:[#allocation8 + $0x78c] ss:$16 sps:$4 sm:$0xff]   ;;  %v8628_v58 = vld [vmem:[#allocation8 + $0x780] ss:$16 sps:$4 sm:$0xff]  }
 0x2e6   : > { %v1588_v1 = vpack.c.bf16 %v1584_v63, %v1584_v63  ;;  %v1590_v7 = vpack.c.bf16 %v1586_v0, %v1586_v0  ;;  %v8631_v59 = vld [vmem:[#allocation8 + $0x788] ss:$16 sps:$4 sm:$0xff]   ;;  %v8636_v60 = vld [vmem:[#allocation8 + $0x7a4] ss:$16 sps:$4 sm:$0xff]   ;;  %v8639_v61 = vld [vmem:[#allocation8 + $0x7ac] ss:$16 sps:$4 sm:$0xff]   ;;  %v770_v0 = vrot.slane %v10139_v47, %v10134_v27 }
 0x2e7   : > { %v8634_v62 = vld [vmem:[#allocation8 + $0x7a0] ss:$16 sps:$4 sm:$0xff]   ;;  %v8637_v63 = vld [vmem:[#allocation8 + $0x7a8] ss:$16 sps:$4 sm:$0xff]   ;;  %v8654_v47 = vld [vmem:[#allocation8 + $0x804] ss:$16 sps:$4 sm:$0xff]  }
 0x2e8   : > { %2415 = vmatprep.mubr.bf16.mxu0 %v1588_v1  ;;  %2497 = vmatprep.mubr.bf16.mxu1 %v1588_v1  ;;  %v8642_v1 = vld [vmem:[#allocation8 + $0x7c4] ss:$16 sps:$4 sm:$0xff]  }
 0x2e9   : > { %2416 = vmatmul.mubr.bf16.vlgmr.msra.gmra.mrb[8].mxu0 %v1587_v4  ;;  %2498 = vmatmul.mubr.bf16.vlgmr.msra.gmra.mrb[8].mxu1 %v1587_v4  ;;  %v8643_v4 = vld [vmem:[#allocation8 + $0x7c8] ss:$16 sps:$4 sm:$0xff]  }
 0x2ea   : > { %2425 = vmatpush1.bf16.msra.mxu0 %v8556_v2  ;;  %2507 = vmatpush1.bf16.msra.mxu1 %v8559_v3  ;;  %v8645_v2 = vld [vmem:[#allocation8 + $0x7cc] ss:$16 sps:$4 sm:$0xff]   ;;  %v8640_v3 = vld [vmem:[#allocation8 + $0x7c0] ss:$16 sps:$4 sm:$0xff]  }
 0x2eb   : > { %2456 = vmatprep.mubr.bf16.mxu0 %v1590_v7  ;;  %2538 = vmatprep.mubr.bf16.mxu1 %v1590_v7  ;;  %v8651_v7 = vld [vmem:[#allocation8 + $0x7ec] ss:$16 sps:$4 sm:$0xff]  }
 0x2ec   : > { %2426 = vmatprep.subr.bf16.mxu0 %v8564_v5  ;;  %2508 = vmatprep.subr.bf16.mxu1 %v8567_v6  ;;  %v8082_v5 = vadd.f32 %v10147_v52, %v770_v0  ;;  %v8648_v6 = vld [vmem:[#allocation8 + $0x7e4] ss:$16 sps:$4 sm:$0xff]  }
 0x2ed   : > { %v8660_v52 = vld [vmem:[#allocation8 + $0x824] ss:$16 sps:$4 sm:$0xff]  }
 0x2ee   : > { %2427 = vmatpush1.bf16.msra.mxu0 %v8562_v8  ;;  %2509 = vmatpush1.bf16.msra.mxu1 %v8565_v9  ;;  %v8646_v8 = vld [vmem:[#allocation8 + $0x7e0] ss:$16 sps:$4 sm:$0xff]   ;;  %v8649_v9 = vld [vmem:[#allocation8 + $0x7e8] ss:$16 sps:$4 sm:$0xff]   ;;  %v8726_v0 = vld [vmem:[#allocation8 + $0x984] ss:$16 sps:$4 sm:$0xff]  }
 0x2ef   : > { %2428 = vmatprep.subr.bf16.mxu0 %v8570_v15  ;;  %2510 = vmatprep.subr.bf16.mxu1 %v8573_v16  ;;  %v1585_v15 = vmax.f32 %v8082_v5, 0.0  ;;  %v8657_v16 = vld [vmem:[#allocation8 + $0x80c] ss:$16 sps:$4 sm:$0xff]  }
 0x2f0   : > { %v8735_v5 = vld [vmem:[#allocation8 + $0x9ac] ss:$16 sps:$4 sm:$0xff]  }
 0x2f2   : > { %2429 = vmatpush1.bf16.msra.mxu0 %v8568_v17  ;;  %2511 = vmatpush1.bf16.msra.mxu1 %v8571_v18  ;;  %v8652_v17 = vld [vmem:[#allocation8 + $0x800] ss:$16 sps:$4 sm:$0xff]   ;;  %v8655_v18 = vld [vmem:[#allocation8 + $0x808] ss:$16 sps:$4 sm:$0xff]  }
 0x2f3   : > { %2430 = vmatprep.subr.bf16.mxu0 %v8576_v19  ;;  %2512 = vmatprep.subr.bf16.mxu1 %v8579_v20  ;;  %v1589_v19 = vpack.c.bf16 %v1585_v15, %v1585_v15  ;;  %v8663_v20 = vld [vmem:[#allocation8 + $0x82c] ss:$16 sps:$4 sm:$0xff]   ;;  %v8736_v15 = vld [vmem:[#allocation8 + $0x9c0] ss:$16 sps:$4 sm:$0xff]  }
 0x2f6   : > { %2431 = vmatpush1.bf16.msra.mxu0 %v8574_v21  ;;  %2513 = vmatpush1.bf16.msra.mxu1 %v8577_v22  ;;  %v8658_v21 = vld [vmem:[#allocation8 + $0x820] ss:$16 sps:$4 sm:$0xff]   ;;  %v8661_v22 = vld [vmem:[#allocation8 + $0x828] ss:$16 sps:$4 sm:$0xff]  }
 0x2f7   : > { %2432 = vmatprep.subr.bf16.mxu0 %v8582_v24  ;;  %2514 = vmatprep.subr.bf16.mxu1 %v8585_v25  ;;  %v8666_v24 = vld [vmem:[#allocation8 + $0x844] ss:$16 sps:$4 sm:$0xff]   ;;  %v8669_v25 = vld [vmem:[#allocation8 + $0x84c] ss:$16 sps:$4 sm:$0xff]  }
 0x2fa   : > { %2433 = vmatpush1.bf16.msra.mxu0 %v8580_v26  ;;  %2515 = vmatpush1.bf16.msra.mxu1 %v8583_v28  ;;  %v8664_v26 = vld [vmem:[#allocation8 + $0x840] ss:$16 sps:$4 sm:$0xff]   ;;  %v8667_v28 = vld [vmem:[#allocation8 + $0x848] ss:$16 sps:$4 sm:$0xff]  }
 0x2fb   : > { %2434 = vmatprep.subr.bf16.mxu0 %v8588_v29  ;;  %2516 = vmatprep.subr.bf16.mxu1 %v8591_v30  ;;  %v8672_v29 = vld [vmem:[#allocation8 + $0x864] ss:$16 sps:$4 sm:$0xff]   ;;  %v8675_v30 = vld [vmem:[#allocation8 + $0x86c] ss:$16 sps:$4 sm:$0xff]  }
 0x2fe   : > { %2435 = vmatpush1.bf16.msra.mxu0 %v8586_v31  ;;  %2517 = vmatpush1.bf16.msra.mxu1 %v8589_v32  ;;  %v8670_v31 = vld [vmem:[#allocation8 + $0x860] ss:$16 sps:$4 sm:$0xff]   ;;  %v8673_v32 = vld [vmem:[#allocation8 + $0x868] ss:$16 sps:$4 sm:$0xff]  }
 0x2ff   : > { %2436 = vmatprep.subr.bf16.mxu0 %v8594_v33  ;;  %2518 = vmatprep.subr.bf16.mxu1 %v8597_v34  ;;  %v8678_v33 = vld [vmem:[#allocation8 + $0x884] ss:$16 sps:$4 sm:$0xff]   ;;  %v8681_v34 = vld [vmem:[#allocation8 + $0x88c] ss:$16 sps:$4 sm:$0xff]  }
 0x302   : > { %2437 = vmatpush1.bf16.msra.mxu0 %v8592_v35  ;;  %2519 = vmatpush1.bf16.msra.mxu1 %v8595_v36  ;;  %v8676_v35 = vld [vmem:[#allocation8 + $0x880] ss:$16 sps:$4 sm:$0xff]   ;;  %v8679_v36 = vld [vmem:[#allocation8 + $0x888] ss:$16 sps:$4 sm:$0xff]  }
 0x303   : > { %2438 = vmatprep.subr.bf16.mxu0 %v8600_v10  ;;  %2520 = vmatprep.subr.bf16.mxu1 %v8603_v37  ;;  %v8684_v10 = vld [vmem:[#allocation8 + $0x8a4] ss:$16 sps:$4 sm:$0xff]   ;;  %v8687_v37 = vld [vmem:[#allocation8 + $0x8ac] ss:$16 sps:$4 sm:$0xff]  }
 0x306   : > { %2439 = vmatpush1.bf16.msra.mxu0 %v8598_v38  ;;  %2521 = vmatpush1.bf16.msra.mxu1 %v8601_v39  ;;  %v8682_v38 = vld [vmem:[#allocation8 + $0x8a0] ss:$16 sps:$4 sm:$0xff]   ;;  %v8685_v39 = vld [vmem:[#allocation8 + $0x8a8] ss:$16 sps:$4 sm:$0xff]  }
 0x307   : > { %2440 = vmatprep.subr.bf16.mxu0 %v8606_v40  ;;  %2522 = vmatprep.subr.bf16.mxu1 %v8609_v41  ;;  %v8690_v40 = vld [vmem:[#allocation8 + $0x8c4] ss:$16 sps:$4 sm:$0xff]   ;;  %v8693_v41 = vld [vmem:[#allocation8 + $0x8cc] ss:$16 sps:$4 sm:$0xff]  }
 0x30a   : > { %2441 = vmatpush1.bf16.msra.mxu0 %v8604_v12  ;;  %2523 = vmatpush1.bf16.msra.mxu1 %v8607_v42  ;;  %v8688_v12 = vld [vmem:[#allocation8 + $0x8c0] ss:$16 sps:$4 sm:$0xff]   ;;  %v8691_v42 = vld [vmem:[#allocation8 + $0x8c8] ss:$16 sps:$4 sm:$0xff]  }
 0x30b   : > { %2442 = vmatprep.subr.bf16.mxu0 %v8612_v43  ;;  %2524 = vmatprep.subr.bf16.mxu1 %v8615_v44  ;;  %v8696_v43 = vld [vmem:[#allocation8 + $0x8e4] ss:$16 sps:$4 sm:$0xff]   ;;  %v8699_v44 = vld [vmem:[#allocation8 + $0x8ec] ss:$16 sps:$4 sm:$0xff]  }
 0x30e   : > { %2443 = vmatpush1.bf16.msra.mxu0 %v8610_v45  ;;  %2525 = vmatpush1.bf16.msra.mxu1 %v8613_v23  ;;  %v8694_v45 = vld [vmem:[#allocation8 + $0x8e0] ss:$16 sps:$4 sm:$0xff]   ;;  %v8697_v23 = vld [vmem:[#allocation8 + $0x8e8] ss:$16 sps:$4 sm:$0xff]  }
 0x30f   : > { %2444 = vmatprep.subr.bf16.mxu0 %v8618_v46  ;;  %2526 = vmatprep.subr.bf16.mxu1 %v8621_v48  ;;  %v8702_v46 = vld [vmem:[#allocation8 + $0x904] ss:$16 sps:$4 sm:$0xff]   ;;  %v8705_v48 = vld [vmem:[#allocation8 + $0x90c] ss:$16 sps:$4 sm:$0xff]  }
 0x312   : > { %2445 = vmatpush1.bf16.msra.mxu0 %v8616_v49  ;;  %2527 = vmatpush1.bf16.msra.mxu1 %v8619_v50  ;;  %v8700_v49 = vld [vmem:[#allocation8 + $0x900] ss:$16 sps:$4 sm:$0xff]   ;;  %v8703_v50 = vld [vmem:[#allocation8 + $0x908] ss:$16 sps:$4 sm:$0xff]  }
 0x313   : > { %2446 = vmatprep.subr.bf16.mxu0 %v8624_v51  ;;  %2528 = vmatprep.subr.bf16.mxu1 %v8627_v53  ;;  %v8708_v51 = vld [vmem:[#allocation8 + $0x924] ss:$16 sps:$4 sm:$0xff]   ;;  %v8711_v53 = vld [vmem:[#allocation8 + $0x92c] ss:$16 sps:$4 sm:$0xff]  }
 0x316   : > { %2447 = vmatpush1.bf16.msra.mxu0 %v8622_v54  ;;  %2529 = vmatpush1.bf16.msra.mxu1 %v8625_v55  ;;  %v8706_v54 = vld [vmem:[#allocation8 + $0x920] ss:$16 sps:$4 sm:$0xff]   ;;  %v8709_v55 = vld [vmem:[#allocation8 + $0x928] ss:$16 sps:$4 sm:$0xff]  }
 0x317   : > { %2448 = vmatprep.subr.bf16.mxu0 %v8630_v56  ;;  %2530 = vmatprep.subr.bf16.mxu1 %v8633_v57  ;;  %v8714_v56 = vld [vmem:[#allocation8 + $0x944] ss:$16 sps:$4 sm:$0xff]   ;;  %v8717_v57 = vld [vmem:[#allocation8 + $0x94c] ss:$16 sps:$4 sm:$0xff]  }
 0x31a   : > { %2449 = vmatpush1.bf16.msra.mxu0 %v8628_v58  ;;  %2531 = vmatpush1.bf16.msra.mxu1 %v8631_v59  ;;  %v8712_v58 = vld [vmem:[#allocation8 + $0x940] ss:$16 sps:$4 sm:$0xff]   ;;  %v8715_v59 = vld [vmem:[#allocation8 + $0x948] ss:$16 sps:$4 sm:$0xff]  }
 0x31b   : > { %2450 = vmatprep.subr.bf16.mxu0 %v8636_v60  ;;  %2532 = vmatprep.subr.bf16.mxu1 %v8639_v61  ;;  %v8720_v60 = vld [vmem:[#allocation8 + $0x964] ss:$16 sps:$4 sm:$0xff]   ;;  %v8723_v61 = vld [vmem:[#allocation8 + $0x96c] ss:$16 sps:$4 sm:$0xff]  }
 0x31e   : > { %2451 = vmatpush1.bf16.msra.mxu0 %v8634_v62  ;;  %2533 = vmatpush1.bf16.msra.mxu1 %v8637_v63  ;;  %v8718_v62 = vld [vmem:[#allocation8 + $0x960] ss:$16 sps:$4 sm:$0xff]   ;;  %v8721_v63 = vld [vmem:[#allocation8 + $0x968] ss:$16 sps:$4 sm:$0xff]  }
 0x31f   : > { %2452 = vmatprep.subr.bf16.mxu0 %v8642_v1  ;;  %2534 = vmatprep.subr.bf16.mxu1 %v8645_v2  ;;  %v8729_v1 = vld [vmem:[#allocation8 + $0x98c] ss:$16 sps:$4 sm:$0xff]   ;;  %v8724_v2 = vld [vmem:[#allocation8 + $0x980] ss:$16 sps:$4 sm:$0xff]  }
 0x322   : > { %2453 = vmatpush1.bf16.msra.mxu0 %v8640_v3  ;;  %2535 = vmatpush1.bf16.msra.mxu1 %v8643_v4  ;;  %v8727_v3 = vld [vmem:[#allocation8 + $0x988] ss:$16 sps:$4 sm:$0xff]   ;;  %v8732_v4 = vld [vmem:[#allocation8 + $0x9a4] ss:$16 sps:$4 sm:$0xff]  }
 0x323   : > { %2454 = vmatprep.subr.bf16.mxu0 %v8648_v6  ;;  %2536 = vmatprep.subr.bf16.mxu1 %v8651_v7  ;;  %v8730_v6 = vld [vmem:[#allocation8 + $0x9a0] ss:$16 sps:$4 sm:$0xff]   ;;  %v8733_v7 = vld [vmem:[#allocation8 + $0x9a8] ss:$16 sps:$4 sm:$0xff]  }
 0x326   : > { %2455 = vmatpush1.bf16.msra.mxu0 %v8646_v8  ;;  %2537 = vmatpush1.bf16.msra.mxu1 %v8649_v9  ;;  %v8738_v8 = vld [vmem:[#allocation8 + $0x9c4] ss:$16 sps:$4 sm:$0xff]   ;;  %v8741_v9 = vld [vmem:[#allocation8 + $0x9cc] ss:$16 sps:$4 sm:$0xff]  }
 0x327   : > { %3347 = vmatprep.subr.bf16.mxu0 %v8654_v47  ;;  %3429 = vmatprep.subr.bf16.mxu1 %v8657_v16  ;;  %v8739_v47 = vld [vmem:[#allocation8 + $0x9c8] ss:$16 sps:$4 sm:$0xff]   ;;  %v8744_v16 = vld [vmem:[#allocation8 + $0x9e4] ss:$16 sps:$4 sm:$0xff]  }
 0x329   : > { %2457 = vmatmul.mubr.bf16.vlgmr.msra.gmra.mrb[8].mxu0 %v1589_v19  ;;  %2539 = vmatmul.mubr.bf16.vlgmr.msra.gmra.mrb[8].mxu1 %v1589_v19  ;;  %v8745_v19 = vld [vmem:[#allocation8 + $0x9e8] ss:$16 sps:$4 sm:$0xff]  }
 0x32a   : > { %3348 = vmatpush1.bf16.msra.mxu0 %v8652_v17  ;;  %3430 = vmatpush1.bf16.msra.mxu1 %v8655_v18  ;;  %v8747_v17 = vld [vmem:[#allocation8 + $0x9ec] ss:$16 sps:$4 sm:$0xff]   ;;  %v8742_v18 = vld [vmem:[#allocation8 + $0x9e0] ss:$16 sps:$4 sm:$0xff]  }
 0x32b   : > { %3349 = vmatprep.subr.bf16.mxu0 %v8660_v52  ;;  %3431 = vmatprep.subr.bf16.mxu1 %v8663_v20  ;;  %v8750_v52 = vld [vmem:[#allocation8 + $0xa04] ss:$16 sps:$4 sm:$0xff]   ;;  %v8753_v20 = vld [vmem:[#allocation8 + $0xa0c] ss:$16 sps:$4 sm:$0xff]  }
 0x32e   : > { %3350 = vmatpush1.bf16.msra.mxu0 %v8658_v21  ;;  %3432 = vmatpush1.bf16.msra.mxu1 %v8661_v22  ;;  %v10152_v21 = vld [vmem:[#allocation9 + $0x8] sm:$0xf] }
 0x32f   : > { %3351 = vmatprep.subr.bf16.mxu0 %v8666_v24  ;;  %3433 = vmatprep.subr.bf16.mxu1 %v8669_v25  ;;  %v1726_v22 = vrot.slane %v10152_v21, %v10115_v11  ;;  %v1730_v24 = vrot.slane %v10152_v21, %v10120_v13  ;;  %v1738_v25 = vrot.slane %v10152_v21, %v10123_v14 }
 0x332   : > { %3352 = vmatpush1.bf16.msra.mxu0 %v8664_v26  ;;  %3434 = vmatpush1.bf16.msra.mxu1 %v8667_v28 }
 0x333   : > { %3353 = vmatprep.subr.bf16.mxu0 %v8672_v29  ;;  %3435 = vmatprep.subr.bf16.mxu1 %v8675_v30 }
 0x336   : > { %3354 = vmatpush1.bf16.msra.mxu0 %v8670_v31  ;;  %3436 = vmatpush1.bf16.msra.mxu1 %v8673_v32 }
 0x337   : > { %3355 = vmatprep.subr.bf16.mxu0 %v8678_v33  ;;  %3437 = vmatprep.subr.bf16.mxu1 %v8681_v34 }
 0x33a   : > { %3356 = vmatpush1.bf16.msra.mxu0 %v8676_v35  ;;  %3438 = vmatpush1.bf16.msra.mxu1 %v8679_v36 }
 0x33b   : > { %3357 = vmatprep.subr.bf16.mxu0 %v8684_v10  ;;  %3439 = vmatprep.subr.bf16.mxu1 %v8687_v37 }
 0x33e   : > { %3358 = vmatpush1.bf16.msra.mxu0 %v8682_v38  ;;  %3440 = vmatpush1.bf16.msra.mxu1 %v8685_v39 }
 0x33f   : > { %3359 = vmatprep.subr.bf16.mxu0 %v8690_v40  ;;  %3441 = vmatprep.subr.bf16.mxu1 %v8693_v41  ;;  %v8748_v41 = vld [vmem:[#allocation8 + $0xa00] ss:$16 sps:$4 sm:$0xff]  }
 0x342   : > { %3360 = vmatpush1.bf16.msra.mxu0 %v8688_v12  ;;  %3442 = vmatpush1.bf16.msra.mxu1 %v8691_v42  ;;  %v8751_v12 = vld [vmem:[#allocation8 + $0xa08] ss:$16 sps:$4 sm:$0xff]  }
 0x343   : > { %3361 = vmatprep.subr.bf16.mxu0 %v8696_v43  ;;  %3443 = vmatprep.subr.bf16.mxu1 %v8699_v44  ;;  %v8756_v43 = vld [vmem:[#allocation8 + $0xa24] ss:$16 sps:$4 sm:$0xff]   ;;  %v8759_v44 = vld [vmem:[#allocation8 + $0xa2c] ss:$16 sps:$4 sm:$0xff]  }
 0x346   : > { %3362 = vmatpush1.bf16.msra.mxu0 %v8694_v45  ;;  %3444 = vmatpush1.bf16.msra.mxu1 %v8697_v23  ;;  %v8754_v23 = vld [vmem:[#allocation8 + $0xa20] ss:$16 sps:$4 sm:$0xff]  }
 0x347   : > { %3363 = vmatprep.subr.bf16.mxu0 %v8702_v46  ;;  %3445 = vmatprep.subr.bf16.mxu1 %v8705_v48  ;;  %v8757_v46 = vld [vmem:[#allocation8 + $0xa28] ss:$16 sps:$4 sm:$0xff]   ;;  %v8762_v48 = vld [vmem:[#allocation8 + $0xa44] ss:$16 sps:$4 sm:$0xff]  }
 0x34a   : > { %3364 = vmatpush1.bf16.msra.mxu0 %v8700_v49  ;;  %3446 = vmatpush1.bf16.msra.mxu1 %v8703_v50  ;;  %v8765_v49 = vld [vmem:[#allocation8 + $0xa4c] ss:$16 sps:$4 sm:$0xff]   ;;  %v8760_v50 = vld [vmem:[#allocation8 + $0xa40] ss:$16 sps:$4 sm:$0xff]  }
 0x34b   : > { %3365 = vmatprep.subr.bf16.mxu0 %v8708_v51  ;;  %3447 = vmatprep.subr.bf16.mxu1 %v8711_v53  ;;  %v8763_v51 = vld [vmem:[#allocation8 + $0xa48] ss:$16 sps:$4 sm:$0xff]   ;;  %v8768_v53 = vld [vmem:[#allocation8 + $0xa64] ss:$16 sps:$4 sm:$0xff]  }
 0x34e   : > { %3366 = vmatpush1.bf16.msra.mxu0 %v8706_v54  ;;  %3448 = vmatpush1.bf16.msra.mxu1 %v8709_v55  ;;  %v8771_v54 = vld [vmem:[#allocation8 + $0xa6c] ss:$16 sps:$4 sm:$0xff]   ;;  %v8766_v55 = vld [vmem:[#allocation8 + $0xa60] ss:$16 sps:$4 sm:$0xff]  }
 0x34f   : > { %3367 = vmatprep.subr.bf16.mxu0 %v8714_v56  ;;  %3449 = vmatprep.subr.bf16.mxu1 %v8717_v57  ;;  %v8769_v56 = vld [vmem:[#allocation8 + $0xa68] ss:$16 sps:$4 sm:$0xff]   ;;  %v8774_v57 = vld [vmem:[#allocation8 + $0xa84] ss:$16 sps:$4 sm:$0xff]  }
 0x352   : > { %3368 = vmatpush1.bf16.msra.mxu0 %v8712_v58  ;;  %3450 = vmatpush1.bf16.msra.mxu1 %v8715_v59  ;;  %v8777_v58 = vld [vmem:[#allocation8 + $0xa8c] ss:$16 sps:$4 sm:$0xff]   ;;  %v8772_v59 = vld [vmem:[#allocation8 + $0xa80] ss:$16 sps:$4 sm:$0xff]  }
 0x353   : > { %3369 = vmatprep.subr.bf16.mxu0 %v8720_v60  ;;  %3451 = vmatprep.subr.bf16.mxu1 %v8723_v61  ;;  %v8775_v60 = vld [vmem:[#allocation8 + $0xa88] ss:$16 sps:$4 sm:$0xff]   ;;  %v8780_v61 = vld [vmem:[#allocation8 + $0xaa4] ss:$16 sps:$4 sm:$0xff]  }
 0x356   : > { %3370 = vmatpush1.bf16.msra.mxu0 %v8718_v62  ;;  %3452 = vmatpush1.bf16.msra.mxu1 %v8721_v63  ;;  %v8783_v62 = vld [vmem:[#allocation8 + $0xaac] ss:$16 sps:$4 sm:$0xff]   ;;  %v8778_v63 = vld [vmem:[#allocation8 + $0xaa0] ss:$16 sps:$4 sm:$0xff]  }
 0x357   : > { %3371 = vmatprep.subr.bf16.mxu0 %v8726_v0  ;;  %3453 = vmatprep.subr.bf16.mxu1 %v8729_v1  ;;  %v8781_v0 = vld [vmem:[#allocation8 + $0xaa8] ss:$16 sps:$4 sm:$0xff]   ;;  %v8786_v1 = vld [vmem:[#allocation8 + $0xac4] ss:$16 sps:$4 sm:$0xff]  }
 0x35a   : > { %3372 = vmatpush1.bf16.msra.mxu0 %v8724_v2  ;;  %3454 = vmatpush1.bf16.msra.mxu1 %v8727_v3  ;;  %v8789_v2 = vld [vmem:[#allocation8 + $0xacc] ss:$16 sps:$4 sm:$0xff]   ;;  %v8784_v3 = vld [vmem:[#allocation8 + $0xac0] ss:$16 sps:$4 sm:$0xff]  }
 0x35b   : > { %3373 = vmatprep.subr.bf16.mxu0 %v8732_v4  ;;  %3455 = vmatprep.subr.bf16.mxu1 %v8735_v5  ;;  %v8787_v4 = vld [vmem:[#allocation8 + $0xac8] ss:$16 sps:$4 sm:$0xff]   ;;  %v8792_v5 = vld [vmem:[#allocation8 + $0xae4] ss:$16 sps:$4 sm:$0xff]  }
 0x35e   : > { %3374 = vmatpush1.bf16.msra.mxu0 %v8730_v6  ;;  %3456 = vmatpush1.bf16.msra.mxu1 %v8733_v7  ;;  %v8795_v6 = vld [vmem:[#allocation8 + $0xaec] ss:$16 sps:$4 sm:$0xff]   ;;  %v8790_v7 = vld [vmem:[#allocation8 + $0xae0] ss:$16 sps:$4 sm:$0xff]  }
 0x35f   : > { %3375 = vmatprep.subr.bf16.mxu0 %v8738_v8  ;;  %3457 = vmatprep.subr.bf16.mxu1 %v8741_v9  ;;  %v8793_v8 = vld [vmem:[#allocation8 + $0xae8] ss:$16 sps:$4 sm:$0xff]   ;;  %v8798_v9 = vld [vmem:[#allocation8 + $0xb04] ss:$16 sps:$4 sm:$0xff]  }
 0x362   : > { %3376 = vmatpush1.bf16.msra.mxu0 %v8736_v15  ;;  %3458 = vmatpush1.bf16.msra.mxu1 %v8739_v47  ;;  %v8801_v15 = vld [vmem:[#allocation8 + $0xb0c] ss:$16 sps:$4 sm:$0xff]   ;;  %v8796_v47 = vld [vmem:[#allocation8 + $0xb00] ss:$16 sps:$4 sm:$0xff]  }
 0x363   : > { %3377 = vmatprep.subr.bf16.mxu0 %v8744_v16  ;;  %3459 = vmatprep.subr.bf16.mxu1 %v8747_v17  ;;  %v8799_v16 = vld [vmem:[#allocation8 + $0xb08] ss:$16 sps:$4 sm:$0xff]   ;;  %v8804_v17 = vld [vmem:[#allocation8 + $0xb24] ss:$16 sps:$4 sm:$0xff]  }
 0x366   : > { %3378 = vmatpush1.bf16.msra.mxu0 %v8742_v18  ;;  %3460 = vmatpush1.bf16.msra.mxu1 %v8745_v19  ;;  %v8807_v18 = vld [vmem:[#allocation8 + $0xb2c] ss:$16 sps:$4 sm:$0xff]   ;;  %v8802_v19 = vld [vmem:[#allocation8 + $0xb20] ss:$16 sps:$4 sm:$0xff]  }
 0x367   : > { %3388 = vmatprep.subr.bf16.mxu0 %v8750_v52  ;;  %3470 = vmatprep.subr.bf16.mxu1 %v8753_v20  ;;  %v8805_v52 = vld [vmem:[#allocation8 + $0xb28] ss:$16 sps:$4 sm:$0xff]   ;;  %v8810_v20 = vld [vmem:[#allocation8 + $0xb44] ss:$16 sps:$4 sm:$0xff]  }
 0x3fc   : > { %v2458_v26 = vpop.f32.mrb[8].mxu0  ;;  %v10160_v28 = vpop.f32.mrb[8].mxu1 }
 0x3fd   : > { %v8084_v29 = vadd.f32 %v2458_v26, %v1726_v22  ;;  %v2460_v30 = vpop.f32.mrb[9].mxu0  ;;  %v2542_v31 = vpop.f32.mrb[9].mxu1  ;;  %v8813_v22 = vld [vmem:[#allocation8 + $0xb4c] ss:$16 sps:$4 sm:$0xff]   ;;  %v8816_v26 = vld [vmem:[#allocation8 + $0xb64] ss:$16 sps:$4 sm:$0xff]  }
 0x3fe   : > { %v8085_v32 = vadd.f32 %v2460_v30, %v1730_v24  ;;  %v8087_v33 = vadd.f32 %v2542_v31, %v1738_v25  ;;  %v2462_v34 = vpop.f32.mrb[10].mxu0  ;;  %v2544_v35 = vpop.f32.mrb[10].mxu1  ;;  %v8808_v24 = vld [vmem:[#allocation8 + $0xb40] ss:$16 sps:$4 sm:$0xff]   ;;  %v8811_v25 = vld [vmem:[#allocation8 + $0xb48] ss:$16 sps:$4 sm:$0xff]  }
 0x3ff   : > { %v2547_v36 = vmax.f32 %v8084_v29, 0.0  ;;  %v2463_v10 = vpop.f32.mrb[11].mxu0  ;;  %v2545_v37 = vpop.f32.mrb[11].mxu1  ;;  %v8819_v29 = vld [vmem:[#allocation8 + $0xb6c] ss:$16 sps:$4 sm:$0xff]  }
 0x400   : > { %v2548_v38 = vmax.f32 %v8085_v32, 0.0  ;;  %v2550_v39 = vmax.f32 %v8087_v33, 0.0  ;;  %v8814_v30 = vld [vmem:[#allocation8 + $0xb60] ss:$16 sps:$4 sm:$0xff]   ;;  %v8817_v31 = vld [vmem:[#allocation8 + $0xb68] ss:$16 sps:$4 sm:$0xff]  }
 0x401   : > { %v2551_v42 = vpack.c.bf16 %v2547_v36, %v2547_v36  ;;  %v8822_v32 = vld [vmem:[#allocation8 + $0xb84] ss:$16 sps:$4 sm:$0xff]   ;;  %v8825_v33 = vld [vmem:[#allocation8 + $0xb8c] ss:$16 sps:$4 sm:$0xff]   ;;  %v8820_v34 = vld [vmem:[#allocation8 + $0xb80] ss:$16 sps:$4 sm:$0xff]  }
 0x402   : > { %v2552_v40 = vpack.c.bf16 %v2548_v38, %v2548_v38  ;;  %v2554_v45 = vpack.c.bf16 %v2550_v39, %v2550_v39  ;;  %v8823_v35 = vld [vmem:[#allocation8 + $0xb88] ss:$16 sps:$4 sm:$0xff]   ;;  %v8828_v36 = vld [vmem:[#allocation8 + $0xba4] ss:$16 sps:$4 sm:$0xff]   ;;  %v8831_v10 = vld [vmem:[#allocation8 + $0xbac] ss:$16 sps:$4 sm:$0xff]   ;;  %v1734_v39 = vrot.slane %v10152_v21, %v10134_v27 }
 0x403   : > { %v8826_v37 = vld [vmem:[#allocation8 + $0xba0] ss:$16 sps:$4 sm:$0xff]   ;;  %v8829_v38 = vld [vmem:[#allocation8 + $0xba8] ss:$16 sps:$4 sm:$0xff]  }
 0x404   : > { %3379 = vmatprep.mubr.bf16.mxu0 %v2552_v40  ;;  %3461 = vmatprep.mubr.bf16.mxu1 %v2552_v40  ;;  %v8834_v40 = vld [vmem:[#allocation8 + $0xbc4] ss:$16 sps:$4 sm:$0xff]  }
 0x405   : > { %3380 = vmatmul.mubr.bf16.vlgmr.msra.gmra.mrb[12].mxu0 %v2551_v42  ;;  %3462 = vmatmul.mubr.bf16.vlgmr.msra.gmra.mrb[12].mxu1 %v2551_v42  ;;  %v8835_v42 = vld [vmem:[#allocation8 + $0xbc8] ss:$16 sps:$4 sm:$0xff]  }
 0x406   : > { %3389 = vmatpush1.bf16.msra.mxu0 %v8748_v41  ;;  %3471 = vmatpush1.bf16.msra.mxu1 %v8751_v12  ;;  %v8837_v41 = vld [vmem:[#allocation8 + $0xbcc] ss:$16 sps:$4 sm:$0xff]   ;;  %v8832_v12 = vld [vmem:[#allocation8 + $0xbc0] ss:$16 sps:$4 sm:$0xff]  }
 0x407   : > { %3420 = vmatprep.mubr.bf16.mxu0 %v2554_v45  ;;  %3502 = vmatprep.mubr.bf16.mxu1 %v2554_v45  ;;  %v8843_v45 = vld [vmem:[#allocation8 + $0xbec] ss:$16 sps:$4 sm:$0xff]  }
 0x408   : > { %3390 = vmatprep.subr.bf16.mxu0 %v8756_v43  ;;  %3472 = vmatprep.subr.bf16.mxu1 %v8759_v44  ;;  %v8086_v43 = vadd.f32 %v10160_v28, %v1734_v39  ;;  %v8840_v44 = vld [vmem:[#allocation8 + $0xbe4] ss:$16 sps:$4 sm:$0xff]   ;;  %v2685_v28 = vld [vmem:[#allocation9 + $0xc] sm:$0xf] }
 0x40a   : > { %3391 = vmatpush1.bf16.msra.mxu0 %v8754_v23  ;;  %3473 = vmatpush1.bf16.msra.mxu1 %v8757_v46  ;;  %v8838_v23 = vld [vmem:[#allocation8 + $0xbe0] ss:$16 sps:$4 sm:$0xff]   ;;  %v8841_v46 = vld [vmem:[#allocation8 + $0xbe8] ss:$16 sps:$4 sm:$0xff]  }
 0x40b   : > { %3392 = vmatprep.subr.bf16.mxu0 %v8762_v48  ;;  %3474 = vmatprep.subr.bf16.mxu1 %v8765_v49  ;;  %v2549_v48 = vmax.f32 %v8086_v43, 0.0  ;;  %v9749_v49 = vmov 0.0  }
 0x40c   : > { %3534 = vst.msk [vmem:[#allocation14] sm:$0xff] %vm3533_vm1, %v9749_v49 }
 0x40d   : > { %v2553_v21 = vpack.c.bf16 %v2549_v48, %v2549_v48 }
 0x40e   : > { %3393 = vmatpush1.bf16.msra.mxu0 %v8760_v50  ;;  %3475 = vmatpush1.bf16.msra.mxu1 %v8763_v51  ;;  %v2690_v50 = vrot.slane %v2685_v28, %v10115_v11  ;;  %v2698_v51 = vrot.slane %v2685_v28, %v10134_v27 }
 0x40f   : > { %3394 = vmatprep.subr.bf16.mxu0 %v8768_v53  ;;  %3476 = vmatprep.subr.bf16.mxu1 %v8771_v54  ;;  %v2694_v53 = vrot.slane %v2685_v28, %v10120_v13  ;;  %v2702_v54 = vrot.slane %v2685_v28, %v10123_v14 }
 0x412   : > { %3395 = vmatpush1.bf16.msra.mxu0 %v8766_v55  ;;  %3477 = vmatpush1.bf16.msra.mxu1 %v8769_v56 }
 0x413   : > { %3396 = vmatprep.subr.bf16.mxu0 %v8774_v57  ;;  %3478 = vmatprep.subr.bf16.mxu1 %v8777_v58 }
 0x416   : > { %3397 = vmatpush1.bf16.msra.mxu0 %v8772_v59  ;;  %3479 = vmatpush1.bf16.msra.mxu1 %v8775_v60 }
 0x417   : > { %3398 = vmatprep.subr.bf16.mxu0 %v8780_v61  ;;  %3480 = vmatprep.subr.bf16.mxu1 %v8783_v62 }
 0x41a   : > { %3399 = vmatpush1.bf16.msra.mxu0 %v8778_v63  ;;  %3481 = vmatpush1.bf16.msra.mxu1 %v8781_v0 }
 0x41b   : > { %3400 = vmatprep.subr.bf16.mxu0 %v8786_v1  ;;  %3482 = vmatprep.subr.bf16.mxu1 %v8789_v2 }
 0x41e   : > { %3401 = vmatpush1.bf16.msra.mxu0 %v8784_v3  ;;  %3483 = vmatpush1.bf16.msra.mxu1 %v8787_v4 }
 0x41f   : > { %3402 = vmatprep.subr.bf16.mxu0 %v8792_v5  ;;  %3484 = vmatprep.subr.bf16.mxu1 %v8795_v6 }
 0x422   : > { %3403 = vmatpush1.bf16.msra.mxu0 %v8790_v7  ;;  %3485 = vmatpush1.bf16.msra.mxu1 %v8793_v8 }
 0x423   : > { %3404 = vmatprep.subr.bf16.mxu0 %v8798_v9  ;;  %3486 = vmatprep.subr.bf16.mxu1 %v8801_v15 }
 0x426   : > { %3405 = vmatpush1.bf16.msra.mxu0 %v8796_v47  ;;  %3487 = vmatpush1.bf16.msra.mxu1 %v8799_v16 }
 0x427   : > { %3406 = vmatprep.subr.bf16.mxu0 %v8804_v17  ;;  %3488 = vmatprep.subr.bf16.mxu1 %v8807_v18 }
 0x42a   : > { %3407 = vmatpush1.bf16.msra.mxu0 %v8802_v19  ;;  %3489 = vmatpush1.bf16.msra.mxu1 %v8805_v52 }
 0x42b   : > { %3408 = vmatprep.subr.bf16.mxu0 %v8810_v20  ;;  %3490 = vmatprep.subr.bf16.mxu1 %v8813_v22 }
 0x42e   : > { %3409 = vmatpush1.bf16.msra.mxu0 %v8808_v24  ;;  %3491 = vmatpush1.bf16.msra.mxu1 %v8811_v25 }
 0x42f   : > { %3410 = vmatprep.subr.bf16.mxu0 %v8816_v26  ;;  %3492 = vmatprep.subr.bf16.mxu1 %v8819_v29 }
 0x432   : > { %3411 = vmatpush1.bf16.msra.mxu0 %v8814_v30  ;;  %3493 = vmatpush1.bf16.msra.mxu1 %v8817_v31 }
 0x433   : > { %3412 = vmatprep.subr.bf16.mxu0 %v8822_v32  ;;  %3494 = vmatprep.subr.bf16.mxu1 %v8825_v33 }
 0x436   : > { %3413 = vmatpush1.bf16.msra.mxu0 %v8820_v34  ;;  %3495 = vmatpush1.bf16.msra.mxu1 %v8823_v35 }
 0x437   : > { %3414 = vmatprep.subr.bf16.mxu0 %v8828_v36  ;;  %3496 = vmatprep.subr.bf16.mxu1 %v8831_v10 }
 0x43a   : > { %3415 = vmatpush1.bf16.msra.mxu0 %v8826_v37  ;;  %3497 = vmatpush1.bf16.msra.mxu1 %v8829_v38 }
 0x43b   : > { %3416 = vmatprep.subr.bf16.mxu0 %v8834_v40  ;;  %3498 = vmatprep.subr.bf16.mxu1 %v8837_v41 }
 0x43e   : > { %3417 = vmatpush1.bf16.msra.mxu0 %v8832_v12  ;;  %3499 = vmatpush1.bf16.msra.mxu1 %v8835_v42 }
 0x43f   : > { %3418 = vmatprep.subr.bf16.mxu0 %v8840_v44  ;;  %3500 = vmatprep.subr.bf16.mxu1 %v8843_v45 }
 0x442   : > { %3419 = vmatpush1.bf16.msra.mxu0 %v8838_v23  ;;  %3501 = vmatpush1.bf16.msra.mxu1 %v8841_v46 }
 0x445   : > { %3421 = vmatmul.mubr.bf16.vlgmr.msra.gmra.mrb[12].mxu0 %v2553_v21  ;;  %3503 = vmatmul.mubr.bf16.vlgmr.msra.gmra.mrb[12].mxu1 %v2553_v21 }
 0x518   : > { %v3422_v55 = vpop.f32.mrb[12].mxu0  ;;  %v3504_v56 = vpop.f32.mrb[12].mxu1 }
 0x519   : > { %v8088_v57 = vadd.f32 %v3422_v55, %v2690_v50  ;;  %v8090_v58 = vadd.f32 %v3504_v56, %v2698_v51  ;;  %v3424_v59 = vpop.f32.mrb[13].mxu0  ;;  %v3506_v60 = vpop.f32.mrb[13].mxu1 }
 0x51a   : > { %v8089_v61 = vadd.f32 %v3424_v59, %v2694_v53  ;;  %v8091_v62 = vadd.f32 %v3506_v60, %v2702_v54  ;;  %v3426_v63 = vpop.f32.mrb[14].mxu0  ;;  %v3508_v0 = vpop.f32.mrb[14].mxu1 }
 0x51b   : > { %v3511_v1 = vmax.f32 %v8088_v57, 0.0  ;;  %v3513_v2 = vmax.f32 %v8090_v58, 0.0  ;;  %v3427_v3 = vpop.f32.mrb[15].mxu0  ;;  %v3509_v11 = vpop.f32.mrb[15].mxu1 }
 0x51c   : > { %v3512_v4 = vmax.f32 %v8089_v61, 0.0  ;;  %v3514_v27 = vmax.f32 %v8091_v62, 0.0 }
 0x51e   : > { %v8034_v5 = vpack.c.bf16 %v3512_v4, %v3511_v1  ;;  %v8035_v13 = vpack.c.bf16 %v3514_v27, %v3513_v2 }
 0x520   : > { %3531 = vst [vmem:[#allocation2] sm:$0xff] %v8034_v5  ;;  %3532 = vst [vmem:[#allocation2 + $0x8] sm:$0xff] %v8035_v13 }
 0x521 PF: > { %v8845_v14 = vld [vmem:[%s10093_s5 + $0x4] ss:$16 sps:$4 sm:$0xff]   ;;  %v8847_v6 = vld [vmem:[%s10093_s5 + $0xc] ss:$16 sps:$4 sm:$0xff]   ;;  %v8849_v7 = vld [vmem:[%s10093_s5] ss:$16 sps:$4 sm:$0xff]  }
 0x522   : > { %4341 = vmatprep.subr.bf16.mxu0 %v8845_v14  ;;  %v8850_v8 = vld [vmem:[%s10093_s5 + $0x8] ss:$16 sps:$4 sm:$0xff]   ;;  %4423 = vmatprep.subr.bf16.mxu1 %v8847_v6  ;;  %v8851_v9 = vld [vmem:[%s10093_s5 + $0x24] ss:$16 sps:$4 sm:$0xff]   ;;  %v8853_v15 = vld [vmem:[%s10093_s5 + $0x2c] ss:$16 sps:$4 sm:$0xff]  }
 0x523   : > { %4342 = vmatpush1.bf16.msra.mxu0 %v8849_v7  ;;  %4424 = vmatpush1.bf16.msra.mxu1 %v8850_v8  ;;  %v8855_v47 = vld [vmem:[%s10093_s5 + $0x20] ss:$16 sps:$4 sm:$0xff]   ;;  %v8856_v16 = vld [vmem:[%s10093_s5 + $0x28] ss:$16 sps:$4 sm:$0xff]   ;;  %v8857_v17 = vld [vmem:[%s10093_s5 + $0x44] ss:$16 sps:$4 sm:$0xff]  }
 0x524   : > { %4343 = vmatprep.subr.bf16.mxu0 %v8851_v9  ;;  %4425 = vmatprep.subr.bf16.mxu1 %v8853_v15  ;;  %v8859_v18 = vld [vmem:[%s10093_s5 + $0x4c] ss:$16 sps:$4 sm:$0xff]   ;;  %v8861_v19 = vld [vmem:[%s10093_s5 + $0x40] ss:$16 sps:$4 sm:$0xff]   ;;  %v8862_v52 = vld [vmem:[%s10093_s5 + $0x48] ss:$16 sps:$4 sm:$0xff]  }
 0x525   : > { %v8863_v20 = vld [vmem:[%s10093_s5 + $0x64] ss:$16 sps:$4 sm:$0xff]   ;;  %v8865_v22 = vld [vmem:[%s10093_s5 + $0x6c] ss:$16 sps:$4 sm:$0xff]   ;;  %v8867_v24 = vld [vmem:[%s10093_s5 + $0x60] ss:$16 sps:$4 sm:$0xff]  }
 0x526   : > { %v8868_v25 = vld [vmem:[%s10093_s5 + $0x68] ss:$16 sps:$4 sm:$0xff]   ;;  %v8869_v26 = vld [vmem:[%s10093_s5 + $0x84] ss:$16 sps:$4 sm:$0xff]   ;;  %v8871_v29 = vld [vmem:[%s10093_s5 + $0x8c] ss:$16 sps:$4 sm:$0xff]  }
 0x527   : > { %4344 = vmatpush1.bf16.msra.mxu0 %v8855_v47  ;;  %4426 = vmatpush1.bf16.msra.mxu1 %v8856_v16  ;;  %v8873_v30 = vld [vmem:[%s10093_s5 + $0x80] ss:$16 sps:$4 sm:$0xff]   ;;  %v8874_v31 = vld [vmem:[%s10093_s5 + $0x88] ss:$16 sps:$4 sm:$0xff]   ;;  %v8875_v32 = vld [vmem:[%s10093_s5 + $0xa4] ss:$16 sps:$4 sm:$0xff]  }
 0x528   : > { %4345 = vmatprep.subr.bf16.mxu0 %v8857_v17  ;;  %4427 = vmatprep.subr.bf16.mxu1 %v8859_v18  ;;  %v8877_v33 = vld [vmem:[%s10093_s5 + $0xac] ss:$16 sps:$4 sm:$0xff]   ;;  %v8879_v34 = vld [vmem:[%s10093_s5 + $0xa0] ss:$16 sps:$4 sm:$0xff]   ;;  %v8880_v35 = vld [vmem:[%s10093_s5 + $0xa8] ss:$16 sps:$4 sm:$0xff]  }
 0x529   : > { %v8881_v36 = vld [vmem:[%s10093_s5 + $0xc4] ss:$16 sps:$4 sm:$0xff]   ;;  %v8883_v10 = vld [vmem:[%s10093_s5 + $0xcc] ss:$16 sps:$4 sm:$0xff]   ;;  %v8885_v37 = vld [vmem:[%s10093_s5 + $0xc0] ss:$16 sps:$4 sm:$0xff]  }
 0x52a   : > { %v8886_v38 = vld [vmem:[%s10093_s5 + $0xc8] ss:$16 sps:$4 sm:$0xff]   ;;  %v8887_v39 = vld [vmem:[%s10093_s5 + $0xe4] ss:$16 sps:$4 sm:$0xff]   ;;  %v8889_v40 = vld [vmem:[%s10093_s5 + $0xec] ss:$16 sps:$4 sm:$0xff]  }
 0x52b   : > { %4346 = vmatpush1.bf16.msra.mxu0 %v8861_v19  ;;  %4428 = vmatpush1.bf16.msra.mxu1 %v8862_v52  ;;  %v8891_v41 = vld [vmem:[%s10093_s5 + $0xe0] ss:$16 sps:$4 sm:$0xff]   ;;  %v8892_v12 = vld [vmem:[%s10093_s5 + $0xe8] ss:$16 sps:$4 sm:$0xff]   ;;  %v8893_v42 = vld [vmem:[%s10093_s5 + $0x104] ss:$16 sps:$4 sm:$0xff]  }
 0x52c   : > { %4347 = vmatprep.subr.bf16.mxu0 %v8863_v20  ;;  %4429 = vmatprep.subr.bf16.mxu1 %v8865_v22  ;;  %v8895_v43 = vld [vmem:[%s10093_s5 + $0x10c] ss:$16 sps:$4 sm:$0xff]   ;;  %v8897_v44 = vld [vmem:[%s10093_s5 + $0x100] ss:$16 sps:$4 sm:$0xff]   ;;  %v8898_v45 = vld [vmem:[%s10093_s5 + $0x108] ss:$16 sps:$4 sm:$0xff]  }
 0x52d   : > { %v8899_v23 = vld [vmem:[%s10093_s5 + $0x124] ss:$16 sps:$4 sm:$0xff]   ;;  %v8901_v46 = vld [vmem:[%s10093_s5 + $0x12c] ss:$16 sps:$4 sm:$0xff]   ;;  %v8903_v48 = vld [vmem:[%s10093_s5 + $0x120] ss:$16 sps:$4 sm:$0xff]  }
 0x52e   : > { %v8904_v21 = vld [vmem:[%s10093_s5 + $0x128] ss:$16 sps:$4 sm:$0xff]   ;;  %v8905_v49 = vld [vmem:[%s10093_s5 + $0x144] ss:$16 sps:$4 sm:$0xff]   ;;  %v8907_v28 = vld [vmem:[%s10093_s5 + $0x14c] ss:$16 sps:$4 sm:$0xff]  }
 0x52f   : > { %4348 = vmatpush1.bf16.msra.mxu0 %v8867_v24  ;;  %4430 = vmatpush1.bf16.msra.mxu1 %v8868_v25  ;;  %v8909_v50 = vld [vmem:[%s10093_s5 + $0x140] ss:$16 sps:$4 sm:$0xff]   ;;  %v8910_v51 = vld [vmem:[%s10093_s5 + $0x148] ss:$16 sps:$4 sm:$0xff]   ;;  %v8911_v53 = vld [vmem:[%s10093_s5 + $0x164] ss:$16 sps:$4 sm:$0xff]  }
 0x530   : > { %4349 = vmatprep.subr.bf16.mxu0 %v8869_v26  ;;  %4431 = vmatprep.subr.bf16.mxu1 %v8871_v29  ;;  %v8913_v54 = vld [vmem:[%s10093_s5 + $0x16c] ss:$16 sps:$4 sm:$0xff]   ;;  %v8915_v56 = vld [vmem:[%s10093_s5 + $0x160] ss:$16 sps:$4 sm:$0xff]   ;;  %v8916_v58 = vld [vmem:[%s10093_s5 + $0x168] ss:$16 sps:$4 sm:$0xff]  }
 0x531   : > { %v3535_v55 = vld [vmem:[#allocation2] sm:$0xff]  ;;  %v8917_v59 = vld [vmem:[%s10093_s5 + $0x184] ss:$16 sps:$4 sm:$0xff]   ;;  %v8921_v61 = vld [vmem:[%s10093_s5 + $0x180] ss:$16 sps:$4 sm:$0xff]   ;;  %s10746_s30 = sld [smem:[#allocation24_spill]] }
 0x532   : > { %v7351_v57 = vcombine.high %v3535_v55, %v3535_v55  ;;  %v8919_v60 = vld [vmem:[%s10093_s5 + $0x18c] ss:$16 sps:$4 sm:$0xff]   ;;  %v8922_v62 = vld [vmem:[%s10093_s5 + $0x188] ss:$16 sps:$4 sm:$0xff]   ;;  %v8923_v63 = vld [vmem:[%s10093_s5 + $0x1a4] ss:$16 sps:$4 sm:$0xff]   ;;  %v7350_v9 = vcombine.low %v3535_v55, %v3535_v55 }
 0x533   : > { %4350 = vmatpush1.bf16.msra.mxu0 %v8873_v30  ;;  %4432 = vmatpush1.bf16.msra.mxu1 %v8874_v31  ;;  %v8925_v0 = vld [vmem:[%s10093_s5 + $0x1ac] ss:$16 sps:$4 sm:$0xff]   ;;  %v8927_v1 = vld [vmem:[%s10093_s5 + $0x1a0] ss:$16 sps:$4 sm:$0xff]   ;;  %v8928_v2 = vld [vmem:[%s10093_s5 + $0x1a8] ss:$16 sps:$4 sm:$0xff]  }
 0x534   : > { %4351 = vmatprep.subr.bf16.mxu0 %v8875_v32  ;;  %4433 = vmatprep.subr.bf16.mxu1 %v8877_v33  ;;  %v8929_v3 = vld [vmem:[%s10093_s5 + $0x1c4] ss:$16 sps:$4 sm:$0xff]   ;;  %v8931_v11 = vld [vmem:[%s10093_s5 + $0x1cc] ss:$16 sps:$4 sm:$0xff]   ;;  %v8933_v4 = vld [vmem:[%s10093_s5 + $0x1c0] ss:$16 sps:$4 sm:$0xff]  }
 0x535   : > { %4373 = vmatprep.mubr.bf16.mxu0 %v7351_v57  ;;  %4455 = vmatprep.mubr.bf16.mxu1 %v7351_v57  ;;  %v8934_v27 = vld [vmem:[%s10093_s5 + $0x1c8] ss:$16 sps:$4 sm:$0xff]   ;;  %v8935_v5 = vld [vmem:[%s10093_s5 + $0x1e4] ss:$16 sps:$4 sm:$0xff]   ;;  %v8937_v13 = vld [vmem:[%s10093_s5 + $0x1ec] ss:$16 sps:$4 sm:$0xff]  }
 0x536   : > { %v8939_v14 = vld [vmem:[%s10093_s5 + $0x1e0] ss:$16 sps:$4 sm:$0xff]   ;;  %v8940_v6 = vld [vmem:[%s10093_s5 + $0x1e8] ss:$16 sps:$4 sm:$0xff]   ;;  %v8945_v7 = vld [vmem:[%s10093_s5 + $0x204] ss:$16 sps:$4 sm:$0xff]  }
 0x537   : > { %4352 = vmatpush1.bf16.msra.mxu0 %v8879_v34  ;;  %4434 = vmatpush1.bf16.msra.mxu1 %v8880_v35  ;;  %v8948_v8 = vld [vmem:[%s10093_s5 + $0x20c] ss:$16 sps:$4 sm:$0xff]   ;;  %v8943_v15 = vld [vmem:[%s10093_s5 + $0x200] ss:$16 sps:$4 sm:$0xff]   ;;  %v8946_v47 = vld [vmem:[%s10093_s5 + $0x208] ss:$16 sps:$4 sm:$0xff]  }
 0x538   : > { %4353 = vmatprep.subr.bf16.mxu0 %v8881_v36  ;;  %4435 = vmatprep.subr.bf16.mxu1 %v8883_v10  ;;  %v8951_v16 = vld [vmem:[%s10093_s5 + $0x224] ss:$16 sps:$4 sm:$0xff]   ;;  %v8954_v17 = vld [vmem:[%s10093_s5 + $0x22c] ss:$16 sps:$4 sm:$0xff]   ;;  %v8949_v18 = vld [vmem:[%s10093_s5 + $0x220] ss:$16 sps:$4 sm:$0xff]  }
 0x539   : > { %v8952_v19 = vld [vmem:[%s10093_s5 + $0x228] ss:$16 sps:$4 sm:$0xff]   ;;  %v8957_v52 = vld [vmem:[%s10093_s5 + $0x244] ss:$16 sps:$4 sm:$0xff]   ;;  %v8960_v20 = vld [vmem:[%s10093_s5 + $0x24c] ss:$16 sps:$4 sm:$0xff]  }
 0x53a   : > { %v8955_v22 = vld [vmem:[%s10093_s5 + $0x240] ss:$16 sps:$4 sm:$0xff]   ;;  %v8958_v24 = vld [vmem:[%s10093_s5 + $0x248] ss:$16 sps:$4 sm:$0xff]   ;;  %v8963_v25 = vld [vmem:[%s10093_s5 + $0x264] ss:$16 sps:$4 sm:$0xff]  }
 0x53b   : > { %4354 = vmatpush1.bf16.msra.mxu0 %v8885_v37  ;;  %4436 = vmatpush1.bf16.msra.mxu1 %v8886_v38  ;;  %v8966_v26 = vld [vmem:[%s10093_s5 + $0x26c] ss:$16 sps:$4 sm:$0xff]   ;;  %v8961_v29 = vld [vmem:[%s10093_s5 + $0x260] ss:$16 sps:$4 sm:$0xff]   ;;  %v8964_v30 = vld [vmem:[%s10093_s5 + $0x268] ss:$16 sps:$4 sm:$0xff]  }
 0x53c   : > { %4355 = vmatprep.subr.bf16.mxu0 %v8887_v39  ;;  %4437 = vmatprep.subr.bf16.mxu1 %v8889_v40  ;;  %v8969_v31 = vld [vmem:[%s10093_s5 + $0x284] ss:$16 sps:$4 sm:$0xff]   ;;  %v8972_v32 = vld [vmem:[%s10093_s5 + $0x28c] ss:$16 sps:$4 sm:$0xff]   ;;  %v8967_v33 = vld [vmem:[%s10093_s5 + $0x280] ss:$16 sps:$4 sm:$0xff]  }
 0x53d   : > { %v8970_v34 = vld [vmem:[%s10093_s5 + $0x288] ss:$16 sps:$4 sm:$0xff]   ;;  %v8975_v35 = vld [vmem:[%s10093_s5 + $0x2a4] ss:$16 sps:$4 sm:$0xff]   ;;  %v8978_v36 = vld [vmem:[%s10093_s5 + $0x2ac] ss:$16 sps:$4 sm:$0xff]  }
 0x53e   : > { %v8973_v10 = vld [vmem:[%s10093_s5 + $0x2a0] ss:$16 sps:$4 sm:$0xff]   ;;  %v8976_v37 = vld [vmem:[%s10093_s5 + $0x2a8] ss:$16 sps:$4 sm:$0xff]   ;;  %v8981_v38 = vld [vmem:[%s10093_s5 + $0x2c4] ss:$16 sps:$4 sm:$0xff]  }
 0x53f   : > { %4356 = vmatpush1.bf16.msra.mxu0 %v8891_v41  ;;  %4438 = vmatpush1.bf16.msra.mxu1 %v8892_v12  ;;  %v8984_v39 = vld [vmem:[%s10093_s5 + $0x2cc] ss:$16 sps:$4 sm:$0xff]   ;;  %v10259_v40 = vld [vmem:[#allocation2 + $0x8] sm:$0xff]  ;;  %v9006_v57 = vld [vmem:[%s10093_s5 + $0x348] ss:$16 sps:$4 sm:$0xff]   ;;  %s9751_s19 = smov [#allocation14]  }
 0x540   : > { %4357 = vmatprep.subr.bf16.mxu0 %v8893_v42  ;;  %4439 = vmatprep.subr.bf16.mxu1 %v8895_v43  ;;  %v7353_v41 = vcombine.high %v10259_v40, %v10259_v40  ;;  %v8979_v12 = vld [vmem:[%s10093_s5 + $0x2c0] ss:$16 sps:$4 sm:$0xff]   ;;  %v8982_v42 = vld [vmem:[%s10093_s5 + $0x2c8] ss:$16 sps:$4 sm:$0xff]   ;;  %v8987_v43 = vld [vmem:[%s10093_s5 + $0x2e4] ss:$16 sps:$4 sm:$0xff]  }
 0x541   : > { %v9008_v55 = vld [vmem:[%s10093_s5 + $0x34c] ss:$16 sps:$4 sm:$0xff]   ;;  %s6803_s20 = sshll.u32 %s9751_s19, 4  ;;  %vm6794_vm4 = vcmask 523264   ;;  %p8216_p13 = scmp.eq.s32.totalorder %s9821_s13, 1  ;;  %s6804_s20 = int_to_ptr.vmem [resolvable:$true] %s6803_s20 }
 0x542   : > { %s9659_s23 = scalar_lea.vmem %s6804_s20, 128  ;;  %p9666_p9 = scmp.lt.s32.totalorder %s6804_s20, %s6804_s20 }
 0x543   : > { %4358 = vmatpush1.bf16.msra.mxu0 %v8897_v44  ;;  %4440 = vmatpush1.bf16.msra.mxu1 %v8898_v45  ;;  %v8990_v44 = vld [vmem:[%s10093_s5 + $0x2ec] ss:$16 sps:$4 sm:$0xff]   ;;  %v8985_v45 = vld [vmem:[%s10093_s5 + $0x2e0] ss:$16 sps:$4 sm:$0xff]   ;;  %p9660_p4 = scmp.ne.s32.totalorder %s6804_s20, %s9659_s23  ;;  %p9667_p12 = scmp.lt.s32.totalorder %s9659_s23, %s9659_s23 }
 0x544   : > { %4359 = vmatprep.subr.bf16.mxu0 %v8899_v23  ;;  %4441 = vmatprep.subr.bf16.mxu1 %v8901_v46  ;;  %v8988_v23 = vld [vmem:[%s10093_s5 + $0x2e8] ss:$16 sps:$4 sm:$0xff]   ;;  %v8993_v46 = vld [vmem:[%s10093_s5 + $0x304] ss:$16 sps:$4 sm:$0xff]  }
 0x545   : > { %p9661_p0 = pnand %p9660_p4, %p8216_p13  ;;  %p9668_p3 = por %p9667_p12, %p9666_p9 }
 0x547   : > { %4360 = vmatpush1.bf16.msra.mxu0 %v8903_v48  ;;  %4442 = vmatpush1.bf16.msra.mxu1 %v8904_v21  ;;  %v8996_v48 = vld [vmem:[%s10093_s5 + $0x30c] ss:$16 sps:$4 sm:$0xff]   ;;  %v8991_v21 = vld [vmem:[%s10093_s5 + $0x300] ss:$16 sps:$4 sm:$0xff]   ;;  %p9662_p11 = pneg %p9661_p0 }
 0x548   : > { %4361 = vmatprep.subr.bf16.mxu0 %v8905_v49  ;;  %4443 = vmatprep.subr.bf16.mxu1 %v8907_v28  ;;  %v8994_v49 = vld [vmem:[%s10093_s5 + $0x308] ss:$16 sps:$4 sm:$0xff]   ;;  %v8999_v28 = vld [vmem:[%s10093_s5 + $0x324] ss:$16 sps:$4 sm:$0xff]  }
 0x549   : > { %p9669_p7 = pnand %p9668_p3, %p9662_p11 }
 0x54b   : > { %4362 = vmatpush1.bf16.msra.mxu0 %v8909_v50  ;;  %4444 = vmatpush1.bf16.msra.mxu1 %v8910_v51  ;;  %v9002_v50 = vld [vmem:[%s10093_s5 + $0x32c] ss:$16 sps:$4 sm:$0xff]   ;;  %v8997_v51 = vld [vmem:[%s10093_s5 + $0x320] ss:$16 sps:$4 sm:$0xff]  }
 0x54c   : > { %4363 = vmatprep.subr.bf16.mxu0 %v8911_v53  ;;  %4445 = vmatprep.subr.bf16.mxu1 %v8913_v54  ;;  %v9000_v53 = vld [vmem:[%s10093_s5 + $0x328] ss:$16 sps:$4 sm:$0xff]   ;;  %v9005_v54 = vld [vmem:[%s10093_s5 + $0x344] ss:$16 sps:$4 sm:$0xff]  }
 0x54f   : > { %4364 = vmatpush1.bf16.msra.mxu0 %v8915_v56  ;;  %4446 = vmatpush1.bf16.msra.mxu1 %v8916_v58  ;;  %v9003_v56 = vld [vmem:[%s10093_s5 + $0x340] ss:$16 sps:$4 sm:$0xff]   ;;  %v9011_v58 = vld [vmem:[%s10093_s5 + $0x364] ss:$16 sps:$4 sm:$0xff]  }
 0x550   : > { %4365 = vmatprep.subr.bf16.mxu0 %v8917_v59  ;;  %4447 = vmatprep.subr.bf16.mxu1 %v8919_v60  ;;  %v9014_v59 = vld [vmem:[%s10093_s5 + $0x36c] ss:$16 sps:$4 sm:$0xff]   ;;  %v9009_v60 = vld [vmem:[%s10093_s5 + $0x360] ss:$16 sps:$4 sm:$0xff]  }
 0x553   : > { %4366 = vmatpush1.bf16.msra.mxu0 %v8921_v61  ;;  %4448 = vmatpush1.bf16.msra.mxu1 %v8922_v62  ;;  %v9012_v61 = vld [vmem:[%s10093_s5 + $0x368] ss:$16 sps:$4 sm:$0xff]   ;;  %v9017_v62 = vld [vmem:[%s10093_s5 + $0x384] ss:$16 sps:$4 sm:$0xff]  }
 0x554   : > { %4367 = vmatprep.subr.bf16.mxu0 %v8923_v63  ;;  %4449 = vmatprep.subr.bf16.mxu1 %v8925_v0  ;;  %v9020_v63 = vld [vmem:[%s10093_s5 + $0x38c] ss:$16 sps:$4 sm:$0xff]   ;;  %v9015_v0 = vld [vmem:[%s10093_s5 + $0x380] ss:$16 sps:$4 sm:$0xff]  }
 0x557   : > { %4368 = vmatpush1.bf16.msra.mxu0 %v8927_v1  ;;  %4450 = vmatpush1.bf16.msra.mxu1 %v8928_v2  ;;  %v9018_v1 = vld [vmem:[%s10093_s5 + $0x388] ss:$16 sps:$4 sm:$0xff]   ;;  %v9023_v2 = vld [vmem:[%s10093_s5 + $0x3a4] ss:$16 sps:$4 sm:$0xff]  }
 0x558   : > { %4369 = vmatprep.subr.bf16.mxu0 %v8929_v3  ;;  %4451 = vmatprep.subr.bf16.mxu1 %v8931_v11  ;;  %v9026_v3 = vld [vmem:[%s10093_s5 + $0x3ac] ss:$16 sps:$4 sm:$0xff]   ;;  %v9021_v11 = vld [vmem:[%s10093_s5 + $0x3a0] ss:$16 sps:$4 sm:$0xff]  }
 0x55b   : > { %4370 = vmatpush1.bf16.msra.mxu0 %v8933_v4  ;;  %4452 = vmatpush1.bf16.msra.mxu1 %v8934_v27  ;;  %v9024_v4 = vld [vmem:[%s10093_s5 + $0x3a8] ss:$16 sps:$4 sm:$0xff]   ;;  %v9029_v27 = vld [vmem:[%s10093_s5 + $0x3c4] ss:$16 sps:$4 sm:$0xff]  }
 0x55c   : > { %4371 = vmatprep.subr.bf16.mxu0 %v8935_v5  ;;  %4453 = vmatprep.subr.bf16.mxu1 %v8937_v13  ;;  %v9032_v5 = vld [vmem:[%s10093_s5 + $0x3cc] ss:$16 sps:$4 sm:$0xff]   ;;  %v9027_v13 = vld [vmem:[%s10093_s5 + $0x3c0] ss:$16 sps:$4 sm:$0xff]  }
 0x55f   : > { %4372 = vmatpush1.bf16.msra.mxu0 %v8939_v14  ;;  %4454 = vmatpush1.bf16.msra.mxu1 %v8940_v6  ;;  %v9030_v14 = vld [vmem:[%s10093_s5 + $0x3c8] ss:$16 sps:$4 sm:$0xff]   ;;  %v9035_v6 = vld [vmem:[%s10093_s5 + $0x3e4] ss:$16 sps:$4 sm:$0xff]  }
 0x560   : > { %4382 = vmatprep.subr.bf16.mxu0 %v8945_v7  ;;  %4464 = vmatprep.subr.bf16.mxu1 %v8948_v8  ;;  %v9038_v7 = vld [vmem:[%s10093_s5 + $0x3ec] ss:$16 sps:$4 sm:$0xff]   ;;  %v9033_v8 = vld [vmem:[%s10093_s5 + $0x3e0] ss:$16 sps:$4 sm:$0xff]  }
 0x562   : > { %4374 = vmatmul.mubr.bf16.vlgmr.msra.gmra.mrb[0].mxu0 %v7350_v9  ;;  %4456 = vmatmul.mubr.bf16.vlgmr.msra.gmra.mrb[0].mxu1 %v7350_v9  ;;  %v9036_v9 = vld [vmem:[%s10093_s5 + $0x3e8] ss:$16 sps:$4 sm:$0xff]  }
 0x563   : > { %4383 = vmatpush1.bf16.msra.mxu0 %v8943_v15  ;;  %4465 = vmatpush1.bf16.msra.mxu1 %v8946_v47  ;;  %v9043_v15 = vld [vmem:[%s10093_s5 + $0x404] ss:$16 sps:$4 sm:$0xff]   ;;  %v9046_v47 = vld [vmem:[%s10093_s5 + $0x40c] ss:$16 sps:$4 sm:$0xff]  }
 0x564   : > { %4384 = vmatprep.subr.bf16.mxu0 %v8951_v16  ;;  %4466 = vmatprep.subr.bf16.mxu1 %v8954_v17  ;;  %v9041_v16 = vld [vmem:[%s10093_s5 + $0x400] ss:$16 sps:$4 sm:$0xff]   ;;  %v9044_v17 = vld [vmem:[%s10093_s5 + $0x408] ss:$16 sps:$4 sm:$0xff]  }
 0x565   : > { %4414 = vmatprep.mubr.bf16.mxu0 %v7353_v41  ;;  %4496 = vmatprep.mubr.bf16.mxu1 %v7353_v41  ;;  %v9079_v41 = vld [vmem:[%s10093_s5 + $0x4c4] ss:$16 sps:$4 sm:$0xff]  }
 0x567   : > { %4385 = vmatpush1.bf16.msra.mxu0 %v8949_v18  ;;  %4467 = vmatpush1.bf16.msra.mxu1 %v8952_v19  ;;  %v7352_v18 = vcombine.low %v10259_v40, %v10259_v40  ;;  %v9049_v19 = vld [vmem:[%s10093_s5 + $0x424] ss:$16 sps:$4 sm:$0xff]   ;;  %v9074_v40 = vld [vmem:[%s10093_s5 + $0x4a8] ss:$16 sps:$4 sm:$0xff]  }
 0x568   : > { %4386 = vmatprep.subr.bf16.mxu0 %v8957_v52  ;;  %4468 = vmatprep.subr.bf16.mxu1 %v8960_v20  ;;  %v9052_v52 = vld [vmem:[%s10093_s5 + $0x42c] ss:$16 sps:$4 sm:$0xff]   ;;  %v9047_v20 = vld [vmem:[%s10093_s5 + $0x420] ss:$16 sps:$4 sm:$0xff]  }
 0x56b   : > { %4387 = vmatpush1.bf16.msra.mxu0 %v8955_v22  ;;  %4469 = vmatpush1.bf16.msra.mxu1 %v8958_v24  ;;  %v9050_v22 = vld [vmem:[%s10093_s5 + $0x428] ss:$16 sps:$4 sm:$0xff]   ;;  %v9055_v24 = vld [vmem:[%s10093_s5 + $0x444] ss:$16 sps:$4 sm:$0xff]  }
 0x56c   : > { %4388 = vmatprep.subr.bf16.mxu0 %v8963_v25  ;;  %4470 = vmatprep.subr.bf16.mxu1 %v8966_v26  ;;  %v9058_v25 = vld [vmem:[%s10093_s5 + $0x44c] ss:$16 sps:$4 sm:$0xff]   ;;  %v9053_v26 = vld [vmem:[%s10093_s5 + $0x440] ss:$16 sps:$4 sm:$0xff]  }
 0x56f   : > { %4389 = vmatpush1.bf16.msra.mxu0 %v8961_v29  ;;  %4471 = vmatpush1.bf16.msra.mxu1 %v8964_v30  ;;  %v9056_v29 = vld [vmem:[%s10093_s5 + $0x448] ss:$16 sps:$4 sm:$0xff]   ;;  %v9061_v30 = vld [vmem:[%s10093_s5 + $0x464] ss:$16 sps:$4 sm:$0xff]  }
 0x570   : > { %4390 = vmatprep.subr.bf16.mxu0 %v8969_v31  ;;  %4472 = vmatprep.subr.bf16.mxu1 %v8972_v32  ;;  %v9064_v31 = vld [vmem:[%s10093_s5 + $0x46c] ss:$16 sps:$4 sm:$0xff]   ;;  %v9059_v32 = vld [vmem:[%s10093_s5 + $0x460] ss:$16 sps:$4 sm:$0xff]  }
 0x573   : > { %4391 = vmatpush1.bf16.msra.mxu0 %v8967_v33  ;;  %4473 = vmatpush1.bf16.msra.mxu1 %v8970_v34  ;;  %v9062_v33 = vld [vmem:[%s10093_s5 + $0x468] ss:$16 sps:$4 sm:$0xff]   ;;  %v9067_v34 = vld [vmem:[%s10093_s5 + $0x484] ss:$16 sps:$4 sm:$0xff]  }
 0x574   : > { %4392 = vmatprep.subr.bf16.mxu0 %v8975_v35  ;;  %4474 = vmatprep.subr.bf16.mxu1 %v8978_v36  ;;  %v9070_v35 = vld [vmem:[%s10093_s5 + $0x48c] ss:$16 sps:$4 sm:$0xff]   ;;  %v9065_v36 = vld [vmem:[%s10093_s5 + $0x480] ss:$16 sps:$4 sm:$0xff]  }
 0x577   : > { %4393 = vmatpush1.bf16.msra.mxu0 %v8973_v10  ;;  %4475 = vmatpush1.bf16.msra.mxu1 %v8976_v37  ;;  %v9068_v10 = vld [vmem:[%s10093_s5 + $0x488] ss:$16 sps:$4 sm:$0xff]   ;;  %v9073_v37 = vld [vmem:[%s10093_s5 + $0x4a4] ss:$16 sps:$4 sm:$0xff]  }
 0x578   : > { %4394 = vmatprep.subr.bf16.mxu0 %v8981_v38  ;;  %4476 = vmatprep.subr.bf16.mxu1 %v8984_v39  ;;  %v9076_v38 = vld [vmem:[%s10093_s5 + $0x4ac] ss:$16 sps:$4 sm:$0xff]   ;;  %v9071_v39 = vld [vmem:[%s10093_s5 + $0x4a0] ss:$16 sps:$4 sm:$0xff]  }
 0x57b   : > { %4395 = vmatpush1.bf16.msra.mxu0 %v8979_v12  ;;  %4477 = vmatpush1.bf16.msra.mxu1 %v8982_v42  ;;  %v9082_v12 = vld [vmem:[%s10093_s5 + $0x4cc] ss:$16 sps:$4 sm:$0xff]   ;;  %v9077_v42 = vld [vmem:[%s10093_s5 + $0x4c0] ss:$16 sps:$4 sm:$0xff]  }
 0x57c   : > { %4396 = vmatprep.subr.bf16.mxu0 %v8987_v43  ;;  %4478 = vmatprep.subr.bf16.mxu1 %v8990_v44  ;;  %v9080_v43 = vld [vmem:[%s10093_s5 + $0x4c8] ss:$16 sps:$4 sm:$0xff]   ;;  %v9085_v44 = vld [vmem:[%s10093_s5 + $0x4e4] ss:$16 sps:$4 sm:$0xff]  }
 0x57f   : > { %4397 = vmatpush1.bf16.msra.mxu0 %v8985_v45  ;;  %4479 = vmatpush1.bf16.msra.mxu1 %v8988_v23  ;;  %v9088_v45 = vld [vmem:[%s10093_s5 + $0x4ec] ss:$16 sps:$4 sm:$0xff]   ;;  %v9083_v23 = vld [vmem:[%s10093_s5 + $0x4e0] ss:$16 sps:$4 sm:$0xff]  }
 0x580   : > { %4398 = vmatprep.subr.bf16.mxu0 %v8993_v46  ;;  %4480 = vmatprep.subr.bf16.mxu1 %v8996_v48  ;;  %v9086_v46 = vld [vmem:[%s10093_s5 + $0x4e8] ss:$16 sps:$4 sm:$0xff]   ;;  %v9091_v48 = vld [vmem:[%s10093_s5 + $0x504] ss:$16 sps:$4 sm:$0xff]  }
 0x583   : > { %4399 = vmatpush1.bf16.msra.mxu0 %v8991_v21  ;;  %4481 = vmatpush1.bf16.msra.mxu1 %v8994_v49  ;;  %v9094_v21 = vld [vmem:[%s10093_s5 + $0x50c] ss:$16 sps:$4 sm:$0xff]   ;;  %v9089_v49 = vld [vmem:[%s10093_s5 + $0x500] ss:$16 sps:$4 sm:$0xff]  }
 0x584   : > { %4400 = vmatprep.subr.bf16.mxu0 %v8999_v28  ;;  %4482 = vmatprep.subr.bf16.mxu1 %v9002_v50  ;;  %v9092_v28 = vld [vmem:[%s10093_s5 + $0x508] ss:$16 sps:$4 sm:$0xff]   ;;  %v9097_v50 = vld [vmem:[%s10093_s5 + $0x524] ss:$16 sps:$4 sm:$0xff]  }
 0x587   : > { %4401 = vmatpush1.bf16.msra.mxu0 %v8997_v51  ;;  %4483 = vmatpush1.bf16.msra.mxu1 %v9000_v53  ;;  %v9100_v51 = vld [vmem:[%s10093_s5 + $0x52c] ss:$16 sps:$4 sm:$0xff]   ;;  %v9095_v53 = vld [vmem:[%s10093_s5 + $0x520] ss:$16 sps:$4 sm:$0xff]  }
 0x588   : > { %4402 = vmatprep.subr.bf16.mxu0 %v9005_v54  ;;  %4484 = vmatprep.subr.bf16.mxu1 %v9008_v55  ;;  %v9098_v54 = vld [vmem:[%s10093_s5 + $0x528] ss:$16 sps:$4 sm:$0xff]   ;;  %v9103_v55 = vld [vmem:[%s10093_s5 + $0x544] ss:$16 sps:$4 sm:$0xff]  }
 0x58b   : > { %4403 = vmatpush1.bf16.msra.mxu0 %v9003_v56  ;;  %4485 = vmatpush1.bf16.msra.mxu1 %v9006_v57  ;;  %v9106_v56 = vld [vmem:[%s10093_s5 + $0x54c] ss:$16 sps:$4 sm:$0xff]   ;;  %v9101_v57 = vld [vmem:[%s10093_s5 + $0x540] ss:$16 sps:$4 sm:$0xff]  }
 0x58c   : > { %4404 = vmatprep.subr.bf16.mxu0 %v9011_v58  ;;  %4486 = vmatprep.subr.bf16.mxu1 %v9014_v59  ;;  %v9104_v58 = vld [vmem:[%s10093_s5 + $0x548] ss:$16 sps:$4 sm:$0xff]   ;;  %v9109_v59 = vld [vmem:[%s10093_s5 + $0x564] ss:$16 sps:$4 sm:$0xff]  }
 0x58f   : > { %4405 = vmatpush1.bf16.msra.mxu0 %v9009_v60  ;;  %4487 = vmatpush1.bf16.msra.mxu1 %v9012_v61  ;;  %v9112_v60 = vld [vmem:[%s10093_s5 + $0x56c] ss:$16 sps:$4 sm:$0xff]   ;;  %v9107_v61 = vld [vmem:[%s10093_s5 + $0x560] ss:$16 sps:$4 sm:$0xff]  }
 0x590   : > { %4406 = vmatprep.subr.bf16.mxu0 %v9017_v62  ;;  %4488 = vmatprep.subr.bf16.mxu1 %v9020_v63  ;;  %v9110_v62 = vld [vmem:[%s10093_s5 + $0x568] ss:$16 sps:$4 sm:$0xff]   ;;  %v9115_v63 = vld [vmem:[%s10093_s5 + $0x584] ss:$16 sps:$4 sm:$0xff]  }
 0x593   : > { %4407 = vmatpush1.bf16.msra.mxu0 %v9015_v0  ;;  %4489 = vmatpush1.bf16.msra.mxu1 %v9018_v1  ;;  %v9118_v0 = vld [vmem:[%s10093_s5 + $0x58c] ss:$16 sps:$4 sm:$0xff]   ;;  %v9113_v1 = vld [vmem:[%s10093_s5 + $0x580] ss:$16 sps:$4 sm:$0xff]  }
 0x594   : > { %4408 = vmatprep.subr.bf16.mxu0 %v9023_v2  ;;  %4490 = vmatprep.subr.bf16.mxu1 %v9026_v3  ;;  %v9116_v2 = vld [vmem:[%s10093_s5 + $0x588] ss:$16 sps:$4 sm:$0xff]   ;;  %v9121_v3 = vld [vmem:[%s10093_s5 + $0x5a4] ss:$16 sps:$4 sm:$0xff]  }
 0x597   : > { %4409 = vmatpush1.bf16.msra.mxu0 %v9021_v11  ;;  %4491 = vmatpush1.bf16.msra.mxu1 %v9024_v4  ;;  %v9124_v11 = vld [vmem:[%s10093_s5 + $0x5ac] ss:$16 sps:$4 sm:$0xff]   ;;  %v9119_v4 = vld [vmem:[%s10093_s5 + $0x5a0] ss:$16 sps:$4 sm:$0xff]  }
 0x598   : > { %4410 = vmatprep.subr.bf16.mxu0 %v9029_v27  ;;  %4492 = vmatprep.subr.bf16.mxu1 %v9032_v5  ;;  %v9122_v27 = vld [vmem:[%s10093_s5 + $0x5a8] ss:$16 sps:$4 sm:$0xff]   ;;  %v9127_v5 = vld [vmem:[%s10093_s5 + $0x5c4] ss:$16 sps:$4 sm:$0xff]  }
 0x59b   : > { %4411 = vmatpush1.bf16.msra.mxu0 %v9027_v13  ;;  %4493 = vmatpush1.bf16.msra.mxu1 %v9030_v14  ;;  %v9130_v13 = vld [vmem:[%s10093_s5 + $0x5cc] ss:$16 sps:$4 sm:$0xff]   ;;  %v9125_v14 = vld [vmem:[%s10093_s5 + $0x5c0] ss:$16 sps:$4 sm:$0xff]  }
 0x59c   : > { %4412 = vmatprep.subr.bf16.mxu0 %v9035_v6  ;;  %4494 = vmatprep.subr.bf16.mxu1 %v9038_v7  ;;  %v9128_v6 = vld [vmem:[%s10093_s5 + $0x5c8] ss:$16 sps:$4 sm:$0xff]   ;;  %v9133_v7 = vld [vmem:[%s10093_s5 + $0x5e4] ss:$16 sps:$4 sm:$0xff]  }
 0x59f   : > { %4413 = vmatpush1.bf16.msra.mxu0 %v9033_v8  ;;  %4495 = vmatpush1.bf16.msra.mxu1 %v9036_v9  ;;  %v9136_v8 = vld [vmem:[%s10093_s5 + $0x5ec] ss:$16 sps:$4 sm:$0xff]   ;;  %v9131_v9 = vld [vmem:[%s10093_s5 + $0x5e0] ss:$16 sps:$4 sm:$0xff]  }
 0x5a0   : > { %5305 = vmatprep.subr.bf16.mxu0 %v9043_v15  ;;  %5387 = vmatprep.subr.bf16.mxu1 %v9046_v47  ;;  %v9134_v15 = vld [vmem:[%s10093_s5 + $0x5e8] ss:$16 sps:$4 sm:$0xff]   ;;  %v9139_v47 = vld [vmem:[%s10093_s5 + $0x604] ss:$16 sps:$4 sm:$0xff]  }
 0x5a2   : > { %4415 = vmatmul.mubr.bf16.vlgmr.msra.gmra.mrb[0].mxu0 %v7352_v18  ;;  %4497 = vmatmul.mubr.bf16.vlgmr.msra.gmra.mrb[0].mxu1 %v7352_v18 }
 0x5a3   : > { %5306 = vmatpush1.bf16.msra.mxu0 %v9041_v16  ;;  %5388 = vmatpush1.bf16.msra.mxu1 %v9044_v17  ;;  %v9142_v16 = vld [vmem:[%s10093_s5 + $0x60c] ss:$16 sps:$4 sm:$0xff]   ;;  %v3667_v17 = vlaneseq }
 0x5a4   : > { %5307 = vmatprep.subr.bf16.mxu0 %v9049_v19  ;;  %5389 = vmatprep.subr.bf16.mxu1 %v9052_v52  ;;  %v10375_v52 = vld [vmem:[%s10107_s0] sm:$0xf] }
 0x5a5   : > { %v10369_v18 = vshrl.u32 %v3667_v17, 7  ;;  %v9199_v17 = vld [vmem:[%s10093_s5 + $0x744] ss:$16 sps:$4 sm:$0xff]  }
 0x5a7   : > { %5308 = vmatpush1.bf16.msra.mxu0 %v9047_v20  ;;  %5390 = vmatpush1.bf16.msra.mxu1 %v9050_v22  ;;  %v10372_v19 = vsub.s32 0, %v10369_v18  ;;  %v10378_v20 = vsub.s32 1, %v10369_v18  ;;  %v10381_v22 = vsub.s32 3, %v10369_v18 }
 0x5a8   : > { %5309 = vmatprep.subr.bf16.mxu0 %v9055_v24  ;;  %5391 = vmatprep.subr.bf16.mxu1 %v9058_v25 }
 0x5a9   : > { %v3670_v24 = vrot.slane %v10375_v52, %v10372_v19  ;;  %v3674_v25 = vrot.slane %v10375_v52, %v10378_v20 }
 0x5ab   : > { %5310 = vmatpush1.bf16.msra.mxu0 %v9053_v26  ;;  %5392 = vmatpush1.bf16.msra.mxu1 %v9056_v29  ;;  %v3682_v26 = vrot.slane %v10375_v52, %v10381_v22 }
 0x5ac   : > { %5311 = vmatprep.subr.bf16.mxu0 %v9061_v30  ;;  %5393 = vmatprep.subr.bf16.mxu1 %v9064_v31 }
 0x5af   : > { %5312 = vmatpush1.bf16.msra.mxu0 %v9059_v32  ;;  %5394 = vmatpush1.bf16.msra.mxu1 %v9062_v33 }
 0x5b0   : > { %5313 = vmatprep.subr.bf16.mxu0 %v9067_v34  ;;  %5395 = vmatprep.subr.bf16.mxu1 %v9070_v35 }
 0x5b3   : > { %5314 = vmatpush1.bf16.msra.mxu0 %v9065_v36  ;;  %5396 = vmatpush1.bf16.msra.mxu1 %v9068_v10 }
 0x5b4   : > { %5315 = vmatprep.subr.bf16.mxu0 %v9073_v37  ;;  %5397 = vmatprep.subr.bf16.mxu1 %v9076_v38 }
 0x5b7   : > { %5316 = vmatpush1.bf16.msra.mxu0 %v9071_v39  ;;  %5398 = vmatpush1.bf16.msra.mxu1 %v9074_v40 }
 0x5b8   : > { %5317 = vmatprep.subr.bf16.mxu0 %v9079_v41  ;;  %5399 = vmatprep.subr.bf16.mxu1 %v9082_v12 }
 0x5bb   : > { %5318 = vmatpush1.bf16.msra.mxu0 %v9077_v42  ;;  %5400 = vmatpush1.bf16.msra.mxu1 %v9080_v43  ;;  %v9137_v42 = vld [vmem:[%s10093_s5 + $0x600] ss:$16 sps:$4 sm:$0xff]   ;;  %v9140_v43 = vld [vmem:[%s10093_s5 + $0x608] ss:$16 sps:$4 sm:$0xff]  }
 0x5bc   : > { %5319 = vmatprep.subr.bf16.mxu0 %v9085_v44  ;;  %5401 = vmatprep.subr.bf16.mxu1 %v9088_v45  ;;  %v9145_v45 = vld [vmem:[%s10093_s5 + $0x624] ss:$16 sps:$4 sm:$0xff]  }
 0x5bf   : > { %5320 = vmatpush1.bf16.msra.mxu0 %v9083_v23  ;;  %5402 = vmatpush1.bf16.msra.mxu1 %v9086_v46  ;;  %v9148_v23 = vld [vmem:[%s10093_s5 + $0x62c] ss:$16 sps:$4 sm:$0xff]  }
 0x5c0   : > { %5321 = vmatprep.subr.bf16.mxu0 %v9091_v48  ;;  %5403 = vmatprep.subr.bf16.mxu1 %v9094_v21  ;;  %v9143_v48 = vld [vmem:[%s10093_s5 + $0x620] ss:$16 sps:$4 sm:$0xff]   ;;  %v9146_v21 = vld [vmem:[%s10093_s5 + $0x628] ss:$16 sps:$4 sm:$0xff]  }
 0x5c3   : > { %5322 = vmatpush1.bf16.msra.mxu0 %v9089_v49  ;;  %5404 = vmatpush1.bf16.msra.mxu1 %v9092_v28  ;;  %v9151_v49 = vld [vmem:[%s10093_s5 + $0x644] ss:$16 sps:$4 sm:$0xff]   ;;  %v9154_v28 = vld [vmem:[%s10093_s5 + $0x64c] ss:$16 sps:$4 sm:$0xff]  }
 0x5c4   : > { %5323 = vmatprep.subr.bf16.mxu0 %v9097_v50  ;;  %5405 = vmatprep.subr.bf16.mxu1 %v9100_v51  ;;  %v9149_v50 = vld [vmem:[%s10093_s5 + $0x640] ss:$16 sps:$4 sm:$0xff]   ;;  %v9152_v51 = vld [vmem:[%s10093_s5 + $0x648] ss:$16 sps:$4 sm:$0xff]  }
 0x5c7   : > { %5324 = vmatpush1.bf16.msra.mxu0 %v9095_v53  ;;  %5406 = vmatpush1.bf16.msra.mxu1 %v9098_v54  ;;  %v9157_v53 = vld [vmem:[%s10093_s5 + $0x664] ss:$16 sps:$4 sm:$0xff]   ;;  %v9160_v54 = vld [vmem:[%s10093_s5 + $0x66c] ss:$16 sps:$4 sm:$0xff]  }
 0x5c8   : > { %5325 = vmatprep.subr.bf16.mxu0 %v9103_v55  ;;  %5407 = vmatprep.subr.bf16.mxu1 %v9106_v56  ;;  %v9155_v55 = vld [vmem:[%s10093_s5 + $0x660] ss:$16 sps:$4 sm:$0xff]   ;;  %v9158_v56 = vld [vmem:[%s10093_s5 + $0x668] ss:$16 sps:$4 sm:$0xff]  }
 0x5cb   : > { %5326 = vmatpush1.bf16.msra.mxu0 %v9101_v57  ;;  %5408 = vmatpush1.bf16.msra.mxu1 %v9104_v58  ;;  %v9163_v57 = vld [vmem:[%s10093_s5 + $0x684] ss:$16 sps:$4 sm:$0xff]   ;;  %v9166_v58 = vld [vmem:[%s10093_s5 + $0x68c] ss:$16 sps:$4 sm:$0xff]  }
 0x5cc   : > { %5327 = vmatprep.subr.bf16.mxu0 %v9109_v59  ;;  %5409 = vmatprep.subr.bf16.mxu1 %v9112_v60  ;;  %v9161_v59 = vld [vmem:[%s10093_s5 + $0x680] ss:$16 sps:$4 sm:$0xff]   ;;  %v9164_v60 = vld [vmem:[%s10093_s5 + $0x688] ss:$16 sps:$4 sm:$0xff]  }
 0x5cf   : > { %5328 = vmatpush1.bf16.msra.mxu0 %v9107_v61  ;;  %5410 = vmatpush1.bf16.msra.mxu1 %v9110_v62  ;;  %v9169_v61 = vld [vmem:[%s10093_s5 + $0x6a4] ss:$16 sps:$4 sm:$0xff]   ;;  %v9172_v62 = vld [vmem:[%s10093_s5 + $0x6ac] ss:$16 sps:$4 sm:$0xff]  }
 0x5d0   : > { %5329 = vmatprep.subr.bf16.mxu0 %v9115_v63  ;;  %5411 = vmatprep.subr.bf16.mxu1 %v9118_v0  ;;  %v9167_v63 = vld [vmem:[%s10093_s5 + $0x6a0] ss:$16 sps:$4 sm:$0xff]   ;;  %v9170_v0 = vld [vmem:[%s10093_s5 + $0x6a8] ss:$16 sps:$4 sm:$0xff]  }
 0x5d3   : > { %5330 = vmatpush1.bf16.msra.mxu0 %v9113_v1  ;;  %5412 = vmatpush1.bf16.msra.mxu1 %v9116_v2  ;;  %v9175_v1 = vld [vmem:[%s10093_s5 + $0x6c4] ss:$16 sps:$4 sm:$0xff]   ;;  %v9178_v2 = vld [vmem:[%s10093_s5 + $0x6cc] ss:$16 sps:$4 sm:$0xff]  }
 0x5d4   : > { %5331 = vmatprep.subr.bf16.mxu0 %v9121_v3  ;;  %5413 = vmatprep.subr.bf16.mxu1 %v9124_v11  ;;  %v9173_v3 = vld [vmem:[%s10093_s5 + $0x6c0] ss:$16 sps:$4 sm:$0xff]   ;;  %v9176_v11 = vld [vmem:[%s10093_s5 + $0x6c8] ss:$16 sps:$4 sm:$0xff]  }
 0x5d7   : > { %5332 = vmatpush1.bf16.msra.mxu0 %v9119_v4  ;;  %5414 = vmatpush1.bf16.msra.mxu1 %v9122_v27  ;;  %v9181_v4 = vld [vmem:[%s10093_s5 + $0x6e4] ss:$16 sps:$4 sm:$0xff]   ;;  %v9184_v27 = vld [vmem:[%s10093_s5 + $0x6ec] ss:$16 sps:$4 sm:$0xff]  }
 0x5d8   : > { %5333 = vmatprep.subr.bf16.mxu0 %v9127_v5  ;;  %5415 = vmatprep.subr.bf16.mxu1 %v9130_v13  ;;  %v9179_v5 = vld [vmem:[%s10093_s5 + $0x6e0] ss:$16 sps:$4 sm:$0xff]   ;;  %v9182_v13 = vld [vmem:[%s10093_s5 + $0x6e8] ss:$16 sps:$4 sm:$0xff]  }
 0x5db   : > { %5334 = vmatpush1.bf16.msra.mxu0 %v9125_v14  ;;  %5416 = vmatpush1.bf16.msra.mxu1 %v9128_v6  ;;  %v9187_v14 = vld [vmem:[%s10093_s5 + $0x704] ss:$16 sps:$4 sm:$0xff]   ;;  %v9190_v6 = vld [vmem:[%s10093_s5 + $0x70c] ss:$16 sps:$4 sm:$0xff]  }
 0x5dc   : > { %5335 = vmatprep.subr.bf16.mxu0 %v9133_v7  ;;  %5417 = vmatprep.subr.bf16.mxu1 %v9136_v8  ;;  %v9185_v7 = vld [vmem:[%s10093_s5 + $0x700] ss:$16 sps:$4 sm:$0xff]   ;;  %v9188_v8 = vld [vmem:[%s10093_s5 + $0x708] ss:$16 sps:$4 sm:$0xff]  }
 0x5df   : > { %5336 = vmatpush1.bf16.msra.mxu0 %v9131_v9  ;;  %5418 = vmatpush1.bf16.msra.mxu1 %v9134_v15  ;;  %v9193_v9 = vld [vmem:[%s10093_s5 + $0x724] ss:$16 sps:$4 sm:$0xff]   ;;  %v9196_v15 = vld [vmem:[%s10093_s5 + $0x72c] ss:$16 sps:$4 sm:$0xff]  }
 0x5e0   : > { %5346 = vmatprep.subr.bf16.mxu0 %v9139_v47  ;;  %5428 = vmatprep.subr.bf16.mxu1 %v9142_v16  ;;  %v9191_v47 = vld [vmem:[%s10093_s5 + $0x720] ss:$16 sps:$4 sm:$0xff]   ;;  %v9194_v16 = vld [vmem:[%s10093_s5 + $0x728] ss:$16 sps:$4 sm:$0xff]  }
 0x675   : > { %v4416_v29 = vpop.f32.mrb[0].mxu0  ;;  %v10389_v30 = vpop.f32.mrb[0].mxu1 }
 0x676   : > { %v8116_v31 = vadd.f32 %v4416_v29, %v3670_v24  ;;  %v4418_v32 = vpop.f32.mrb[1].mxu0  ;;  %v4500_v33 = vpop.f32.mrb[1].mxu1  ;;  %v9202_v24 = vld [vmem:[%s10093_s5 + $0x74c] ss:$16 sps:$4 sm:$0xff]   ;;  %v9205_v29 = vld [vmem:[%s10093_s5 + $0x764] ss:$16 sps:$4 sm:$0xff]  }
 0x677   : > { %v8117_v34 = vadd.f32 %v4418_v32, %v3674_v25  ;;  %v8119_v35 = vadd.f32 %v4500_v33, %v3682_v26  ;;  %v4420_v36 = vpop.f32.mrb[2].mxu0  ;;  %v4502_v10 = vpop.f32.mrb[2].mxu1  ;;  %v9197_v25 = vld [vmem:[%s10093_s5 + $0x740] ss:$16 sps:$4 sm:$0xff]   ;;  %v9200_v26 = vld [vmem:[%s10093_s5 + $0x748] ss:$16 sps:$4 sm:$0xff]  }
 0x678   : > { %v4505_v37 = vmax.f32 %v8116_v31, 0.0  ;;  %v4421_v38 = vpop.f32.mrb[3].mxu0  ;;  %v4503_v39 = vpop.f32.mrb[3].mxu1  ;;  %v9208_v31 = vld [vmem:[%s10093_s5 + $0x76c] ss:$16 sps:$4 sm:$0xff]  }
 0x679   : > { %v4506_v40 = vmax.f32 %v8117_v34, 0.0  ;;  %v4508_v41 = vmax.f32 %v8119_v35, 0.0  ;;  %v9203_v32 = vld [vmem:[%s10093_s5 + $0x760] ss:$16 sps:$4 sm:$0xff]   ;;  %v9206_v33 = vld [vmem:[%s10093_s5 + $0x768] ss:$16 sps:$4 sm:$0xff]  }
 0x67a   : > { %v4509_v44 = vpack.c.bf16 %v4505_v37, %v4505_v37  ;;  %v9211_v34 = vld [vmem:[%s10093_s5 + $0x784] ss:$16 sps:$4 sm:$0xff]   ;;  %v9214_v35 = vld [vmem:[%s10093_s5 + $0x78c] ss:$16 sps:$4 sm:$0xff]   ;;  %v9209_v36 = vld [vmem:[%s10093_s5 + $0x780] ss:$16 sps:$4 sm:$0xff]  }
 0x67b   : > { %v4510_v12 = vpack.c.bf16 %v4506_v40, %v4506_v40  ;;  %v4512_v46 = vpack.c.bf16 %v4508_v41, %v4508_v41  ;;  %v9212_v10 = vld [vmem:[%s10093_s5 + $0x788] ss:$16 sps:$4 sm:$0xff]   ;;  %v10442_v37 = vsub.s32 2, %v10369_v18  ;;  %v9217_v38 = vld [vmem:[%s10093_s5 + $0x7a4] ss:$16 sps:$4 sm:$0xff]  }
 0x67c   : > { %v9220_v39 = vld [vmem:[%s10093_s5 + $0x7ac] ss:$16 sps:$4 sm:$0xff]   ;;  %v9215_v40 = vld [vmem:[%s10093_s5 + $0x7a0] ss:$16 sps:$4 sm:$0xff]   ;;  %v9218_v41 = vld [vmem:[%s10093_s5 + $0x7a8] ss:$16 sps:$4 sm:$0xff]  }
 0x67d   : > { %5337 = vmatprep.mubr.bf16.mxu0 %v4510_v12  ;;  %5419 = vmatprep.mubr.bf16.mxu1 %v4510_v12  ;;  %v3678_v12 = vrot.slane %v10375_v52, %v10442_v37  ;;  %v9223_v18 = vld [vmem:[%s10093_s5 + $0x7c4] ss:$16 sps:$4 sm:$0xff]   ;;  %v9232_v52 = vld [vmem:[%s10093_s5 + $0x7ec] ss:$16 sps:$4 sm:$0xff]  }
 0x67e   : > { %5338 = vmatmul.mubr.bf16.vlgmr.msra.gmra.mrb[4].mxu0 %v4509_v44  ;;  %5420 = vmatmul.mubr.bf16.vlgmr.msra.gmra.mrb[4].mxu1 %v4509_v44  ;;  %v9224_v44 = vld [vmem:[%s10093_s5 + $0x7c8] ss:$16 sps:$4 sm:$0xff]  }
 0x67f   : > { %5347 = vmatpush1.bf16.msra.mxu0 %v9137_v42  ;;  %5429 = vmatpush1.bf16.msra.mxu1 %v9140_v43  ;;  %v9226_v42 = vld [vmem:[%s10093_s5 + $0x7cc] ss:$16 sps:$4 sm:$0xff]   ;;  %v9221_v43 = vld [vmem:[%s10093_s5 + $0x7c0] ss:$16 sps:$4 sm:$0xff]  }
 0x680   : > { %5378 = vmatprep.mubr.bf16.mxu0 %v4512_v46  ;;  %5460 = vmatprep.mubr.bf16.mxu1 %v4512_v46  ;;  %v9227_v46 = vld [vmem:[%s10093_s5 + $0x7e0] ss:$16 sps:$4 sm:$0xff]  }
 0x681   : > { %5348 = vmatprep.subr.bf16.mxu0 %v9145_v45  ;;  %5430 = vmatprep.subr.bf16.mxu1 %v9148_v23  ;;  %v8118_v45 = vadd.f32 %v10389_v30, %v3678_v12  ;;  %v9229_v23 = vld [vmem:[%s10093_s5 + $0x7e4] ss:$16 sps:$4 sm:$0xff]   ;;  %v9233_v30 = vld [vmem:[%s10093_s5 + $0x800] ss:$16 sps:$4 sm:$0xff]  }
 0x682   : > { %v9307_v12 = vld [vmem:[%s10093_s5 + $0x984] ss:$16 sps:$4 sm:$0xff]  }
 0x683   : > { %5349 = vmatpush1.bf16.msra.mxu0 %v9143_v48  ;;  %5431 = vmatpush1.bf16.msra.mxu1 %v9146_v21  ;;  %v9230_v48 = vld [vmem:[%s10093_s5 + $0x7e8] ss:$16 sps:$4 sm:$0xff]   ;;  %v4507_v21 = vmax.f32 %v8118_v45, 0.0  ;;  %v9316_v45 = vld [vmem:[%s10093_s5 + $0x9ac] ss:$16 sps:$4 sm:$0xff]  }
 0x684   : > { %5350 = vmatprep.subr.bf16.mxu0 %v9151_v49  ;;  %5432 = vmatprep.subr.bf16.mxu1 %v9154_v28  ;;  %v9235_v49 = vld [vmem:[%s10093_s5 + $0x804] ss:$16 sps:$4 sm:$0xff]   ;;  %v9238_v28 = vld [vmem:[%s10093_s5 + $0x80c] ss:$16 sps:$4 sm:$0xff]  }
 0x687   : > { %5351 = vmatpush1.bf16.msra.mxu0 %v9149_v50  ;;  %5433 = vmatpush1.bf16.msra.mxu1 %v9152_v51  ;;  %v9236_v50 = vld [vmem:[%s10093_s5 + $0x808] ss:$16 sps:$4 sm:$0xff]   ;;  %v4511_v51 = vpack.c.bf16 %v4507_v21, %v4507_v21  ;;  %v9317_v21 = vld [vmem:[%s10093_s5 + $0x9c0] ss:$16 sps:$4 sm:$0xff]  }
 0x688   : > { %5352 = vmatprep.subr.bf16.mxu0 %v9157_v53  ;;  %5434 = vmatprep.subr.bf16.mxu1 %v9160_v54  ;;  %v9241_v53 = vld [vmem:[%s10093_s5 + $0x824] ss:$16 sps:$4 sm:$0xff]   ;;  %v9244_v54 = vld [vmem:[%s10093_s5 + $0x82c] ss:$16 sps:$4 sm:$0xff]  }
 0x68b   : > { %5353 = vmatpush1.bf16.msra.mxu0 %v9155_v55  ;;  %5435 = vmatpush1.bf16.msra.mxu1 %v9158_v56  ;;  %v9239_v55 = vld [vmem:[%s10093_s5 + $0x820] ss:$16 sps:$4 sm:$0xff]   ;;  %v9242_v56 = vld [vmem:[%s10093_s5 + $0x828] ss:$16 sps:$4 sm:$0xff]  }
 0x68c   : > { %5354 = vmatprep.subr.bf16.mxu0 %v9163_v57  ;;  %5436 = vmatprep.subr.bf16.mxu1 %v9166_v58  ;;  %v9247_v57 = vld [vmem:[%s10093_s5 + $0x844] ss:$16 sps:$4 sm:$0xff]   ;;  %v9250_v58 = vld [vmem:[%s10093_s5 + $0x84c] ss:$16 sps:$4 sm:$0xff]  }
 0x68f   : > { %5355 = vmatpush1.bf16.msra.mxu0 %v9161_v59  ;;  %5437 = vmatpush1.bf16.msra.mxu1 %v9164_v60  ;;  %v9245_v59 = vld [vmem:[%s10093_s5 + $0x840] ss:$16 sps:$4 sm:$0xff]   ;;  %v9248_v60 = vld [vmem:[%s10093_s5 + $0x848] ss:$16 sps:$4 sm:$0xff]  }
 0x690   : > { %5356 = vmatprep.subr.bf16.mxu0 %v9169_v61  ;;  %5438 = vmatprep.subr.bf16.mxu1 %v9172_v62  ;;  %v9253_v61 = vld [vmem:[%s10093_s5 + $0x864] ss:$16 sps:$4 sm:$0xff]   ;;  %v9256_v62 = vld [vmem:[%s10093_s5 + $0x86c] ss:$16 sps:$4 sm:$0xff]  }
 0x693   : > { %5357 = vmatpush1.bf16.msra.mxu0 %v9167_v63  ;;  %5439 = vmatpush1.bf16.msra.mxu1 %v9170_v0  ;;  %v9251_v63 = vld [vmem:[%s10093_s5 + $0x860] ss:$16 sps:$4 sm:$0xff]   ;;  %v9254_v0 = vld [vmem:[%s10093_s5 + $0x868] ss:$16 sps:$4 sm:$0xff]  }
 0x694   : > { %5358 = vmatprep.subr.bf16.mxu0 %v9175_v1  ;;  %5440 = vmatprep.subr.bf16.mxu1 %v9178_v2  ;;  %v9259_v1 = vld [vmem:[%s10093_s5 + $0x884] ss:$16 sps:$4 sm:$0xff]   ;;  %v9262_v2 = vld [vmem:[%s10093_s5 + $0x88c] ss:$16 sps:$4 sm:$0xff]  }
 0x697   : > { %5359 = vmatpush1.bf16.msra.mxu0 %v9173_v3  ;;  %5441 = vmatpush1.bf16.msra.mxu1 %v9176_v11  ;;  %v9257_v3 = vld [vmem:[%s10093_s5 + $0x880] ss:$16 sps:$4 sm:$0xff]   ;;  %v9260_v11 = vld [vmem:[%s10093_s5 + $0x888] ss:$16 sps:$4 sm:$0xff]  }
 0x698   : > { %5360 = vmatprep.subr.bf16.mxu0 %v9181_v4  ;;  %5442 = vmatprep.subr.bf16.mxu1 %v9184_v27  ;;  %v9265_v4 = vld [vmem:[%s10093_s5 + $0x8a4] ss:$16 sps:$4 sm:$0xff]   ;;  %v9268_v27 = vld [vmem:[%s10093_s5 + $0x8ac] ss:$16 sps:$4 sm:$0xff]  }
 0x69b   : > { %5361 = vmatpush1.bf16.msra.mxu0 %v9179_v5  ;;  %5443 = vmatpush1.bf16.msra.mxu1 %v9182_v13  ;;  %v9263_v5 = vld [vmem:[%s10093_s5 + $0x8a0] ss:$16 sps:$4 sm:$0xff]   ;;  %v9266_v13 = vld [vmem:[%s10093_s5 + $0x8a8] ss:$16 sps:$4 sm:$0xff]  }
 0x69c   : > { %5362 = vmatprep.subr.bf16.mxu0 %v9187_v14  ;;  %5444 = vmatprep.subr.bf16.mxu1 %v9190_v6  ;;  %v9271_v14 = vld [vmem:[%s10093_s5 + $0x8c4] ss:$16 sps:$4 sm:$0xff]   ;;  %v9274_v6 = vld [vmem:[%s10093_s5 + $0x8cc] ss:$16 sps:$4 sm:$0xff]  }
 0x69f   : > { %5363 = vmatpush1.bf16.msra.mxu0 %v9185_v7  ;;  %5445 = vmatpush1.bf16.msra.mxu1 %v9188_v8  ;;  %v9269_v7 = vld [vmem:[%s10093_s5 + $0x8c0] ss:$16 sps:$4 sm:$0xff]   ;;  %v9272_v8 = vld [vmem:[%s10093_s5 + $0x8c8] ss:$16 sps:$4 sm:$0xff]  }
 0x6a0   : > { %5364 = vmatprep.subr.bf16.mxu0 %v9193_v9  ;;  %5446 = vmatprep.subr.bf16.mxu1 %v9196_v15  ;;  %v9277_v9 = vld [vmem:[%s10093_s5 + $0x8e4] ss:$16 sps:$4 sm:$0xff]   ;;  %v9280_v15 = vld [vmem:[%s10093_s5 + $0x8ec] ss:$16 sps:$4 sm:$0xff]  }
 0x6a3   : > { %5365 = vmatpush1.bf16.msra.mxu0 %v9191_v47  ;;  %5447 = vmatpush1.bf16.msra.mxu1 %v9194_v16  ;;  %v9275_v47 = vld [vmem:[%s10093_s5 + $0x8e0] ss:$16 sps:$4 sm:$0xff]   ;;  %v9278_v16 = vld [vmem:[%s10093_s5 + $0x8e8] ss:$16 sps:$4 sm:$0xff]  }
 0x6a4   : > { %5366 = vmatprep.subr.bf16.mxu0 %v9199_v17  ;;  %5448 = vmatprep.subr.bf16.mxu1 %v9202_v24  ;;  %v9283_v17 = vld [vmem:[%s10093_s5 + $0x904] ss:$16 sps:$4 sm:$0xff]   ;;  %v9286_v24 = vld [vmem:[%s10093_s5 + $0x90c] ss:$16 sps:$4 sm:$0xff]  }
 0x6a7   : > { %5367 = vmatpush1.bf16.msra.mxu0 %v9197_v25  ;;  %5449 = vmatpush1.bf16.msra.mxu1 %v9200_v26  ;;  %v9281_v25 = vld [vmem:[%s10093_s5 + $0x900] ss:$16 sps:$4 sm:$0xff]   ;;  %v9284_v26 = vld [vmem:[%s10093_s5 + $0x908] ss:$16 sps:$4 sm:$0xff]  }
 0x6a8   : > { %5368 = vmatprep.subr.bf16.mxu0 %v9205_v29  ;;  %5450 = vmatprep.subr.bf16.mxu1 %v9208_v31  ;;  %v9289_v29 = vld [vmem:[%s10093_s5 + $0x924] ss:$16 sps:$4 sm:$0xff]   ;;  %v9292_v31 = vld [vmem:[%s10093_s5 + $0x92c] ss:$16 sps:$4 sm:$0xff]  }
 0x6ab   : > { %5369 = vmatpush1.bf16.msra.mxu0 %v9203_v32  ;;  %5451 = vmatpush1.bf16.msra.mxu1 %v9206_v33  ;;  %v9287_v32 = vld [vmem:[%s10093_s5 + $0x920] ss:$16 sps:$4 sm:$0xff]   ;;  %v9290_v33 = vld [vmem:[%s10093_s5 + $0x928] ss:$16 sps:$4 sm:$0xff]  }
 0x6ac   : > { %5370 = vmatprep.subr.bf16.mxu0 %v9211_v34  ;;  %5452 = vmatprep.subr.bf16.mxu1 %v9214_v35  ;;  %v9295_v34 = vld [vmem:[%s10093_s5 + $0x944] ss:$16 sps:$4 sm:$0xff]   ;;  %v9298_v35 = vld [vmem:[%s10093_s5 + $0x94c] ss:$16 sps:$4 sm:$0xff]  }
 0x6af   : > { %5371 = vmatpush1.bf16.msra.mxu0 %v9209_v36  ;;  %5453 = vmatpush1.bf16.msra.mxu1 %v9212_v10  ;;  %v9293_v36 = vld [vmem:[%s10093_s5 + $0x940] ss:$16 sps:$4 sm:$0xff]   ;;  %v9296_v10 = vld [vmem:[%s10093_s5 + $0x948] ss:$16 sps:$4 sm:$0xff]  }
 0x6b0   : > { %5372 = vmatprep.subr.bf16.mxu0 %v9217_v38  ;;  %5454 = vmatprep.subr.bf16.mxu1 %v9220_v39  ;;  %v9301_v38 = vld [vmem:[%s10093_s5 + $0x964] ss:$16 sps:$4 sm:$0xff]   ;;  %v9304_v39 = vld [vmem:[%s10093_s5 + $0x96c] ss:$16 sps:$4 sm:$0xff]  }
 0x6b3   : > { %5373 = vmatpush1.bf16.msra.mxu0 %v9215_v40  ;;  %5455 = vmatpush1.bf16.msra.mxu1 %v9218_v41  ;;  %v9299_v40 = vld [vmem:[%s10093_s5 + $0x960] ss:$16 sps:$4 sm:$0xff]   ;;  %v9302_v41 = vld [vmem:[%s10093_s5 + $0x968] ss:$16 sps:$4 sm:$0xff]  }
 0x6b4   : > { %5374 = vmatprep.subr.bf16.mxu0 %v9223_v18  ;;  %5456 = vmatprep.subr.bf16.mxu1 %v9226_v42  ;;  %v9310_v18 = vld [vmem:[%s10093_s5 + $0x98c] ss:$16 sps:$4 sm:$0xff]   ;;  %v9305_v42 = vld [vmem:[%s10093_s5 + $0x980] ss:$16 sps:$4 sm:$0xff]  }
 0x6b7   : > { %5375 = vmatpush1.bf16.msra.mxu0 %v9221_v43  ;;  %5457 = vmatpush1.bf16.msra.mxu1 %v9224_v44  ;;  %v9308_v43 = vld [vmem:[%s10093_s5 + $0x988] ss:$16 sps:$4 sm:$0xff]   ;;  %v9313_v44 = vld [vmem:[%s10093_s5 + $0x9a4] ss:$16 sps:$4 sm:$0xff]  }
 0x6b8   : > { %5376 = vmatprep.subr.bf16.mxu0 %v9229_v23  ;;  %5458 = vmatprep.subr.bf16.mxu1 %v9232_v52  ;;  %v9311_v23 = vld [vmem:[%s10093_s5 + $0x9a0] ss:$16 sps:$4 sm:$0xff]   ;;  %v9314_v52 = vld [vmem:[%s10093_s5 + $0x9a8] ss:$16 sps:$4 sm:$0xff]  }
 0x6bb   : > { %5377 = vmatpush1.bf16.msra.mxu0 %v9227_v46  ;;  %5459 = vmatpush1.bf16.msra.mxu1 %v9230_v48  ;;  %v9319_v46 = vld [vmem:[%s10093_s5 + $0x9c4] ss:$16 sps:$4 sm:$0xff]   ;;  %v9322_v48 = vld [vmem:[%s10093_s5 + $0x9cc] ss:$16 sps:$4 sm:$0xff]  }
 0x6bc   : > { %6269 = vmatprep.subr.bf16.mxu0 %v9235_v49  ;;  %6351 = vmatprep.subr.bf16.mxu1 %v9238_v28  ;;  %v9320_v49 = vld [vmem:[%s10093_s5 + $0x9c8] ss:$16 sps:$4 sm:$0xff]   ;;  %v9325_v28 = vld [vmem:[%s10093_s5 + $0x9e4] ss:$16 sps:$4 sm:$0xff]  }
 0x6be   : > { %5379 = vmatmul.mubr.bf16.vlgmr.msra.gmra.mrb[4].mxu0 %v4511_v51  ;;  %5461 = vmatmul.mubr.bf16.vlgmr.msra.gmra.mrb[4].mxu1 %v4511_v51  ;;  %v9326_v51 = vld [vmem:[%s10093_s5 + $0x9e8] ss:$16 sps:$4 sm:$0xff]  }
 0x6bf   : > { %6270 = vmatpush1.bf16.msra.mxu0 %v9233_v30  ;;  %6352 = vmatpush1.bf16.msra.mxu1 %v9236_v50  ;;  %v9328_v30 = vld [vmem:[%s10093_s5 + $0x9ec] ss:$16 sps:$4 sm:$0xff]   ;;  %v9323_v50 = vld [vmem:[%s10093_s5 + $0x9e0] ss:$16 sps:$4 sm:$0xff]  }
 0x6c0   : > { %6271 = vmatprep.subr.bf16.mxu0 %v9241_v53  ;;  %6353 = vmatprep.subr.bf16.mxu1 %v9244_v54  ;;  %v9331_v53 = vld [vmem:[%s10093_s5 + $0xa04] ss:$16 sps:$4 sm:$0xff]   ;;  %v9334_v54 = vld [vmem:[%s10093_s5 + $0xa0c] ss:$16 sps:$4 sm:$0xff]  }
 0x6c3   : > { %6272 = vmatpush1.bf16.msra.mxu0 %v9239_v55  ;;  %6354 = vmatpush1.bf16.msra.mxu1 %v9242_v56  ;;  %v10526_v55 = vld [vmem:[%s10107_s0 + $0x4] sm:$0xf] }
 0x6c4   : > { %6273 = vmatprep.subr.bf16.mxu0 %v9247_v57  ;;  %6355 = vmatprep.subr.bf16.mxu1 %v9250_v58  ;;  %v4648_v56 = vrot.slane %v10526_v55, %v10372_v19  ;;  %v4652_v57 = vrot.slane %v10526_v55, %v10378_v20  ;;  %v4660_v58 = vrot.slane %v10526_v55, %v10381_v22 }
 0x6c7   : > { %6274 = vmatpush1.bf16.msra.mxu0 %v9245_v59  ;;  %6356 = vmatpush1.bf16.msra.mxu1 %v9248_v60 }
 0x6c8   : > { %6275 = vmatprep.subr.bf16.mxu0 %v9253_v61  ;;  %6357 = vmatprep.subr.bf16.mxu1 %v9256_v62 }
 0x6cb   : > { %6276 = vmatpush1.bf16.msra.mxu0 %v9251_v63  ;;  %6358 = vmatpush1.bf16.msra.mxu1 %v9254_v0 }
 0x6cc   : > { %6277 = vmatprep.subr.bf16.mxu0 %v9259_v1  ;;  %6359 = vmatprep.subr.bf16.mxu1 %v9262_v2 }
 0x6cf   : > { %6278 = vmatpush1.bf16.msra.mxu0 %v9257_v3  ;;  %6360 = vmatpush1.bf16.msra.mxu1 %v9260_v11 }
 0x6d0   : > { %6279 = vmatprep.subr.bf16.mxu0 %v9265_v4  ;;  %6361 = vmatprep.subr.bf16.mxu1 %v9268_v27 }
 0x6d3   : > { %6280 = vmatpush1.bf16.msra.mxu0 %v9263_v5  ;;  %6362 = vmatpush1.bf16.msra.mxu1 %v9266_v13 }
 0x6d4   : > { %6281 = vmatprep.subr.bf16.mxu0 %v9271_v14  ;;  %6363 = vmatprep.subr.bf16.mxu1 %v9274_v6  ;;  %v9329_v6 = vld [vmem:[%s10093_s5 + $0xa00] ss:$16 sps:$4 sm:$0xff]  }
 0x6d7   : > { %6282 = vmatpush1.bf16.msra.mxu0 %v9269_v7  ;;  %6364 = vmatpush1.bf16.msra.mxu1 %v9272_v8  ;;  %v9332_v7 = vld [vmem:[%s10093_s5 + $0xa08] ss:$16 sps:$4 sm:$0xff]  }
 0x6d8   : > { %6283 = vmatprep.subr.bf16.mxu0 %v9277_v9  ;;  %6365 = vmatprep.subr.bf16.mxu1 %v9280_v15  ;;  %v9337_v9 = vld [vmem:[%s10093_s5 + $0xa24] ss:$16 sps:$4 sm:$0xff]   ;;  %v9340_v15 = vld [vmem:[%s10093_s5 + $0xa2c] ss:$16 sps:$4 sm:$0xff]  }
 0x6db   : > { %6284 = vmatpush1.bf16.msra.mxu0 %v9275_v47  ;;  %6366 = vmatpush1.bf16.msra.mxu1 %v9278_v16  ;;  %v9335_v16 = vld [vmem:[%s10093_s5 + $0xa20] ss:$16 sps:$4 sm:$0xff]  }
 0x6dc   : > { %6285 = vmatprep.subr.bf16.mxu0 %v9283_v17  ;;  %6367 = vmatprep.subr.bf16.mxu1 %v9286_v24  ;;  %v9338_v17 = vld [vmem:[%s10093_s5 + $0xa28] ss:$16 sps:$4 sm:$0xff]   ;;  %v9343_v24 = vld [vmem:[%s10093_s5 + $0xa44] ss:$16 sps:$4 sm:$0xff]  }
 0x6df   : > { %6286 = vmatpush1.bf16.msra.mxu0 %v9281_v25  ;;  %6368 = vmatpush1.bf16.msra.mxu1 %v9284_v26  ;;  %v9346_v25 = vld [vmem:[%s10093_s5 + $0xa4c] ss:$16 sps:$4 sm:$0xff]   ;;  %v9341_v26 = vld [vmem:[%s10093_s5 + $0xa40] ss:$16 sps:$4 sm:$0xff]  }
 0x6e0   : > { %6287 = vmatprep.subr.bf16.mxu0 %v9289_v29  ;;  %6369 = vmatprep.subr.bf16.mxu1 %v9292_v31  ;;  %v9344_v29 = vld [vmem:[%s10093_s5 + $0xa48] ss:$16 sps:$4 sm:$0xff]   ;;  %v9349_v31 = vld [vmem:[%s10093_s5 + $0xa64] ss:$16 sps:$4 sm:$0xff]  }
 0x6e3   : > { %6288 = vmatpush1.bf16.msra.mxu0 %v9287_v32  ;;  %6370 = vmatpush1.bf16.msra.mxu1 %v9290_v33  ;;  %v9352_v32 = vld [vmem:[%s10093_s5 + $0xa6c] ss:$16 sps:$4 sm:$0xff]   ;;  %v9347_v33 = vld [vmem:[%s10093_s5 + $0xa60] ss:$16 sps:$4 sm:$0xff]  }
 0x6e4   : > { %6289 = vmatprep.subr.bf16.mxu0 %v9295_v34  ;;  %6371 = vmatprep.subr.bf16.mxu1 %v9298_v35  ;;  %v9350_v34 = vld [vmem:[%s10093_s5 + $0xa68] ss:$16 sps:$4 sm:$0xff]   ;;  %v9355_v35 = vld [vmem:[%s10093_s5 + $0xa84] ss:$16 sps:$4 sm:$0xff]  }
 0x6e7   : > { %6290 = vmatpush1.bf16.msra.mxu0 %v9293_v36  ;;  %6372 = vmatpush1.bf16.msra.mxu1 %v9296_v10  ;;  %v9358_v36 = vld [vmem:[%s10093_s5 + $0xa8c] ss:$16 sps:$4 sm:$0xff]   ;;  %v9353_v10 = vld [vmem:[%s10093_s5 + $0xa80] ss:$16 sps:$4 sm:$0xff]  }
 0x6e8   : > { %6291 = vmatprep.subr.bf16.mxu0 %v9301_v38  ;;  %6373 = vmatprep.subr.bf16.mxu1 %v9304_v39  ;;  %v9356_v38 = vld [vmem:[%s10093_s5 + $0xa88] ss:$16 sps:$4 sm:$0xff]   ;;  %v9361_v39 = vld [vmem:[%s10093_s5 + $0xaa4] ss:$16 sps:$4 sm:$0xff]  }
 0x6eb   : > { %6292 = vmatpush1.bf16.msra.mxu0 %v9299_v40  ;;  %6374 = vmatpush1.bf16.msra.mxu1 %v9302_v41  ;;  %v9364_v40 = vld [vmem:[%s10093_s5 + $0xaac] ss:$16 sps:$4 sm:$0xff]   ;;  %v9359_v41 = vld [vmem:[%s10093_s5 + $0xaa0] ss:$16 sps:$4 sm:$0xff]  }
 0x6ec   : > { %6293 = vmatprep.subr.bf16.mxu0 %v9307_v12  ;;  %6375 = vmatprep.subr.bf16.mxu1 %v9310_v18  ;;  %v9362_v12 = vld [vmem:[%s10093_s5 + $0xaa8] ss:$16 sps:$4 sm:$0xff]   ;;  %v9367_v18 = vld [vmem:[%s10093_s5 + $0xac4] ss:$16 sps:$4 sm:$0xff]  }
 0x6ef   : > { %6294 = vmatpush1.bf16.msra.mxu0 %v9305_v42  ;;  %6376 = vmatpush1.bf16.msra.mxu1 %v9308_v43  ;;  %v9370_v42 = vld [vmem:[%s10093_s5 + $0xacc] ss:$16 sps:$4 sm:$0xff]   ;;  %v9365_v43 = vld [vmem:[%s10093_s5 + $0xac0] ss:$16 sps:$4 sm:$0xff]  }
 0x6f0   : > { %6295 = vmatprep.subr.bf16.mxu0 %v9313_v44  ;;  %6377 = vmatprep.subr.bf16.mxu1 %v9316_v45  ;;  %v9368_v44 = vld [vmem:[%s10093_s5 + $0xac8] ss:$16 sps:$4 sm:$0xff]   ;;  %v9373_v45 = vld [vmem:[%s10093_s5 + $0xae4] ss:$16 sps:$4 sm:$0xff]  }
 0x6f3   : > { %6296 = vmatpush1.bf16.msra.mxu0 %v9311_v23  ;;  %6378 = vmatpush1.bf16.msra.mxu1 %v9314_v52  ;;  %v9376_v23 = vld [vmem:[%s10093_s5 + $0xaec] ss:$16 sps:$4 sm:$0xff]   ;;  %v9371_v52 = vld [vmem:[%s10093_s5 + $0xae0] ss:$16 sps:$4 sm:$0xff]  }
 0x6f4   : > { %6297 = vmatprep.subr.bf16.mxu0 %v9319_v46  ;;  %6379 = vmatprep.subr.bf16.mxu1 %v9322_v48  ;;  %v9374_v46 = vld [vmem:[%s10093_s5 + $0xae8] ss:$16 sps:$4 sm:$0xff]   ;;  %v9379_v48 = vld [vmem:[%s10093_s5 + $0xb04] ss:$16 sps:$4 sm:$0xff]  }
 0x6f7   : > { %6298 = vmatpush1.bf16.msra.mxu0 %v9317_v21  ;;  %6380 = vmatpush1.bf16.msra.mxu1 %v9320_v49  ;;  %v9382_v21 = vld [vmem:[%s10093_s5 + $0xb0c] ss:$16 sps:$4 sm:$0xff]   ;;  %v9377_v49 = vld [vmem:[%s10093_s5 + $0xb00] ss:$16 sps:$4 sm:$0xff]  }
 0x6f8   : > { %6299 = vmatprep.subr.bf16.mxu0 %v9325_v28  ;;  %6381 = vmatprep.subr.bf16.mxu1 %v9328_v30  ;;  %v9380_v28 = vld [vmem:[%s10093_s5 + $0xb08] ss:$16 sps:$4 sm:$0xff]   ;;  %v9385_v30 = vld [vmem:[%s10093_s5 + $0xb24] ss:$16 sps:$4 sm:$0xff]  }
 0x6fb   : > { %6300 = vmatpush1.bf16.msra.mxu0 %v9323_v50  ;;  %6382 = vmatpush1.bf16.msra.mxu1 %v9326_v51  ;;  %v9388_v50 = vld [vmem:[%s10093_s5 + $0xb2c] ss:$16 sps:$4 sm:$0xff]   ;;  %v9383_v51 = vld [vmem:[%s10093_s5 + $0xb20] ss:$16 sps:$4 sm:$0xff]  }
 0x6fc   : > { %6310 = vmatprep.subr.bf16.mxu0 %v9331_v53  ;;  %6392 = vmatprep.subr.bf16.mxu1 %v9334_v54  ;;  %v9386_v53 = vld [vmem:[%s10093_s5 + $0xb28] ss:$16 sps:$4 sm:$0xff]   ;;  %v9391_v54 = vld [vmem:[%s10093_s5 + $0xb44] ss:$16 sps:$4 sm:$0xff]  }
 0x791   : > { %v5380_v59 = vpop.f32.mrb[4].mxu0  ;;  %v10534_v60 = vpop.f32.mrb[4].mxu1 }
 0x792   : > { %v8120_v61 = vadd.f32 %v5380_v59, %v4648_v56  ;;  %v5382_v62 = vpop.f32.mrb[5].mxu0  ;;  %v5464_v63 = vpop.f32.mrb[5].mxu1  ;;  %v9394_v56 = vld [vmem:[%s10093_s5 + $0xb4c] ss:$16 sps:$4 sm:$0xff]   ;;  %v9397_v59 = vld [vmem:[%s10093_s5 + $0xb64] ss:$16 sps:$4 sm:$0xff]  }
 0x793   : > { %v8121_v0 = vadd.f32 %v5382_v62, %v4652_v57  ;;  %v8123_v1 = vadd.f32 %v5464_v63, %v4660_v58  ;;  %v5384_v2 = vpop.f32.mrb[6].mxu0  ;;  %v5466_v3 = vpop.f32.mrb[6].mxu1  ;;  %v9389_v57 = vld [vmem:[%s10093_s5 + $0xb40] ss:$16 sps:$4 sm:$0xff]   ;;  %v9392_v58 = vld [vmem:[%s10093_s5 + $0xb48] ss:$16 sps:$4 sm:$0xff]  }
 0x794   : > { %v5469_v11 = vmax.f32 %v8120_v61, 0.0  ;;  %v5385_v4 = vpop.f32.mrb[7].mxu0  ;;  %v5467_v27 = vpop.f32.mrb[7].mxu1  ;;  %v9400_v61 = vld [vmem:[%s10093_s5 + $0xb6c] ss:$16 sps:$4 sm:$0xff]  }
 0x795   : > { %v5470_v5 = vmax.f32 %v8121_v0, 0.0  ;;  %v5472_v13 = vmax.f32 %v8123_v1, 0.0  ;;  %v9395_v62 = vld [vmem:[%s10093_s5 + $0xb60] ss:$16 sps:$4 sm:$0xff]   ;;  %v9398_v63 = vld [vmem:[%s10093_s5 + $0xb68] ss:$16 sps:$4 sm:$0xff]  }
 0x796   : > { %v5473_v8 = vpack.c.bf16 %v5469_v11, %v5469_v11  ;;  %v9403_v0 = vld [vmem:[%s10093_s5 + $0xb84] ss:$16 sps:$4 sm:$0xff]   ;;  %v9406_v1 = vld [vmem:[%s10093_s5 + $0xb8c] ss:$16 sps:$4 sm:$0xff]   ;;  %v9401_v2 = vld [vmem:[%s10093_s5 + $0xb80] ss:$16 sps:$4 sm:$0xff]  }
 0x797   : > { %v5474_v14 = vpack.c.bf16 %v5470_v5, %v5470_v5  ;;  %v5476_v47 = vpack.c.bf16 %v5472_v13, %v5472_v13  ;;  %v9404_v3 = vld [vmem:[%s10093_s5 + $0xb88] ss:$16 sps:$4 sm:$0xff]   ;;  %v9409_v11 = vld [vmem:[%s10093_s5 + $0xba4] ss:$16 sps:$4 sm:$0xff]   ;;  %v9412_v4 = vld [vmem:[%s10093_s5 + $0xbac] ss:$16 sps:$4 sm:$0xff]   ;;  %v4656_v13 = vrot.slane %v10526_v55, %v10442_v37 }
 0x798   : > { %v9407_v27 = vld [vmem:[%s10093_s5 + $0xba0] ss:$16 sps:$4 sm:$0xff]   ;;  %v9410_v5 = vld [vmem:[%s10093_s5 + $0xba8] ss:$16 sps:$4 sm:$0xff]   ;;  %v9424_v55 = vld [vmem:[%s10093_s5 + $0xbec] ss:$16 sps:$4 sm:$0xff]  }
 0x799   : > { %6301 = vmatprep.mubr.bf16.mxu0 %v5474_v14  ;;  %6383 = vmatprep.mubr.bf16.mxu1 %v5474_v14  ;;  %v9415_v14 = vld [vmem:[%s10093_s5 + $0xbc4] ss:$16 sps:$4 sm:$0xff]  }
 0x79a   : > { %6302 = vmatmul.mubr.bf16.vlgmr.msra.gmra.mrb[8].mxu0 %v5473_v8  ;;  %6384 = vmatmul.mubr.bf16.vlgmr.msra.gmra.mrb[8].mxu1 %v5473_v8  ;;  %v9416_v8 = vld [vmem:[%s10093_s5 + $0xbc8] ss:$16 sps:$4 sm:$0xff]  }
 0x79b   : > { %6311 = vmatpush1.bf16.msra.mxu0 %v9329_v6  ;;  %6393 = vmatpush1.bf16.msra.mxu1 %v9332_v7  ;;  %v9418_v6 = vld [vmem:[%s10093_s5 + $0xbcc] ss:$16 sps:$4 sm:$0xff]   ;;  %v9413_v7 = vld [vmem:[%s10093_s5 + $0xbc0] ss:$16 sps:$4 sm:$0xff]  }
 0x79c   : > { %6342 = vmatprep.mubr.bf16.mxu0 %v5476_v47  ;;  %6424 = vmatprep.mubr.bf16.mxu1 %v5476_v47  ;;  %v9419_v47 = vld [vmem:[%s10093_s5 + $0xbe0] ss:$16 sps:$4 sm:$0xff]  }
 0x79d   : > { %6312 = vmatprep.subr.bf16.mxu0 %v9337_v9  ;;  %6394 = vmatprep.subr.bf16.mxu1 %v9340_v15  ;;  %v8122_v9 = vadd.f32 %v10534_v60, %v4656_v13  ;;  %v9421_v15 = vld [vmem:[%s10093_s5 + $0xbe4] ss:$16 sps:$4 sm:$0xff]   ;;  %v9427_v60 = vld [vmem:[%s10105_s27] sm:$0xff]  }
 0x79f   : > { %6313 = vmatpush1.bf16.msra.mxu0 %v9335_v16  ;;  %6395 = vmatpush1.bf16.msra.mxu1 %v9338_v17  ;;  %v9422_v16 = vld [vmem:[%s10093_s5 + $0xbe8] ss:$16 sps:$4 sm:$0xff]   ;;  %v5471_v17 = vmax.f32 %v8122_v9, 0.0 }
 0x7a0   : > { %6314 = vmatprep.subr.bf16.mxu0 %v9343_v24  ;;  %6396 = vmatprep.subr.bf16.mxu1 %v9346_v25  ;;  %v9425_v24 = vld [vmem:[%s10105_s27 + $0x40] sm:$0xff]  }
 0x7a1   : > { %v9426_v25 = vld [vmem:[%s10105_s27 + $0xc0] sm:$0xff]  }
 0x7a3   : > { %6315 = vmatpush1.bf16.msra.mxu0 %v9341_v26  ;;  %6397 = vmatpush1.bf16.msra.mxu1 %v9344_v29  ;;  %v9428_v26 = vld [vmem:[%s10105_s27 + $0x80] sm:$0xff]   ;;  %v5475_v29 = vpack.c.bf16 %v5471_v17, %v5471_v17 }
 0x7a4   : > { %6316 = vmatprep.subr.bf16.mxu0 %v9349_v31  ;;  %6398 = vmatprep.subr.bf16.mxu1 %v9352_v32  ;;  %v9429_v31 = vld [vmem:[%s10105_s27 + $0x48] sm:$0xff]  }
 0x7a5   : > { %v9430_v32 = vld [vmem:[%s10105_s27 + $0xc8] sm:$0xff]  }
 0x7a7   : > { %6317 = vmatpush1.bf16.msra.mxu0 %v9347_v33  ;;  %6399 = vmatpush1.bf16.msra.mxu1 %v9350_v34  ;;  %v9431_v33 = vld [vmem:[%s10105_s27 + $0x8] sm:$0xff]  }
 0x7a8   : > { %6318 = vmatprep.subr.bf16.mxu0 %v9355_v35  ;;  %6400 = vmatprep.subr.bf16.mxu1 %v9358_v36  ;;  %v9432_v34 = vld [vmem:[%s10105_s27 + $0x88] sm:$0xff]   ;;  %v9433_v35 = vld [vmem:[%s10105_s27 + $0x50] sm:$0xff]  }
 0x7a9   : > { %v9434_v36 = vld [vmem:[%s10105_s27 + $0xd0] sm:$0xff]  }
 0x7ab   : > { %6319 = vmatpush1.bf16.msra.mxu0 %v9353_v10  ;;  %6401 = vmatpush1.bf16.msra.mxu1 %v9356_v38  ;;  %v9435_v10 = vld [vmem:[%s10105_s27 + $0x10] sm:$0xff]  }
 0x7ac   : > { %6320 = vmatprep.subr.bf16.mxu0 %v9361_v39  ;;  %6402 = vmatprep.subr.bf16.mxu1 %v9364_v40  ;;  %v9436_v38 = vld [vmem:[%s10105_s27 + $0x90] sm:$0xff]   ;;  %v9437_v39 = vld [vmem:[%s10105_s27 + $0x58] sm:$0xff]  }
 0x7ad   : > { %v9438_v40 = vld [vmem:[%s10105_s27 + $0xd8] sm:$0xff]  }
 0x7af   : > { %6321 = vmatpush1.bf16.msra.mxu0 %v9359_v41  ;;  %6403 = vmatpush1.bf16.msra.mxu1 %v9362_v12  ;;  %v9439_v41 = vld [vmem:[%s10105_s27 + $0x18] sm:$0xff]  }
 0x7b0   : > { %6322 = vmatprep.subr.bf16.mxu0 %v9367_v18  ;;  %6404 = vmatprep.subr.bf16.mxu1 %v9370_v42  ;;  %v9440_v12 = vld [vmem:[%s10105_s27 + $0x98] sm:$0xff]   ;;  %v9441_v18 = vld [vmem:[%s10105_s27 + $0x60] sm:$0xff]  }
 0x7b1   : > { %v9442_v42 = vld [vmem:[%s10105_s27 + $0xe0] sm:$0xff]  }
 0x7b3   : > { %6323 = vmatpush1.bf16.msra.mxu0 %v9365_v43  ;;  %6405 = vmatpush1.bf16.msra.mxu1 %v9368_v44  ;;  %v9443_v43 = vld [vmem:[%s10105_s27 + $0x20] sm:$0xff]  }
 0x7b4   : > { %6324 = vmatprep.subr.bf16.mxu0 %v9373_v45  ;;  %6406 = vmatprep.subr.bf16.mxu1 %v9376_v23  ;;  %v9444_v44 = vld [vmem:[%s10105_s27 + $0xa0] sm:$0xff]   ;;  %v9445_v45 = vld [vmem:[%s10105_s27 + $0x68] sm:$0xff]  }
 0x7b5   : > { %v9446_v23 = vld [vmem:[%s10105_s27 + $0xe8] sm:$0xff]  }
 0x7b7   : > { %6325 = vmatpush1.bf16.msra.mxu0 %v9371_v52  ;;  %6407 = vmatpush1.bf16.msra.mxu1 %v9374_v46  ;;  %v9447_v52 = vld [vmem:[%s10105_s27 + $0x28] sm:$0xff]  }
 0x7b8   : > { %6326 = vmatprep.subr.bf16.mxu0 %v9379_v48  ;;  %6408 = vmatprep.subr.bf16.mxu1 %v9382_v21  ;;  %v9448_v46 = vld [vmem:[%s10105_s27 + $0xa8] sm:$0xff]   ;;  %v9449_v48 = vld [vmem:[%s10105_s27 + $0x70] sm:$0xff]  }
 0x7b9   : > { %v9450_v21 = vld [vmem:[%s10105_s27 + $0xf0] sm:$0xff]  }
 0x7bb   : > { %6327 = vmatpush1.bf16.msra.mxu0 %v9377_v49  ;;  %6409 = vmatpush1.bf16.msra.mxu1 %v9380_v28  ;;  %v9451_v49 = vld [vmem:[%s10105_s27 + $0x30] sm:$0xff]  }
 0x7bc   : > { %6328 = vmatprep.subr.bf16.mxu0 %v9385_v30  ;;  %6410 = vmatprep.subr.bf16.mxu1 %v9388_v50  ;;  %v9452_v28 = vld [vmem:[%s10105_s27 + $0xb0] sm:$0xff]   ;;  %v9453_v30 = vld [vmem:[%s10105_s27 + $0x78] sm:$0xff]  }
 0x7bd   : > { %v9454_v50 = vld [vmem:[%s10105_s27 + $0xf8] sm:$0xff]  }
 0x7bf   : > { %6329 = vmatpush1.bf16.msra.mxu0 %v9383_v51  ;;  %6411 = vmatpush1.bf16.msra.mxu1 %v9386_v53  ;;  %v9455_v51 = vld [vmem:[%s10105_s27 + $0x38] sm:$0xff]  }
 0x7c0   : > { %6330 = vmatprep.subr.bf16.mxu0 %v9391_v54  ;;  %6412 = vmatprep.subr.bf16.mxu1 %v9394_v56  ;;  %v9456_v53 = vld [vmem:[%s10105_s27 + $0xb8] sm:$0xff]   ;;  %v6784_v54 = vld [vmem:[%s10746_s30] sm:$0xff]  ;;  %v6785_v56 = vstv %s9821_s13 }
 0x7c1   : > { %vm6786_vm2 = vcmp.eq.s32.totalorder %v6784_v54, %v6785_v56 }
 0x7c3   : > { %6331 = vmatpush1.bf16.msra.mxu0 %v9389_v57  ;;  %6413 = vmatpush1.bf16.msra.mxu1 %v9392_v58  ;;  %v9750_v57 = vmov 0  }
 0x7c4   : > { %6332 = vmatprep.subr.bf16.mxu0 %v9397_v59  ;;  %6414 = vmatprep.subr.bf16.mxu1 %v9400_v61  ;;  %v6788_v58 = vsel %vm6786_vm2, 1, %v9750_v57  ;;  %v7867_v59 = vld [vmem:[%s10107_s0 + $0x8] sm:$0xf] }
 0x7c5   : > { %8844 = vset.pattern.permute.xlu0 %v9750_v57  ;;  %v5612_v61 = vrot.slane %v7867_v59, %v10372_v19 }
 0x7c6   : > { %6790 = vperm.xlu0 %8844, %v6788_v58  }
 0x7c7   : > { %6333 = vmatpush1.bf16.msra.mxu0 %v9395_v62  ;;  %6415 = vmatpush1.bf16.msra.mxu1 %v9398_v63  ;;  %v5620_v62 = vrot.slane %v7867_v59, %v10442_v37  ;;  %v5616_v63 = vrot.slane %v7867_v59, %v10378_v20 }
 0x7c8   : > { %6334 = vmatprep.subr.bf16.mxu0 %v9403_v0  ;;  %6416 = vmatprep.subr.bf16.mxu1 %v9406_v1  ;;  %v5624_v0 = vrot.slane %v7867_v59, %v10381_v22 }
 0x7cb   : > { %6335 = vmatpush1.bf16.msra.mxu0 %v9401_v2  ;;  %6417 = vmatpush1.bf16.msra.mxu1 %v9404_v3 }
 0x7cc   : > { %6336 = vmatprep.subr.bf16.mxu0 %v9409_v11  ;;  %6418 = vmatprep.subr.bf16.mxu1 %v9412_v4 }
 0x7cf   : > { %6337 = vmatpush1.bf16.msra.mxu0 %v9407_v27  ;;  %6419 = vmatpush1.bf16.msra.mxu1 %v9410_v5 }
 0x7d0   : > { %6338 = vmatprep.subr.bf16.mxu0 %v9415_v14  ;;  %6420 = vmatprep.subr.bf16.mxu1 %v9418_v6 }
 0x7d3   : > { %6339 = vmatpush1.bf16.msra.mxu0 %v9413_v7  ;;  %6421 = vmatpush1.bf16.msra.mxu1 %v9416_v8 }
 0x7d4   : > { %6340 = vmatprep.subr.bf16.mxu0 %v9421_v15  ;;  %6422 = vmatprep.subr.bf16.mxu1 %v9424_v55 }
 0x7d7   : > { %6341 = vmatpush1.bf16.msra.mxu0 %v9419_v47  ;;  %6423 = vmatpush1.bf16.msra.mxu1 %v9422_v16 }
 0x7d8   : > { %8036 = vmatprep.subr.bf16.mxu0 %v9425_v24  ;;  %8058 = vmatprep.subr.bf16.mxu1 %v9426_v25  ;;  %v7996_v25 = vld [vmem:[%s432_s28] ss:$0 sm:$0xff] }
 0x7da   : > { %6343 = vmatmul.mubr.bf16.vlgmr.msra.gmra.mrb[8].mxu0 %v5475_v29  ;;  %6425 = vmatmul.mubr.bf16.vlgmr.msra.gmra.mrb[8].mxu1 %v5475_v29 }
 0x7db   : > { %8037 = vmatpush3.bf16.msra.mxu0 %v9427_v60  ;;  %8059 = vmatpush3.bf16.msra.mxu1 %v9428_v26 }
 0x7dc   : > { %8038 = vmatprep.subr.bf16.mxu0 %v9429_v31  ;;  %8060 = vmatprep.subr.bf16.mxu1 %v9430_v32 }
 0x7df   : > { %8039 = vmatpush3.bf16.msra.mxu0 %v9431_v33  ;;  %8061 = vmatpush3.bf16.msra.mxu1 %v9432_v34 }
 0x7e0   : > { %8040 = vmatprep.subr.bf16.mxu0 %v9433_v35  ;;  %8062 = vmatprep.subr.bf16.mxu1 %v9434_v36 }
 0x7e3   : > { %8041 = vmatpush3.bf16.msra.mxu0 %v9435_v10  ;;  %8063 = vmatpush3.bf16.msra.mxu1 %v9436_v38  ;;  %v6787_v10 = vld [vmem:[#allocation14] sm:$0xff] }
 0x7e4   : > { %8042 = vmatprep.subr.bf16.mxu0 %v9437_v39  ;;  %8064 = vmatprep.subr.bf16.mxu1 %v9438_v40 }
 0x7e7   : > { %8043 = vmatpush3.bf16.msra.mxu0 %v9439_v41  ;;  %8065 = vmatpush3.bf16.msra.mxu1 %v9440_v12 }
 0x7e8   : > { %8044 = vmatprep.subr.bf16.mxu0 %v9441_v18  ;;  %8066 = vmatprep.subr.bf16.mxu1 %v9442_v42 }
 0x7eb   : > { %8045 = vmatpush3.bf16.msra.mxu0 %v9443_v43  ;;  %8067 = vmatpush3.bf16.msra.mxu1 %v9444_v44 }
 0x7ec   : > { %8046 = vmatprep.subr.bf16.mxu0 %v9445_v45  ;;  %8068 = vmatprep.subr.bf16.mxu1 %v9446_v23 }
 0x7ef   : > { %8047 = vmatpush3.bf16.msra.mxu0 %v9447_v52  ;;  %8069 = vmatpush3.bf16.msra.mxu1 %v9448_v46 }
 0x7f0   : > { %8048 = vmatprep.subr.bf16.mxu0 %v9449_v48  ;;  %8070 = vmatprep.subr.bf16.mxu1 %v9450_v21 }
 0x7f3   : > { %8049 = vmatpush3.bf16.msra.mxu0 %v9451_v49  ;;  %8071 = vmatpush3.bf16.msra.mxu1 %v9452_v28 }
 0x7f4   : > { %8050 = vmatprep.subr.bf16.mxu0 %v9453_v30  ;;  %8072 = vmatprep.subr.bf16.mxu1 %v9454_v50 }
 0x7f7   : > { %8051 = vmatpush3.bf16.msra.mxu0 %v9455_v51  ;;  %8073 = vmatpush3.bf16.msra.mxu1 %v9456_v53 }
 0x845   : > { %v6791_v16 = vpop.permute.xlu0 %6790 }
 0x846   : > { %vm6792_vm3 = vcmp.eq.s32.totalorder %v6791_v16, 1 }
 0x8ad   : > { %v6344_v1 = vpop.f32.mrb[8].mxu0  ;;  %v6426_v2 = vpop.f32.mrb[8].mxu1 }
 0x8ae   : > { %v8124_v3 = vadd.f32 %v6344_v1, %v5612_v61  ;;  %v8126_v11 = vadd.f32 %v6426_v2, %v5620_v62  ;;  %v6346_v4 = vpop.f32.mrb[9].mxu0  ;;  %v6428_v27 = vpop.f32.mrb[9].mxu1 }
 0x8af   : > { %v8125_v5 = vadd.f32 %v6346_v4, %v5616_v63  ;;  %v8127_v13 = vadd.f32 %v6428_v27, %v5624_v0  ;;  %v6348_v14 = vpop.f32.mrb[10].mxu0  ;;  %v6430_v6 = vpop.f32.mrb[10].mxu1 }
 0x8b0   : > { %v6433_v7 = vmax.f32 %v8124_v3, 0.0  ;;  %v6435_v8 = vmax.f32 %v8126_v11, 0.0  ;;  %v6349_v19 = vpop.f32.mrb[11].mxu0  ;;  %v6431_v9 = vpop.f32.mrb[11].mxu1 }
 0x8b1   : > { %v6434_v37 = vmax.f32 %v8125_v5, 0.0  ;;  %v6436_v15 = vmax.f32 %v8127_v13, 0.0 }
 0x8b2   : > { %v6437_v22 = vpack.c.bf16 %v6433_v7, %v6433_v7  ;;  %v6439_v47 = vpack.c.bf16 %v6435_v8, %v6435_v8 }
 0x8b3   : > { %v6438_v20 = vpack.c.bf16 %v6434_v37, %v6434_v37  ;;  %v6440_v55 = vpack.c.bf16 %v6436_v15, %v6436_v15 }
 0x8b5   : > { %6736 = vmatprep.mubr.bf16.mxu0 %v6438_v20  ;;  %6776 = vmatprep.mubr.bf16.mxu1 %v6440_v55 }
 0x8b6   : > { %6737 = vmatmul.mubr.bf16.vlgmr.msra.gmra.mrb[12].mxu0 %v6437_v22  ;;  %6777 = vmatmul.mubr.bf16.vlgmr.msra.gmra.mrb[12].mxu1 %v6439_v47 }
 0x989   : > { %v8052_v17 = vpop.f32.mrb[12].mxu0  ;;  %v8074_v24 = vpop.f32.mrb[12].mxu1 }
 0x98a   : > { %v8053_v60 = vpop.f32.mrb[13].mxu0  ;;  %v8075_v26 = vpop.f32.mrb[13].mxu1 }
 0x98b   : > { %v8054_v29 = vadd.f32 %v8053_v60, %v8052_v17  ;;  %v8076_v31 = vadd.f32 %v8075_v26, %v8074_v24  ;;  %v8055_v32 = vpop.f32.mrb[14].mxu0  ;;  %v8077_v33 = vpop.f32.mrb[14].mxu1 }
 0x98c   : > { %v8056_v34 = vpop.f32.mrb[15].mxu0  ;;  %v8078_v35 = vpop.f32.mrb[15].mxu1 }
 0x98d   : > { %v6739_v36 = vadd.f32 %v8054_v29, %v7996_v25 }
 0x98f   : > { %v6779_v38 = vadd.f32 %v8076_v31, %v6739_v36 }
 0x991   : > { %v6793_v39 = vsel %vm6792_vm3, %v6779_v38, %v6787_v10 }
 0x992   : > { %6795 = vst.msk [vmem:[#allocation14] sm:$0xff] %vm6794_vm4, %v6793_v39 }
 0x993   : > { %9672 = shalt.err (!%p9669_p7)
}
 0x994   : > { %s10747_s26 = sld [smem:[#allocation28_spill]] }
 0x99a   : > { %s9673_s9 = scalar_lea.hbm %s10747_s26, 128 }
 0x99b   : > { %p9674_p6 = scmp.ne.s32.totalorder %s10747_s26, %s9673_s9  ;;  %p9679_p1 = scmp.lt.u32.totalorder %s9673_s9, %s10747_s26 }
 0x99d   : > { %p9675_p10 = pnand %p9674_p6, %p8216_p13 }
 0x99f   : > { %p9676_p2 = pneg %p9675_p10 }
 0x9a1   : > { %p9681_p5 = pnand %p9679_p1, %p9676_p2 }
 0x9a3   : > { %9684 = shalt.err (!%p9681_p5)
}
 0x9a4   : > { %8181 = dma.vmem_to_hbm [thread:$0]  (%p8216_p13), %s6804_s20, 128, %s10747_s26, [#allocation5]  }
 0x9a5   : > { %9718 = dma.done.wait (%p8216_p13), [#allocation5], 128  }
 0x9a6   : > { %9720 = vsyncadd (%p8216_p13), [#allocation5], 4294967168 }
 0x9a7 PF: > { %s10748_s12 = sld [smem:[#allocation21_spill]]  ;;  %s10749_s5 = sld [smem:[#allocation20_spill]] }
 0x9a8   : > { %s10750_s11 = sld [smem:[#allocation22_spill]]  ;;  %s10751_s30 = smov %s9727_s10 }
 0x9ad   : > { %p20_p8 = scmp.ge.s32.totalorder %s10748_s12, 4   ;;  %s10752_s10 = smov %s10749_s5 }
 0x9af   :  { %22 = sbr.rel (!%p20_p8) target bundleno = 12 (0xc), region = 146 }
 0x9b6   :  { %6816 = vsyncpa [#allocation4], 1 }
 0x9b7   :  { %6818 = vsyncpa [#allocation4 + $0x1], 1 }
 0x9b8   :  { %6819 = vsyncpa [#allocation7], 1 }
 0x9b9   :  { %6820 = vsyncpa [#allocation10], 1 }
 0x9ba   :  { %6821 = vsyncpa [#allocation5], 1 }
 0x9bb   :  { %6823 = vsyncpa [#allocation5 + $0x1], 1 }

</bundles_post_ra>
